<compile_context>
chip_gen: v7x
topology: tpu7x:2x2x1
jax: 0.10.0
libtpu: 0.0.40
codegen_flags: <defaults>
</compile_context>

<pallas_src>
import functools

import jax
import jax.numpy as jnp
from jax.experimental import pallas as pl
from jax.experimental.pallas import tpu as pltpu


# ----------------------------------------------------------------------------
# small helpers
# ----------------------------------------------------------------------------
def _round_up(x, m):
    return ((x + m - 1) // m) * m


def _pick_tm(M):
    # Single grid step at toy sizes (per-step overhead ~0.35us dwarfs tiny tiles);
    # 512-1024 lane tiles once M grows (>=85% of HBM roofline on v5e/v6e/v7x, and
    # >=2 blocks so both v7x TensorCores get work).
    if M <= 2048:
        return M
    return 512 if M <= 65536 else 1024


def _make_geo(B, H, W):
    Hp, Wp = H + 2, W + 2
    Mp = B * Hp * Wp
    tm = _pick_tm(Mp)
    Mc = _round_up(Mp, tm)
    return dict(
        B=B, H=H, W=W, Hp=Hp, Wp=Wp, Mp=Mp, tm=tm, Mc=Mc, T=Mc // tm,
        halo=2 * Wp + 2,
        # tap t = dy*3+dx reads column p + dy*Wp + dx of the halo-extended input
        offsets=tuple(dy * Wp + dx for dy in range(3) for dx in range(3)),
    )


def _to_padded_flat(a_cbhw, rows_out):
    """[C, B, H, W] -> [rows_out, B*(H+2)*(W+2)] (zero spatial pad + zero channel rows)."""
    C, B, H, W = a_cbhw.shape
    ap = jnp.pad(a_cbhw, ((0, rows_out - C), (0, 0), (1, 1), (1, 1)))
    return ap.reshape(rows_out, B * (H + 2) * (W + 2))


def _pad_cols(a, Mc):
    return jnp.pad(a, ((0, 0), (0, Mc - a.shape[1])))


def _prep_conv_w(w_oihw, b, kp_in, np_out):
    """PyTorch OIHW conv weight -> tap-major [9, Np, Kp] bf16 (+ padded bias [Np,1] f32)."""
    Cout, Cin = w_oihw.shape[0], w_oihw.shape[1]
    w = jnp.pad(w_oihw, ((0, np_out - Cout), (0, kp_in - Cin), (0, 0), (0, 0)))
    w_taps = jnp.transpose(w, (2, 3, 0, 1)).reshape(9, np_out, kp_in).astype(jnp.bfloat16)
    b2 = jnp.pad(b, (0, np_out - Cout)).reshape(np_out, 1).astype(jnp.float32)
    return w_taps, b2


def _make_conv_tiles(x_flat, geo):
    """[C, Mp] padded-flat activation -> halo-overlapped tiles [T, C, tm+halo].

    Duplication is only halo/tm (a few %), vs. 9x for im2col.
    """
    C, Mp = x_flat.shape
    Mc, tm, T, halo, Wp = geo["Mc"], geo["tm"], geo["T"], geo["halo"], geo["Wp"]
    lead = Wp + 1
    x_ext = jnp.pad(x_flat, ((0, 0), (lead, Mc + halo - lead - Mp)))
    if T == 1:
        return x_ext[None]                                   # [1, C, tm+halo]
    idx = jnp.arange(T)[:, None] * tm + jnp.arange(tm + halo)[None, :]
    return jnp.transpose(x_ext[:, idx], (1, 0, 2))           # [T, C, tm+halo]
# TODO(synk): for very large latents the halo-overlap gather (one XLA copy of the
# activation per conv) could move in-kernel via manual make_async_copy of shifted rows.


# ----------------------------------------------------------------------------
# Pallas kernels: out[Np, tm] = epilogue( sum_t W_t[Np,Kp] @ Xshift_t[Kp,tm] + b )
# ----------------------------------------------------------------------------
def _taps(w_ref, x_ref, offsets, tm):
    acc = None
    for t, off in enumerate(offsets):                         # static unroll, 9 taps
        part = jnp.dot(w_ref[t], x_ref[:, off:off + tm],
                       preferred_element_type=jnp.float32)
        acc = part if acc is None else acc + part
    return acc


def _conv_mix_kernel(w_ref, b_ref, x_ref, mask_ref, s1_ref, s2_ref, noise_ref,
                     o_ref, *, offsets, tm):
    # encoder conv + ReLU, with the DDPM noise mix fused into the epilogue
    acc = _taps(w_ref, x_ref, offsets, tm) + b_ref[...]
    acc = jnp.maximum(acc, 0.0)
    out = mask_ref[...] * (s1_ref[...] * acc) + s2_ref[...] * noise_ref[...]
    o_ref[...] = out.astype(o_ref.dtype)


def _conv_temb_kernel(w_ref, b_ref, x_ref, mask_ref, temb_ref, onehot_ref,
                      o_ref, *, offsets, tm):
    # unet conv1 + per-(batch,channel) time-embedding add + ReLU
    acc = _taps(w_ref, x_ref, offsets, tm) + b_ref[...]
    acc = acc + jnp.dot(temb_ref[...], onehot_ref[...],      # [Np,B] @ [B,tm]
                        preferred_element_type=jnp.float32)
    acc = jnp.maximum(acc, 0.0)
    o_ref[...] = (mask_ref[...] * acc).astype(o_ref.dtype)


def _conv_mse_kernel(w_ref, b_ref, x_ref, mask_ref, tgt_ref,
                     o_ref, sse_ref, *, offsets, tm):
    # unet conv2 (no activation) + fused per-tile partial SSE (kept "parallel")
    acc = _taps(w_ref, x_ref, offsets, tm) + b_ref[...]
    pred = mask_ref[...] * acc
    o_ref[...] = pred.astype(o_ref.dtype)
    d = pred - tgt_ref[...]
    sse = jnp.sum(d * d)
    lane = jax.lax.broadcasted_iota(jnp.int32, (1, 128), 1)
    sse_ref[...] = jnp.where(lane == 0, sse, 0.0)


# ----------------------------------------------------------------------------
# pallas_call wrappers
# ----------------------------------------------------------------------------
_PARALLEL = pltpu.CompilerParams(dimension_semantics=("parallel",))


def _base_specs(Np, Kp, x_last):
    return [
        pl.BlockSpec((9, Np, Kp), lambda j: (0, 0, 0)),       # weights: resident
        pl.BlockSpec((Np, 1), lambda j: (0, 0)),              # bias: resident
        pl.BlockSpec((None, Kp, x_last), lambda j: (j, 0, 0)),  # halo-extended act tile
    ]


def _col_spec(rows, tm):
    return pl.BlockSpec((rows, tm), lambda j: (0, j))


def _cost(Np, Kp, geo, extra_bytes):
    flops = 2 * 9 * Np * Kp * geo["Mc"]
    bytes_accessed = (geo["T"] * Kp * (geo["tm"] + geo["halo"]) * 2   # bf16 act tiles
                      + 9 * Np * Kp * 2 + Np * 4                       # weights + bias
                      + geo["Mc"] * 4                                  # mask row
                      + extra_bytes)
    return pl.CostEstimate(flops=int(flops), transcendentals=0,
                           bytes_accessed=int(bytes_accessed))


def conv3x3_enc_mix(x_flat, w_taps, bias, mask_c, s1_c, s2_c, noise_c, geo):
    Np, Kp = w_taps.shape[1], w_taps.shape[2]
    tm, T, Mc = geo["tm"], geo["T"], geo["Mc"]
    x_tiles = _make_conv_tiles(x_flat, geo)
    kern = functools.partial(_conv_mix_kernel, offsets=geo["offsets"], tm=tm)
    extra = 2 * Mc * 4 + Np * Mc * 4 + Np * Mc * 2            # s1/s2 + noise + bf16 out
    return pl.pallas_call(
        kern,
        grid=(T,),
        in_specs=_base_specs(Np, Kp, x_tiles.shape[2]) + [
            _col_spec(1, tm), _col_spec(1, tm), _col_spec(1, tm), _col_spec(Np, tm)],
        out_specs=_col_spec(Np, tm),
        out_shape=jax.ShapeDtypeStruct((Np, Mc), jnp.bfloat16),
        compiler_params=_PARALLEL,
        cost_estimate=_cost(Np, Kp, geo, extra),
    )(w_taps, bias, x_tiles, mask_c, s1_c, s2_c, noise_c)


def conv3x3_temb_relu(x_flat, w_taps, bias, mask_c, temb_t, onehot_c, geo):
    Np, Kp = w_taps.shape[1], w_taps.shape[2]
    Bn = onehot_c.shape[0]
    tm, T, Mc = geo["tm"], geo["T"], geo["Mc"]
    x_tiles = _make_conv_tiles(x_flat, geo)
    kern = functools.partial(_conv_temb_kernel, offsets=geo["offsets"], tm=tm)
    extra = Np * Bn * 4 + Bn * Mc * 4 + Np * Mc * 2           # temb + onehot + bf16 out
    return pl.pallas_call(
        kern,
        grid=(T,),
        in_specs=_base_specs(Np, Kp, x_tiles.shape[2]) + [
            _col_spec(1, tm),
            pl.BlockSpec((Np, Bn), lambda j: (0, 0)),         # temb table: resident
            _col_spec(Bn, tm)],
        out_specs=_col_spec(Np, tm),
        out_shape=jax.ShapeDtypeStruct((Np, Mc), jnp.bfloat16),
        compiler_params=_PARALLEL,
        cost_estimate=_cost(Np, Kp, geo, extra),
    )(w_taps, bias, x_tiles, mask_c, temb_t, onehot_c)


def conv3x3_mse(x_flat, w_taps, bias, mask_c, target_c, geo, count):
    Np, Kp = w_taps.shape[1], w_taps.shape[2]
    tm, T, Mc = geo["tm"], geo["T"], geo["Mc"]
    x_tiles = _make_conv_tiles(x_flat, geo)
    kern = functools.partial(_conv_mse_kernel, offsets=geo["offsets"], tm=tm)
    extra = Np * Mc * 4 + Np * Mc * 4 + T * 128 * 4           # target + f32 out + partials
    pred, sse = pl.pallas_call(
        kern,
        grid=(T,),
        in_specs=_base_specs(Np, Kp, x_tiles.shape[2]) + [
            _col_spec(1, tm), _col_spec(Np, tm)],
        out_specs=(_col_spec(Np, tm),
                   pl.BlockSpec((1, 128), lambda j: (0, j))),  # per-tile partial SSE
        out_shape=(jax.ShapeDtypeStruct((Np, Mc), jnp.float32),
                   jax.ShapeDtypeStruct((1, T * 128), jnp.float32)),
        compiler_params=_PARALLEL,
        cost_estimate=_cost(Np, Kp, geo, extra),
    )(w_taps, bias, x_tiles, mask_c, target_c)
    loss = jnp.sum(sse) * (1.0 / float(count))                 # tiny XLA reduction
    return pred, loss


# ----------------------------------------------------------------------------
# Model pieces (deterministic synthetic parameters, PyTorch-style layouts)
# ----------------------------------------------------------------------------
def init_params(key, cin=3, cz=4, hidden=32, temb_dim=32):
    ks = jax.random.split(key, 5)
    s = 0.1
    return {
        "enc_w": jax.random.normal(ks[0], (cz, cin, 3, 3), jnp.float32) * s,    # OIHW
        "enc_b": jnp.zeros((cz,), jnp.float32),
        "t_w1": jax.random.normal(ks[1], (temb_dim, temb_dim), jnp.float32) * s,
        "t_b1": jnp.zeros((temb_dim,), jnp.float32),
        "t_w2": jax.random.normal(ks[2], (temb_dim, hidden), jnp.float32) * s,
        "t_b2": jnp.zeros((hidden,), jnp.float32),
        "u_w1": jax.random.normal(ks[3], (hidden, cz, 3, 3), jnp.float32) * s,  # OIHW
        "u_b1": jnp.zeros((hidden,), jnp.float32),
        "u_w2": jax.random.normal(ks[4], (cz, hidden, 3, 3), jnp.float32) * s,  # OIHW
        "u_b2": jnp.zeros((cz,), jnp.float32),
    }


def make_scheduler(num_steps=1000, beta_start=1e-4, beta_end=0.02):
    betas = jnp.linspace(beta_start, beta_end, num_steps, dtype=jnp.float32)
    return {"alphas_cumprod": jnp.cumprod(1.0 - betas)}


def sinusoidal_embedding(t, dim):
    half = dim // 2
    freqs = jnp.exp(-jnp.log(10000.0) * jnp.arange(half, dtype=jnp.float32) / half)
    args = t.astype(jnp.float32)[:, None] * freqs[None, :]
    return jnp.concatenate([jnp.sin(args), jnp.cos(args)], axis=-1)   # [B, dim]


# ----------------------------------------------------------------------------
# LatentDiffusionModel.forward
# ----------------------------------------------------------------------------
def ldm_forward(params, sched, x_nchw, t, noise_key):
    B, Cin, H, W = x_nchw.shape
    geo = _make_geo(B, H, W)
    Hp, Wp, Mp, Mc = geo["Hp"], geo["Wp"], geo["Mp"], geo["Mc"]

    Cz = params["u_w2"].shape[0]
    hidden = params["u_w1"].shape[0]
    Czp = _round_up(Cz, 8)                      # pad tiny output heads to full sublanes

    # shared per-column helper rows: interior mask, per-batch one-hot, mix scales
    ii, jj = jnp.arange(Hp), jnp.arange(Wp)
    mimg = (((ii >= 1) & (ii <= H))[:, None] &
            ((jj >= 1) & (jj <= W))[None, :]).astype(jnp.float32).reshape(Hp * Wp)
    mask_c = _pad_cols(jnp.tile(mimg, B).reshape(1, Mp), Mc)                     # [1, Mc]
    onehot_c = _pad_cols(jnp.kron(jnp.eye(B, dtype=jnp.float32),
                                  mimg.reshape(1, -1)), Mc)                      # [B, Mc]

    ac = sched["alphas_cumprod"][t]                                              # [B]
    s1_c = _pad_cols(jnp.repeat(jnp.sqrt(ac), Hp * Wp).reshape(1, Mp), Mc)
    s2_c = _pad_cols(jnp.repeat(jnp.sqrt(1.0 - ac), Hp * Wp).reshape(1, Mp), Mc)

    # encoder input: NCHW -> channels-first padded-flat, cast to bf16 once up front
    x_cf = jnp.transpose(x_nchw, (1, 0, 2, 3)).astype(jnp.float32)
    x_flat = _to_padded_flat(x_cf, Cin).astype(jnp.bfloat16)                     # [Cin, Mp]

    # noise = randn_like(z); zero at pad columns / padded channel rows
    noise = jax.random.normal(noise_key, (Cz, B, H, W), jnp.float32)
    noise_c = _pad_cols(_to_padded_flat(noise, Czp), Mc)                         # [Czp, Mc]

    # --- encoder conv + ReLU with the DDPM noise mix fused into the epilogue ---
    # (torch.no_grad only affects gradients; forward values identical)
    enc_w, enc_b = _prep_conv_w(params["enc_w"], params["enc_b"], Cin, Czp)
    z_noisy = conv3x3_enc_mix(x_flat, enc_w, enc_b, mask_c, s1_c, s2_c, noise_c, geo)

    # --- tiny time-embedding MLP: left to XLA (a Pallas launch would be pure overhead) ---
    temb = sinusoidal_embedding(t, params["t_w1"].shape[0])
    temb = jax.nn.silu(temb @ params["t_w1"] + params["t_b1"])
    temb = temb @ params["t_w2"] + params["t_b2"]                                # [B, hidden]
    temb_t = temb.T.astype(jnp.float32)                                          # [hidden, B]

    # --- unet conv1 + per-batch time-embedding add + ReLU (bf16 intermediate) ---
    u1_w, u1_b = _prep_conv_w(params["u_w1"], params["u_b1"], Czp, hidden)
    h = conv3x3_temb_relu(z_noisy[:, :Mp], u1_w, u1_b, mask_c, temb_t, onehot_c, geo)

    # --- unet conv2 with fused, de-serialized MSE against the noise target ---
    u2_w, u2_b = _prep_conv_w(params["u_w2"], params["u_b2"], hidden, Czp)
    pred_pf, loss = conv3x3_mse(h[:, :Mp], u2_w, u2_b, mask_c, noise_c, geo,
                                count=Cz * B * H * W)

    # extract interior + real channels, back to NCHW like the PyTorch module
    pred = pred_pf[:, :Mp].reshape(Czp, B, Hp, Wp)[:Cz, :, 1:H + 1, 1:W + 1]
    noise_pred = jnp.transpose(pred, (1, 0, 2, 3))
    return noise_pred, loss

# TODO(synk): sample() (iterative reverse diffusion + decoder) is not part of forward()
# and is not implemented here.


if __name__ == "__main__":
    key = jax.random.PRNGKey(0)
    k_param, k_x, k_noise = jax.random.split(key, 3)

    B, Cin, H, W = 2, 3, 16, 16
    x = jax.random.normal(k_x, (B, Cin, H, W), jnp.float32)      # NCHW, like PyTorch
    t = jnp.array([10, 500], dtype=jnp.int32)                    # per-sample timestep

    params = init_params(k_param, cin=Cin, cz=4, hidden=32, temb_dim=32)
    sched = make_scheduler(1000)

    fwd = jax.jit(ldm_forward)
    noise_pred, noise_loss = fwd(params, sched, x, t, k_noise)
    jax.block_until_ready((noise_pred, noise_loss))

    assert noise_pred.shape == (B, 4, H, W)
    assert noise_loss.shape == ()
    assert bool(jnp.isfinite(noise_loss))
    print("KERNEL_OK")
</pallas_src>

<mosaic_0001>
module attributes {stable_mosaic.version = 11 : i64} {
  func.func @_conv_mix_kernel(%arg0: i32, %arg1: memref<9x8x3xbf16, #tpu.memory_space<vmem>>, %arg2: memref<8x1xf32, #tpu.memory_space<vmem>>, %arg3: memref<1x3x686xbf16, #tpu.memory_space<vmem>>, %arg4: memref<1x648xf32, #tpu.memory_space<vmem>>, %arg5: memref<1x648xf32, #tpu.memory_space<vmem>>, %arg6: memref<1x648xf32, #tpu.memory_space<vmem>>, %arg7: memref<8x648xf32, #tpu.memory_space<vmem>>, %arg8: memref<8x648xbf16, #tpu.memory_space<vmem>>) attributes {dimension_semantics = [#tpu.dimension_semantics<parallel>], iteration_bounds = array<i64: 1>, scalar_prefetch = 0 : i64, scratch_operands = 0 : i64, tpu.core_type = #tpu.core_type<tc>, window_params = [{pipeline_mode = #tpu.pipeline_mode<synchronous>, transform_indices = @transform_0, window_bounds = array<i64: 9, 8, 3>}, {pipeline_mode = #tpu.pipeline_mode<synchronous>, transform_indices = @transform_1, window_bounds = array<i64: 8, 1>}, {transform_indices = @transform_2, window_bounds = array<i64: 1, 3, 686>}, {transform_indices = @transform_3, window_bounds = array<i64: 1, 648>}, {transform_indices = @transform_4, window_bounds = array<i64: 1, 648>}, {transform_indices = @transform_5, window_bounds = array<i64: 1, 648>}, {transform_indices = @transform_6, window_bounds = array<i64: 8, 648>}, {transform_indices = @transform_7, window_bounds = array<i64: 8, 648>}]} {
    %c0 = arith.constant 0 : index
    %c0_0 = arith.constant 0 : index
    %c0_1 = arith.constant 0 : index
    %0 = vector.load %arg1[%c0, %c0_0, %c0_1] : memref<9x8x3xbf16, #tpu.memory_space<vmem>>, vector<1x8x3xbf16>
    %1 = vector.shape_cast %0 : vector<1x8x3xbf16> to vector<8x3xbf16>
    %c0_2 = arith.constant 0 : index
    %c0_3 = arith.constant 0 : index
    %c0_4 = arith.constant 0 : index
    %2 = vector.load %arg3[%c0_2, %c0_3, %c0_4] : memref<1x3x686xbf16, #tpu.memory_space<vmem>>, vector<1x3x648xbf16>
    %3 = vector.shape_cast %2 : vector<1x3x648xbf16> to vector<3x648xbf16>
    %cst = arith.constant dense<0.000000e+00> : vector<8x648xf32>
    %4 = tpu.matmul %1, %3, %cst {dimension_numbers = #tpu.dot_dimension_numbers<[1], [0], [0], [1], [0, 0, 1, 1], [], []>} : vector<8x3xbf16>, vector<3x648xbf16>, vector<8x648xf32> -> vector<8x648xf32>
    %c1 = arith.constant 1 : index
    %c0_5 = arith.constant 0 : index
    %c0_6 = arith.constant 0 : index
    %5 = vector.load %arg1[%c1, %c0_5, %c0_6] : memref<9x8x3xbf16, #tpu.memory_space<vmem>>, vector<1x8x3xbf16>
    %6 = vector.shape_cast %5 : vector<1x8x3xbf16> to vector<8x3xbf16>
    %c0_7 = arith.constant 0 : index
    %c0_8 = arith.constant 0 : index
    %c1_9 = arith.constant 1 : index
    %7 = vector.load %arg3[%c0_7, %c0_8, %c1_9] : memref<1x3x686xbf16, #tpu.memory_space<vmem>>, vector<1x3x648xbf16>
    %8 = vector.shape_cast %7 : vector<1x3x648xbf16> to vector<3x648xbf16>
    %cst_10 = arith.constant dense<0.000000e+00> : vector<8x648xf32>
    %9 = tpu.matmul %6, %8, %cst_10 {dimension_numbers = #tpu.dot_dimension_numbers<[1], [0], [0], [1], [0, 0, 1, 1], [], []>} : vector<8x3xbf16>, vector<3x648xbf16>, vector<8x648xf32> -> vector<8x648xf32>
    %10 = arith.addf %4, %9 : vector<8x648xf32>
    %c2 = arith.constant 2 : index
    %c0_11 = arith.constant 0 : index
    %c0_12 = arith.constant 0 : index
    %11 = vector.load %arg1[%c2, %c0_11, %c0_12] : memref<9x8x3xbf16, #tpu.memory_space<vmem>>, vector<1x8x3xbf16>
    %12 = vector.shape_cast %11 : vector<1x8x3xbf16> to vector<8x3xbf16>
    %c0_13 = arith.constant 0 : index
    %c0_14 = arith.constant 0 : index
    %c2_15 = arith.constant 2 : index
    %13 = vector.load %arg3[%c0_13, %c0_14, %c2_15] : memref<1x3x686xbf16, #tpu.memory_space<vmem>>, vector<1x3x648xbf16>
    %14 = vector.shape_cast %13 : vector<1x3x648xbf16> to vector<3x648xbf16>
    %cst_16 = arith.constant dense<0.000000e+00> : vector<8x648xf32>
    %15 = tpu.matmul %12, %14, %cst_16 {dimension_numbers = #tpu.dot_dimension_numbers<[1], [0], [0], [1], [0, 0, 1, 1], [], []>} : vector<8x3xbf16>, vector<3x648xbf16>, vector<8x648xf32> -> vector<8x648xf32>
    %16 = arith.addf %10, %15 : vector<8x648xf32>
    %c3 = arith.constant 3 : index
    %c0_17 = arith.constant 0 : index
    %c0_18 = arith.constant 0 : index
    %17 = vector.load %arg1[%c3, %c0_17, %c0_18] : memref<9x8x3xbf16, #tpu.memory_space<vmem>>, vector<1x8x3xbf16>
    %18 = vector.shape_cast %17 : vector<1x8x3xbf16> to vector<8x3xbf16>
    %c0_19 = arith.constant 0 : index
    %c0_20 = arith.constant 0 : index
    %c18 = arith.constant 18 : index
    %19 = vector.load %arg3[%c0_19, %c0_20, %c18] : memref<1x3x686xbf16, #tpu.memory_space<vmem>>, vector<1x3x648xbf16>
    %20 = vector.shape_cast %19 : vector<1x3x648xbf16> to vector<3x648xbf16>
    %cst_21 = arith.constant dense<0.000000e+00> : vector<8x648xf32>
    %21 = tpu.matmul %18, %20, %cst_21 {dimension_numbers = #tpu.dot_dimension_numbers<[1], [0], [0], [1], [0, 0, 1, 1], [], []>} : vector<8x3xbf16>, vector<3x648xbf16>, vector<8x648xf32> -> vector<8x648xf32>
    %22 = arith.addf %16, %21 : vector<8x648xf32>
    %c4 = arith.constant 4 : index
    %c0_22 = arith.constant 0 : index
    %c0_23 = arith.constant 0 : index
    %23 = vector.load %arg1[%c4, %c0_22, %c0_23] : memref<9x8x3xbf16, #tpu.memory_space<vmem>>, vector<1x8x3xbf16>
    %24 = vector.shape_cast %23 : vector<1x8x3xbf16> to vector<8x3xbf16>
    %c0_24 = arith.constant 0 : index
    %c0_25 = arith.constant 0 : index
    %c19 = arith.constant 19 : index
    %25 = vector.load %arg3[%c0_24, %c0_25, %c19] : memref<1x3x686xbf16, #tpu.memory_space<vmem>>, vector<1x3x648xbf16>
    %26 = vector.shape_cast %25 : vector<1x3x648xbf16> to vector<3x648xbf16>
    %cst_26 = arith.constant dense<0.000000e+00> : vector<8x648xf32>
    %27 = tpu.matmul %24, %26, %cst_26 {dimension_numbers = #tpu.dot_dimension_numbers<[1], [0], [0], [1], [0, 0, 1, 1], [], []>} : vector<8x3xbf16>, vector<3x648xbf16>, vector<8x648xf32> -> vector<8x648xf32>
    %28 = arith.addf %22, %27 : vector<8x648xf32>
    %c5 = arith.constant 5 : index
    %c0_27 = arith.constant 0 : index
    %c0_28 = arith.constant 0 : index
    %29 = vector.load %arg1[%c5, %c0_27, %c0_28] : memref<9x8x3xbf16, #tpu.memory_space<vmem>>, vector<1x8x3xbf16>
    %30 = vector.shape_cast %29 : vector<1x8x3xbf16> to vector<8x3xbf16>
    %c0_29 = arith.constant 0 : index
    %c0_30 = arith.constant 0 : index
    %c20 = arith.constant 20 : index
    %31 = vector.load %arg3[%c0_29, %c0_30, %c20] : memref<1x3x686xbf16, #tpu.memory_space<vmem>>, vector<1x3x648xbf16>
    %32 = vector.shape_cast %31 : vector<1x3x648xbf16> to vector<3x648xbf16>
    %cst_31 = arith.constant dense<0.000000e+00> : vector<8x648xf32>
    %33 = tpu.matmul %30, %32, %cst_31 {dimension_numbers = #tpu.dot_dimension_numbers<[1], [0], [0], [1], [0, 0, 1, 1], [], []>} : vector<8x3xbf16>, vector<3x648xbf16>, vector<8x648xf32> -> vector<8x648xf32>
    %34 = arith.addf %28, %33 : vector<8x648xf32>
    %c6 = arith.constant 6 : index
    %c0_32 = arith.constant 0 : index
    %c0_33 = arith.constant 0 : index
    %35 = vector.load %arg1[%c6, %c0_32, %c0_33] : memref<9x8x3xbf16, #tpu.memory_space<vmem>>, vector<1x8x3xbf16>
    %36 = vector.shape_cast %35 : vector<1x8x3xbf16> to vector<8x3xbf16>
    %c0_34 = arith.constant 0 : index
    %c0_35 = arith.constant 0 : index
    %c36 = arith.constant 36 : index
    %37 = vector.load %arg3[%c0_34, %c0_35, %c36] : memref<1x3x686xbf16, #tpu.memory_space<vmem>>, vector<1x3x648xbf16>
    %38 = vector.shape_cast %37 : vector<1x3x648xbf16> to vector<3x648xbf16>
    %cst_36 = arith.constant dense<0.000000e+00> : vector<8x648xf32>
    %39 = tpu.matmul %36, %38, %cst_36 {dimension_numbers = #tpu.dot_dimension_numbers<[1], [0], [0], [1], [0, 0, 1, 1], [], []>} : vector<8x3xbf16>, vector<3x648xbf16>, vector<8x648xf32> -> vector<8x648xf32>
    %40 = arith.addf %34, %39 : vector<8x648xf32>
    %c7 = arith.constant 7 : index
    %c0_37 = arith.constant 0 : index
    %c0_38 = arith.constant 0 : index
    %41 = vector.load %arg1[%c7, %c0_37, %c0_38] : memref<9x8x3xbf16, #tpu.memory_space<vmem>>, vector<1x8x3xbf16>
    %42 = vector.shape_cast %41 : vector<1x8x3xbf16> to vector<8x3xbf16>
    %c0_39 = arith.constant 0 : index
    %c0_40 = arith.constant 0 : index
    %c37 = arith.constant 37 : index
    %43 = vector.load %arg3[%c0_39, %c0_40, %c37] : memref<1x3x686xbf16, #tpu.memory_space<vmem>>, vector<1x3x648xbf16>
    %44 = vector.shape_cast %43 : vector<1x3x648xbf16> to vector<3x648xbf16>
    %cst_41 = arith.constant dense<0.000000e+00> : vector<8x648xf32>
    %45 = tpu.matmul %42, %44, %cst_41 {dimension_numbers = #tpu.dot_dimension_numbers<[1], [0], [0], [1], [0, 0, 1, 1], [], []>} : vector<8x3xbf16>, vector<3x648xbf16>, vector<8x648xf32> -> vector<8x648xf32>
    %46 = arith.addf %40, %45 : vector<8x648xf32>
    %c8 = arith.constant 8 : index
    %c0_42 = arith.constant 0 : index
    %c0_43 = arith.constant 0 : index
    %47 = vector.load %arg1[%c8, %c0_42, %c0_43] : memref<9x8x3xbf16, #tpu.memory_space<vmem>>, vector<1x8x3xbf16>
    %48 = vector.shape_cast %47 : vector<1x8x3xbf16> to vector<8x3xbf16>
    %c0_44 = arith.constant 0 : index
    %c0_45 = arith.constant 0 : index
    %c38 = arith.constant 38 : index
    %49 = vector.load %arg3[%c0_44, %c0_45, %c38] : memref<1x3x686xbf16, #tpu.memory_space<vmem>>, vector<1x3x648xbf16>
    %50 = vector.shape_cast %49 : vector<1x3x648xbf16> to vector<3x648xbf16>
    %cst_46 = arith.constant dense<0.000000e+00> : vector<8x648xf32>
    %51 = tpu.matmul %48, %50, %cst_46 {dimension_numbers = #tpu.dot_dimension_numbers<[1], [0], [0], [1], [0, 0, 1, 1], [], []>} : vector<8x3xbf16>, vector<3x648xbf16>, vector<8x648xf32> -> vector<8x648xf32>
    %52 = arith.addf %46, %51 : vector<8x648xf32>
    %c0_47 = arith.constant 0 : index
    %c0_48 = arith.constant 0 : index
    %53 = vector.load %arg2[%c0_47, %c0_48] : memref<8x1xf32, #tpu.memory_space<vmem>>, vector<8x1xf32>
    %54 = vector.broadcast %53 : vector<8x1xf32> to vector<8x648xf32>
    %55 = arith.addf %52, %54 : vector<8x648xf32>
    %cst_49 = arith.constant 0.000000e+00 : f32
    %56 = vector.broadcast %cst_49 : f32 to vector<8x648xf32>
    %57 = arith.maximumf %55, %56 : vector<8x648xf32>
    %c0_50 = arith.constant 0 : index
    %c0_51 = arith.constant 0 : index
    %58 = vector.load %arg4[%c0_50, %c0_51] : memref<1x648xf32, #tpu.memory_space<vmem>>, vector<1x648xf32>
    %c0_52 = arith.constant 0 : index
    %c0_53 = arith.constant 0 : index
    %59 = vector.load %arg5[%c0_52, %c0_53] : memref<1x648xf32, #tpu.memory_space<vmem>>, vector<1x648xf32>
    %60 = vector.broadcast %59 : vector<1x648xf32> to vector<8x648xf32>
    %61 = arith.mulf %60, %57 : vector<8x648xf32>
    %62 = vector.broadcast %58 : vector<1x648xf32> to vector<8x648xf32>
    %63 = arith.mulf %62, %61 : vector<8x648xf32>
    %c0_54 = arith.constant 0 : index
    %c0_55 = arith.constant 0 : index
    %64 = vector.load %arg6[%c0_54, %c0_55] : memref<1x648xf32, #tpu.memory_space<vmem>>, vector<1x648xf32>
    %c0_56 = arith.constant 0 : index
    %c0_57 = arith.constant 0 : index
    %65 = vector.load %arg7[%c0_56, %c0_57] : memref<8x648xf32, #tpu.memory_space<vmem>>, vector<8x648xf32>
    %66 = vector.broadcast %64 : vector<1x648xf32> to vector<8x648xf32>
    %67 = arith.mulf %66, %65 : vector<8x648xf32>
    %68 = arith.addf %63, %67 : vector<8x648xf32>
    %69 = arith.truncf %68 : vector<8x648xf32> to vector<8x648xbf16>
    %c0_58 = arith.constant 0 : index
    %c0_59 = arith.constant 0 : index
    %70 = vector.load %arg8[%c0_58, %c0_59] : memref<8x648xbf16, #tpu.memory_space<vmem>>, vector<8x648xbf16>
    tpu.vector_store %arg8[%c0_58, %c0_59], %69 {strides = array<i32>} : memref<8x648xbf16, #tpu.memory_space<vmem>>, vector<8x648xbf16>,
    return
  }
  func.func @transform_0(%arg0: i32) -> (i32, i32, i32) {
    %c0_i32 = arith.constant 0 : i32
    %c0_i32_0 = arith.constant 0 : i32
    %c0_i32_1 = arith.constant 0 : i32
    %c0_i32_2 = arith.constant 0 : i32
    return %c0_i32, %c0_i32_0, %c0_i32_1 : i32, i32, i32
  }
  func.func @transform_1(%arg0: i32) -> (i32, i32) {
    %c0_i32 = arith.constant 0 : i32
    %c0_i32_0 = arith.constant 0 : i32
    %c0_i32_1 = arith.constant 0 : i32
    return %c0_i32, %c0_i32_0 : i32, i32
  }
  func.func @transform_2(%arg0: i32) -> (i32, i32, i32) {
    %c0_i32 = arith.constant 0 : i32
    %c0_i32_0 = arith.constant 0 : i32
    %c0_i32_1 = arith.constant 0 : i32
    return %arg0, %c0_i32, %c0_i32_0 : i32, i32, i32
  }
  func.func @transform_3(%arg0: i32) -> (i32, i32) {
    %c0_i32 = arith.constant 0 : i32
    %c0_i32_0 = arith.constant 0 : i32
    return %c0_i32, %arg0 : i32, i32
  }
  func.func @transform_4(%arg0: i32) -> (i32, i32) {
    %c0_i32 = arith.constant 0 : i32
    %c0_i32_0 = arith.constant 0 : i32
    return %c0_i32, %arg0 : i32, i32
  }
  func.func @transform_5(%arg0: i32) -> (i32, i32) {
    %c0_i32 = arith.constant 0 : i32
    %c0_i32_0 = arith.constant 0 : i32
    return %c0_i32, %arg0 : i32, i32
  }
  func.func @transform_6(%arg0: i32) -> (i32, i32) {
    %c0_i32 = arith.constant 0 : i32
    %c0_i32_0 = arith.constant 0 : i32
    return %c0_i32, %arg0 : i32, i32
  }
  func.func @transform_7(%arg0: i32) -> (i32, i32) {
    %c0_i32 = arith.constant 0 : i32
    %c0_i32_0 = arith.constant 0 : i32
    return %c0_i32, %arg0 : i32, i32
  }
}

module attributes {stable_mosaic.version = 11 : i64} {
  func.func @_conv_temb_kernel(%arg0: i32, %arg1: memref<9x32x8xbf16, #tpu.memory_space<vmem>>, %arg2: memref<32x1xf32, #tpu.memory_space<vmem>>, %arg3: memref<1x8x686xbf16, #tpu.memory_space<vmem>>, %arg4: memref<1x648xf32, #tpu.memory_space<vmem>>, %arg5: memref<32x2xf32, #tpu.memory_space<vmem>>, %arg6: memref<2x648xf32, #tpu.memory_space<vmem>>, %arg7: memref<32x648xbf16, #tpu.memory_space<vmem>>) attributes {dimension_semantics = [#tpu.dimension_semantics<parallel>], iteration_bounds = array<i64: 1>, scalar_prefetch = 0 : i64, scratch_operands = 0 : i64, tpu.core_type = #tpu.core_type<tc>, window_params = [{pipeline_mode = #tpu.pipeline_mode<synchronous>, transform_indices = @transform_0, window_bounds = array<i64: 9, 32, 8>}, {pipeline_mode = #tpu.pipeline_mode<synchronous>, transform_indices = @transform_1, window_bounds = array<i64: 32, 1>}, {transform_indices = @transform_2, window_bounds = array<i64: 1, 8, 686>}, {transform_indices = @transform_3, window_bounds = array<i64: 1, 648>}, {pipeline_mode = #tpu.pipeline_mode<synchronous>, transform_indices = @transform_4, window_bounds = array<i64: 32, 2>}, {transform_indices = @transform_5, window_bounds = array<i64: 2, 648>}, {transform_indices = @transform_6, window_bounds = array<i64: 32, 648>}]} {
    %c0 = arith.constant 0 : index
    %c0_0 = arith.constant 0 : index
    %c0_1 = arith.constant 0 : index
    %0 = vector.load %arg1[%c0, %c0_0, %c0_1] : memref<9x32x8xbf16, #tpu.memory_space<vmem>>, vector<1x32x8xbf16>
    %1 = vector.shape_cast %0 : vector<1x32x8xbf16> to vector<32x8xbf16>
    %c0_2 = arith.constant 0 : index
    %c0_3 = arith.constant 0 : index
    %c0_4 = arith.constant 0 : index
    %2 = vector.load %arg3[%c0_2, %c0_3, %c0_4] : memref<1x8x686xbf16, #tpu.memory_space<vmem>>, vector<1x8x648xbf16>
    %3 = vector.shape_cast %2 : vector<1x8x648xbf16> to vector<8x648xbf16>
    %cst = arith.constant dense<0.000000e+00> : vector<32x648xf32>
    %4 = tpu.matmul %1, %3, %cst {dimension_numbers = #tpu.dot_dimension_numbers<[1], [0], [0], [1], [0, 0, 1, 1], [], []>} : vector<32x8xbf16>, vector<8x648xbf16>, vector<32x648xf32> -> vector<32x648xf32>
    %c1 = arith.constant 1 : index
    %c0_5 = arith.constant 0 : index
    %c0_6 = arith.constant 0 : index
    %5 = vector.load %arg1[%c1, %c0_5, %c0_6] : memref<9x32x8xbf16, #tpu.memory_space<vmem>>, vector<1x32x8xbf16>
    %6 = vector.shape_cast %5 : vector<1x32x8xbf16> to vector<32x8xbf16>
    %c0_7 = arith.constant 0 : index
    %c0_8 = arith.constant 0 : index
    %c1_9 = arith.constant 1 : index
    %7 = vector.load %arg3[%c0_7, %c0_8, %c1_9] : memref<1x8x686xbf16, #tpu.memory_space<vmem>>, vector<1x8x648xbf16>
    %8 = vector.shape_cast %7 : vector<1x8x648xbf16> to vector<8x648xbf16>
    %cst_10 = arith.constant dense<0.000000e+00> : vector<32x648xf32>
    %9 = tpu.matmul %6, %8, %cst_10 {dimension_numbers = #tpu.dot_dimension_numbers<[1], [0], [0], [1], [0, 0, 1, 1], [], []>} : vector<32x8xbf16>, vector<8x648xbf16>, vector<32x648xf32> -> vector<32x648xf32>
    %10 = arith.addf %4, %9 : vector<32x648xf32>
    %c2 = arith.constant 2 : index
    %c0_11 = arith.constant 0 : index
    %c0_12 = arith.constant 0 : index
    %11 = vector.load %arg1[%c2, %c0_11, %c0_12] : memref<9x32x8xbf16, #tpu.memory_space<vmem>>, vector<1x32x8xbf16>
    %12 = vector.shape_cast %11 : vector<1x32x8xbf16> to vector<32x8xbf16>
    %c0_13 = arith.constant 0 : index
    %c0_14 = arith.constant 0 : index
    %c2_15 = arith.constant 2 : index
    %13 = vector.load %arg3[%c0_13, %c0_14, %c2_15] : memref<1x8x686xbf16, #tpu.memory_space<vmem>>, vector<1x8x648xbf16>
    %14 = vector.shape_cast %13 : vector<1x8x648xbf16> to vector<8x648xbf16>
    %cst_16 = arith.constant dense<0.000000e+00> : vector<32x648xf32>
    %15 = tpu.matmul %12, %14, %cst_16 {dimension_numbers = #tpu.dot_dimension_numbers<[1], [0], [0], [1], [0, 0, 1, 1], [], []>} : vector<32x8xbf16>, vector<8x648xbf16>, vector<32x648xf32> -> vector<32x648xf32>
    %16 = arith.addf %10, %15 : vector<32x648xf32>
    %c3 = arith.constant 3 : index
    %c0_17 = arith.constant 0 : index
    %c0_18 = arith.constant 0 : index
    %17 = vector.load %arg1[%c3, %c0_17, %c0_18] : memref<9x32x8xbf16, #tpu.memory_space<vmem>>, vector<1x32x8xbf16>
    %18 = vector.shape_cast %17 : vector<1x32x8xbf16> to vector<32x8xbf16>
    %c0_19 = arith.constant 0 : index
    %c0_20 = arith.constant 0 : index
    %c18 = arith.constant 18 : index
    %19 = vector.load %arg3[%c0_19, %c0_20, %c18] : memref<1x8x686xbf16, #tpu.memory_space<vmem>>, vector<1x8x648xbf16>
    %20 = vector.shape_cast %19 : vector<1x8x648xbf16> to vector<8x648xbf16>
    %cst_21 = arith.constant dense<0.000000e+00> : vector<32x648xf32>
    %21 = tpu.matmul %18, %20, %cst_21 {dimension_numbers = #tpu.dot_dimension_numbers<[1], [0], [0], [1], [0, 0, 1, 1], [], []>} : vector<32x8xbf16>, vector<8x648xbf16>, vector<32x648xf32> -> vector<32x648xf32>
    %22 = arith.addf %16, %21 : vector<32x648xf32>
    %c4 = arith.constant 4 : index
    %c0_22 = arith.constant 0 : index
    %c0_23 = arith.constant 0 : index
    %23 = vector.load %arg1[%c4, %c0_22, %c0_23] : memref<9x32x8xbf16, #tpu.memory_space<vmem>>, vector<1x32x8xbf16>
    %24 = vector.shape_cast %23 : vector<1x32x8xbf16> to vector<32x8xbf16>
    %c0_24 = arith.constant 0 : index
    %c0_25 = arith.constant 0 : index
    %c19 = arith.constant 19 : index
    %25 = vector.load %arg3[%c0_24, %c0_25, %c19] : memref<1x8x686xbf16, #tpu.memory_space<vmem>>, vector<1x8x648xbf16>
    %26 = vector.shape_cast %25 : vector<1x8x648xbf16> to vector<8x648xbf16>
    %cst_26 = arith.constant dense<0.000000e+00> : vector<32x648xf32>
    %27 = tpu.matmul %24, %26, %cst_26 {dimension_numbers = #tpu.dot_dimension_numbers<[1], [0], [0], [1], [0, 0, 1, 1], [], []>} : vector<32x8xbf16>, vector<8x648xbf16>, vector<32x648xf32> -> vector<32x648xf32>
    %28 = arith.addf %22, %27 : vector<32x648xf32>
    %c5 = arith.constant 5 : index
    %c0_27 = arith.constant 0 : index
    %c0_28 = arith.constant 0 : index
    %29 = vector.load %arg1[%c5, %c0_27, %c0_28] : memref<9x32x8xbf16, #tpu.memory_space<vmem>>, vector<1x32x8xbf16>
    %30 = vector.shape_cast %29 : vector<1x32x8xbf16> to vector<32x8xbf16>
    %c0_29 = arith.constant 0 : index
    %c0_30 = arith.constant 0 : index
    %c20 = arith.constant 20 : index
    %31 = vector.load %arg3[%c0_29, %c0_30, %c20] : memref<1x8x686xbf16, #tpu.memory_space<vmem>>, vector<1x8x648xbf16>
    %32 = vector.shape_cast %31 : vector<1x8x648xbf16> to vector<8x648xbf16>
    %cst_31 = arith.constant dense<0.000000e+00> : vector<32x648xf32>
    %33 = tpu.matmul %30, %32, %cst_31 {dimension_numbers = #tpu.dot_dimension_numbers<[1], [0], [0], [1], [0, 0, 1, 1], [], []>} : vector<32x8xbf16>, vector<8x648xbf16>, vector<32x648xf32> -> vector<32x648xf32>
    %34 = arith.addf %28, %33 : vector<32x648xf32>
    %c6 = arith.constant 6 : index
    %c0_32 = arith.constant 0 : index
    %c0_33 = arith.constant 0 : index
    %35 = vector.load %arg1[%c6, %c0_32, %c0_33] : memref<9x32x8xbf16, #tpu.memory_space<vmem>>, vector<1x32x8xbf16>
    %36 = vector.shape_cast %35 : vector<1x32x8xbf16> to vector<32x8xbf16>
    %c0_34 = arith.constant 0 : index
    %c0_35 = arith.constant 0 : index
    %c36 = arith.constant 36 : index
    %37 = vector.load %arg3[%c0_34, %c0_35, %c36] : memref<1x8x686xbf16, #tpu.memory_space<vmem>>, vector<1x8x648xbf16>
    %38 = vector.shape_cast %37 : vector<1x8x648xbf16> to vector<8x648xbf16>
    %cst_36 = arith.constant dense<0.000000e+00> : vector<32x648xf32>
    %39 = tpu.matmul %36, %38, %cst_36 {dimension_numbers = #tpu.dot_dimension_numbers<[1], [0], [0], [1], [0, 0, 1, 1], [], []>} : vector<32x8xbf16>, vector<8x648xbf16>, vector<32x648xf32> -> vector<32x648xf32>
    %40 = arith.addf %34, %39 : vector<32x648xf32>
    %c7 = arith.constant 7 : index
    %c0_37 = arith.constant 0 : index
    %c0_38 = arith.constant 0 : index
    %41 = vector.load %arg1[%c7, %c0_37, %c0_38] : memref<9x32x8xbf16, #tpu.memory_space<vmem>>, vector<1x32x8xbf16>
    %42 = vector.shape_cast %41 : vector<1x32x8xbf16> to vector<32x8xbf16>
    %c0_39 = arith.constant 0 : index
    %c0_40 = arith.constant 0 : index
    %c37 = arith.constant 37 : index
    %43 = vector.load %arg3[%c0_39, %c0_40, %c37] : memref<1x8x686xbf16, #tpu.memory_space<vmem>>, vector<1x8x648xbf16>
    %44 = vector.shape_cast %43 : vector<1x8x648xbf16> to vector<8x648xbf16>
    %cst_41 = arith.constant dense<0.000000e+00> : vector<32x648xf32>
    %45 = tpu.matmul %42, %44, %cst_41 {dimension_numbers = #tpu.dot_dimension_numbers<[1], [0], [0], [1], [0, 0, 1, 1], [], []>} : vector<32x8xbf16>, vector<8x648xbf16>, vector<32x648xf32> -> vector<32x648xf32>
    %46 = arith.addf %40, %45 : vector<32x648xf32>
    %c8 = arith.constant 8 : index
    %c0_42 = arith.constant 0 : index
    %c0_43 = arith.constant 0 : index
    %47 = vector.load %arg1[%c8, %c0_42, %c0_43] : memref<9x32x8xbf16, #tpu.memory_space<vmem>>, vector<1x32x8xbf16>
    %48 = vector.shape_cast %47 : vector<1x32x8xbf16> to vector<32x8xbf16>
    %c0_44 = arith.constant 0 : index
    %c0_45 = arith.constant 0 : index
    %c38 = arith.constant 38 : index
    %49 = vector.load %arg3[%c0_44, %c0_45, %c38] : memref<1x8x686xbf16, #tpu.memory_space<vmem>>, vector<1x8x648xbf16>
    %50 = vector.shape_cast %49 : vector<1x8x648xbf16> to vector<8x648xbf16>
    %cst_46 = arith.constant dense<0.000000e+00> : vector<32x648xf32>
    %51 = tpu.matmul %48, %50, %cst_46 {dimension_numbers = #tpu.dot_dimension_numbers<[1], [0], [0], [1], [0, 0, 1, 1], [], []>} : vector<32x8xbf16>, vector<8x648xbf16>, vector<32x648xf32> -> vector<32x648xf32>
    %52 = arith.addf %46, %51 : vector<32x648xf32>
    %c0_47 = arith.constant 0 : index
    %c0_48 = arith.constant 0 : index
    %53 = vector.load %arg2[%c0_47, %c0_48] : memref<32x1xf32, #tpu.memory_space<vmem>>, vector<32x1xf32>
    %54 = vector.broadcast %53 : vector<32x1xf32> to vector<32x648xf32>
    %55 = arith.addf %52, %54 : vector<32x648xf32>
    %c0_49 = arith.constant 0 : index
    %c0_50 = arith.constant 0 : index
    %56 = vector.load %arg5[%c0_49, %c0_50] : memref<32x2xf32, #tpu.memory_space<vmem>>, vector<32x2xf32>
    %c0_51 = arith.constant 0 : index
    %c0_52 = arith.constant 0 : index
    %57 = vector.load %arg6[%c0_51, %c0_52] : memref<2x648xf32, #tpu.memory_space<vmem>>, vector<2x648xf32>
    %cst_53 = arith.constant dense<0.000000e+00> : vector<32x648xf32>
    %58 = tpu.matmul %56, %57, %cst_53 {dimension_numbers = #tpu.dot_dimension_numbers<[1], [0], [0], [1], [0, 0, 1, 1], [], []>} : vector<32x2xf32>, vector<2x648xf32>, vector<32x648xf32> -> vector<32x648xf32>
    %59 = arith.addf %55, %58 : vector<32x648xf32>
    %cst_54 = arith.constant 0.000000e+00 : f32
    %60 = vector.broadcast %cst_54 : f32 to vector<32x648xf32>
    %61 = arith.maximumf %59, %60 : vector<32x648xf32>
    %c0_55 = arith.constant 0 : index
    %c0_56 = arith.constant 0 : index
    %62 = vector.load %arg4[%c0_55, %c0_56] : memref<1x648xf32, #tpu.memory_space<vmem>>, vector<1x648xf32>
    %63 = vector.broadcast %62 : vector<1x648xf32> to vector<32x648xf32>
    %64 = arith.mulf %63, %61 : vector<32x648xf32>
    %65 = arith.truncf %64 : vector<32x648xf32> to vector<32x648xbf16>
    %c0_57 = arith.constant 0 : index
    %c0_58 = arith.constant 0 : index
    %66 = vector.load %arg7[%c0_57, %c0_58] : memref<32x648xbf16, #tpu.memory_space<vmem>>, vector<32x648xbf16>
    tpu.vector_store %arg7[%c0_57, %c0_58], %65 {strides = array<i32>} : memref<32x648xbf16, #tpu.memory_space<vmem>>, vector<32x648xbf16>,
    return
  }
  func.func @transform_0(%arg0: i32) -> (i32, i32, i32) {
    %c0_i32 = arith.constant 0 : i32
    %c0_i32_0 = arith.constant 0 : i32
    %c0_i32_1 = arith.constant 0 : i32
    %c0_i32_2 = arith.constant 0 : i32
    return %c0_i32, %c0_i32_0, %c0_i32_1 : i32, i32, i32
  }
  func.func @transform_1(%arg0: i32) -> (i32, i32) {
    %c0_i32 = arith.constant 0 : i32
    %c0_i32_0 = arith.constant 0 : i32
    %c0_i32_1 = arith.constant 0 : i32
    return %c0_i32, %c0_i32_0 : i32, i32
  }
  func.func @transform_2(%arg0: i32) -> (i32, i32, i32) {
    %c0_i32 = arith.constant 0 : i32
    %c0_i32_0 = arith.constant 0 : i32
    %c0_i32_1 = arith.constant 0 : i32
    return %arg0, %c0_i32, %c0_i32_0 : i32, i32, i32
  }
  func.func @transform_3(%arg0: i32) -> (i32, i32) {
    %c0_i32 = arith.constant 0 : i32
    %c0_i32_0 = arith.constant 0 : i32
    return %c0_i32, %arg0 : i32, i32
  }
  func.func @transform_4(%arg0: i32) -> (i32, i32) {
    %c0_i32 = arith.constant 0 : i32
    %c0_i32_0 = arith.constant 0 : i32
    %c0_i32_1 = arith.constant 0 : i32
    return %c0_i32, %c0_i32_0 : i32, i32
  }
  func.func @transform_5(%arg0: i32) -> (i32, i32) {
    %c0_i32 = arith.constant 0 : i32
    %c0_i32_0 = arith.constant 0 : i32
    return %c0_i32, %arg0 : i32, i32
  }
  func.func @transform_6(%arg0: i32) -> (i32, i32) {
    %c0_i32 = arith.constant 0 : i32
    %c0_i32_0 = arith.constant 0 : i32
    return %c0_i32, %arg0 : i32, i32
  }
}

module attributes {stable_mosaic.version = 11 : i64} {
  func.func @_conv_mse_kernel(%arg0: i32, %arg1: memref<9x8x32xbf16, #tpu.memory_space<vmem>>, %arg2: memref<8x1xf32, #tpu.memory_space<vmem>>, %arg3: memref<1x32x686xbf16, #tpu.memory_space<vmem>>, %arg4: memref<1x648xf32, #tpu.memory_space<vmem>>, %arg5: memref<8x648xf32, #tpu.memory_space<vmem>>, %arg6: memref<8x648xf32, #tpu.memory_space<vmem>>, %arg7: memref<1x128xf32, #tpu.memory_space<vmem>>) attributes {dimension_semantics = [#tpu.dimension_semantics<parallel>], iteration_bounds = array<i64: 1>, scalar_prefetch = 0 : i64, scratch_operands = 0 : i64, tpu.core_type = #tpu.core_type<tc>, window_params = [{pipeline_mode = #tpu.pipeline_mode<synchronous>, transform_indices = @transform_0, window_bounds = array<i64: 9, 8, 32>}, {pipeline_mode = #tpu.pipeline_mode<synchronous>, transform_indices = @transform_1, window_bounds = array<i64: 8, 1>}, {transform_indices = @transform_2, window_bounds = array<i64: 1, 32, 686>}, {transform_indices = @transform_3, window_bounds = array<i64: 1, 648>}, {transform_indices = @transform_4, window_bounds = array<i64: 8, 648>}, {transform_indices = @transform_5, window_bounds = array<i64: 8, 648>}, {transform_indices = @transform_6, window_bounds = array<i64: 1, 128>}]} {
    %c0 = arith.constant 0 : index
    %c0_0 = arith.constant 0 : index
    %c0_1 = arith.constant 0 : index
    %0 = vector.load %arg1[%c0, %c0_0, %c0_1] : memref<9x8x32xbf16, #tpu.memory_space<vmem>>, vector<1x8x32xbf16>
    %1 = vector.shape_cast %0 : vector<1x8x32xbf16> to vector<8x32xbf16>
    %c0_2 = arith.constant 0 : index
    %c0_3 = arith.constant 0 : index
    %c0_4 = arith.constant 0 : index
    %2 = vector.load %arg3[%c0_2, %c0_3, %c0_4] : memref<1x32x686xbf16, #tpu.memory_space<vmem>>, vector<1x32x648xbf16>
    %3 = vector.shape_cast %2 : vector<1x32x648xbf16> to vector<32x648xbf16>
    %cst = arith.constant dense<0.000000e+00> : vector<8x648xf32>
    %4 = tpu.matmul %1, %3, %cst {dimension_numbers = #tpu.dot_dimension_numbers<[1], [0], [0], [1], [0, 0, 1, 1], [], []>} : vector<8x32xbf16>, vector<32x648xbf16>, vector<8x648xf32> -> vector<8x648xf32>
    %c1 = arith.constant 1 : index
    %c0_5 = arith.constant 0 : index
    %c0_6 = arith.constant 0 : index
    %5 = vector.load %arg1[%c1, %c0_5, %c0_6] : memref<9x8x32xbf16, #tpu.memory_space<vmem>>, vector<1x8x32xbf16>
    %6 = vector.shape_cast %5 : vector<1x8x32xbf16> to vector<8x32xbf16>
    %c0_7 = arith.constant 0 : index
    %c0_8 = arith.constant 0 : index
    %c1_9 = arith.constant 1 : index
    %7 = vector.load %arg3[%c0_7, %c0_8, %c1_9] : memref<1x32x686xbf16, #tpu.memory_space<vmem>>, vector<1x32x648xbf16>
    %8 = vector.shape_cast %7 : vector<1x32x648xbf16> to vector<32x648xbf16>
    %cst_10 = arith.constant dense<0.000000e+00> : vector<8x648xf32>
    %9 = tpu.matmul %6, %8, %cst_10 {dimension_numbers = #tpu.dot_dimension_numbers<[1], [0], [0], [1], [0, 0, 1, 1], [], []>} : vector<8x32xbf16>, vector<32x648xbf16>, vector<8x648xf32> -> vector<8x648xf32>
    %10 = arith.addf %4, %9 : vector<8x648xf32>
    %c2 = arith.constant 2 : index
    %c0_11 = arith.constant 0 : index
    %c0_12 = arith.constant 0 : index
    %11 = vector.load %arg1[%c2, %c0_11, %c0_12] : memref<9x8x32xbf16, #tpu.memory_space<vmem>>, vector<1x8x32xbf16>
    %12 = vector.shape_cast %11 : vector<1x8x32xbf16> to vector<8x32xbf16>
    %c0_13 = arith.constant 0 : index
    %c0_14 = arith.constant 0 : index
    %c2_15 = arith.constant 2 : index
    %13 = vector.load %arg3[%c0_13, %c0_14, %c2_15] : memref<1x32x686xbf16, #tpu.memory_space<vmem>>, vector<1x32x648xbf16>
    %14 = vector.shape_cast %13 : vector<1x32x648xbf16> to vector<32x648xbf16>
    %cst_16 = arith.constant dense<0.000000e+00> : vector<8x648xf32>
    %15 = tpu.matmul %12, %14, %cst_16 {dimension_numbers = #tpu.dot_dimension_numbers<[1], [0], [0], [1], [0, 0, 1, 1], [], []>} : vector<8x32xbf16>, vector<32x648xbf16>, vector<8x648xf32> -> vector<8x648xf32>
    %16 = arith.addf %10, %15 : vector<8x648xf32>
    %c3 = arith.constant 3 : index
    %c0_17 = arith.constant 0 : index
    %c0_18 = arith.constant 0 : index
    %17 = vector.load %arg1[%c3, %c0_17, %c0_18] : memref<9x8x32xbf16, #tpu.memory_space<vmem>>, vector<1x8x32xbf16>
    %18 = vector.shape_cast %17 : vector<1x8x32xbf16> to vector<8x32xbf16>
    %c0_19 = arith.constant 0 : index
    %c0_20 = arith.constant 0 : index
    %c18 = arith.constant 18 : index
    %19 = vector.load %arg3[%c0_19, %c0_20, %c18] : memref<1x32x686xbf16, #tpu.memory_space<vmem>>, vector<1x32x648xbf16>
    %20 = vector.shape_cast %19 : vector<1x32x648xbf16> to vector<32x648xbf16>
    %cst_21 = arith.constant dense<0.000000e+00> : vector<8x648xf32>
    %21 = tpu.matmul %18, %20, %cst_21 {dimension_numbers = #tpu.dot_dimension_numbers<[1], [0], [0], [1], [0, 0, 1, 1], [], []>} : vector<8x32xbf16>, vector<32x648xbf16>, vector<8x648xf32> -> vector<8x648xf32>
    %22 = arith.addf %16, %21 : vector<8x648xf32>
    %c4 = arith.constant 4 : index
    %c0_22 = arith.constant 0 : index
    %c0_23 = arith.constant 0 : index
    %23 = vector.load %arg1[%c4, %c0_22, %c0_23] : memref<9x8x32xbf16, #tpu.memory_space<vmem>>, vector<1x8x32xbf16>
    %24 = vector.shape_cast %23 : vector<1x8x32xbf16> to vector<8x32xbf16>
    %c0_24 = arith.constant 0 : index
    %c0_25 = arith.constant 0 : index
    %c19 = arith.constant 19 : index
    %25 = vector.load %arg3[%c0_24, %c0_25, %c19] : memref<1x32x686xbf16, #tpu.memory_space<vmem>>, vector<1x32x648xbf16>
    %26 = vector.shape_cast %25 : vector<1x32x648xbf16> to vector<32x648xbf16>
    %cst_26 = arith.constant dense<0.000000e+00> : vector<8x648xf32>
    %27 = tpu.matmul %24, %26, %cst_26 {dimension_numbers = #tpu.dot_dimension_numbers<[1], [0], [0], [1], [0, 0, 1, 1], [], []>} : vector<8x32xbf16>, vector<32x648xbf16>, vector<8x648xf32> -> vector<8x648xf32>
    %28 = arith.addf %22, %27 : vector<8x648xf32>
    %c5 = arith.constant 5 : index
    %c0_27 = arith.constant 0 : index
    %c0_28 = arith.constant 0 : index
    %29 = vector.load %arg1[%c5, %c0_27, %c0_28] : memref<9x8x32xbf16, #tpu.memory_space<vmem>>, vector<1x8x32xbf16>
    %30 = vector.shape_cast %29 : vector<1x8x32xbf16> to vector<8x32xbf16>
    %c0_29 = arith.constant 0 : index
    %c0_30 = arith.constant 0 : index
    %c20 = arith.constant 20 : index
    %31 = vector.load %arg3[%c0_29, %c0_30, %c20] : memref<1x32x686xbf16, #tpu.memory_space<vmem>>, vector<1x32x648xbf16>
    %32 = vector.shape_cast %31 : vector<1x32x648xbf16> to vector<32x648xbf16>
    %cst_31 = arith.constant dense<0.000000e+00> : vector<8x648xf32>
    %33 = tpu.matmul %30, %32, %cst_31 {dimension_numbers = #tpu.dot_dimension_numbers<[1], [0], [0], [1], [0, 0, 1, 1], [], []>} : vector<8x32xbf16>, vector<32x648xbf16>, vector<8x648xf32> -> vector<8x648xf32>
    %34 = arith.addf %28, %33 : vector<8x648xf32>
    %c6 = arith.constant 6 : index
    %c0_32 = arith.constant 0 : index
    %c0_33 = arith.constant 0 : index
    %35 = vector.load %arg1[%c6, %c0_32, %c0_33] : memref<9x8x32xbf16, #tpu.memory_space<vmem>>, vector<1x8x32xbf16>
    %36 = vector.shape_cast %35 : vector<1x8x32xbf16> to vector<8x32xbf16>
    %c0_34 = arith.constant 0 : index
    %c0_35 = arith.constant 0 : index
    %c36 = arith.constant 36 : index
    %37 = vector.load %arg3[%c0_34, %c0_35, %c36] : memref<1x32x686xbf16, #tpu.memory_space<vmem>>, vector<1x32x648xbf16>
    %38 = vector.shape_cast %37 : vector<1x32x648xbf16> to vector<32x648xbf16>
    %cst_36 = arith.constant dense<0.000000e+00> : vector<8x648xf32>
    %39 = tpu.matmul %36, %38, %cst_36 {dimension_numbers = #tpu.dot_dimension_numbers<[1], [0], [0], [1], [0, 0, 1, 1], [], []>} : vector<8x32xbf16>, vector<32x648xbf16>, vector<8x648xf32> -> vector<8x648xf32>
    %40 = arith.addf %34, %39 : vector<8x648xf32>
    %c7 = arith.constant 7 : index
    %c0_37 = arith.constant 0 : index
    %c0_38 = arith.constant 0 : index
    %41 = vector.load %arg1[%c7, %c0_37, %c0_38] : memref<9x8x32xbf16, #tpu.memory_space<vmem>>, vector<1x8x32xbf16>
    %42 = vector.shape_cast %41 : vector<1x8x32xbf16> to vector<8x32xbf16>
    %c0_39 = arith.constant 0 : index
    %c0_40 = arith.constant 0 : index
    %c37 = arith.constant 37 : index
    %43 = vector.load %arg3[%c0_39, %c0_40, %c37] : memref<1x32x686xbf16, #tpu.memory_space<vmem>>, vector<1x32x648xbf16>
    %44 = vector.shape_cast %43 : vector<1x32x648xbf16> to vector<32x648xbf16>
    %cst_41 = arith.constant dense<0.000000e+00> : vector<8x648xf32>
    %45 = tpu.matmul %42, %44, %cst_41 {dimension_numbers = #tpu.dot_dimension_numbers<[1], [0], [0], [1], [0, 0, 1, 1], [], []>} : vector<8x32xbf16>, vector<32x648xbf16>, vector<8x648xf32> -> vector<8x648xf32>
    %46 = arith.addf %40, %45 : vector<8x648xf32>
    %c8 = arith.constant 8 : index
    %c0_42 = arith.constant 0 : index
    %c0_43 = arith.constant 0 : index
    %47 = vector.load %arg1[%c8, %c0_42, %c0_43] : memref<9x8x32xbf16, #tpu.memory_space<vmem>>, vector<1x8x32xbf16>
    %48 = vector.shape_cast %47 : vector<1x8x32xbf16> to vector<8x32xbf16>
    %c0_44 = arith.constant 0 : index
    %c0_45 = arith.constant 0 : index
    %c38 = arith.constant 38 : index
    %49 = vector.load %arg3[%c0_44, %c0_45, %c38] : memref<1x32x686xbf16, #tpu.memory_space<vmem>>, vector<1x32x648xbf16>
    %50 = vector.shape_cast %49 : vector<1x32x648xbf16> to vector<32x648xbf16>
    %cst_46 = arith.constant dense<0.000000e+00> : vector<8x648xf32>
    %51 = tpu.matmul %48, %50, %cst_46 {dimension_numbers = #tpu.dot_dimension_numbers<[1], [0], [0], [1], [0, 0, 1, 1], [], []>} : vector<8x32xbf16>, vector<32x648xbf16>, vector<8x648xf32> -> vector<8x648xf32>
    %52 = arith.addf %46, %51 : vector<8x648xf32>
    %c0_47 = arith.constant 0 : index
    %c0_48 = arith.constant 0 : index
    %53 = vector.load %arg2[%c0_47, %c0_48] : memref<8x1xf32, #tpu.memory_space<vmem>>, vector<8x1xf32>
    %54 = vector.broadcast %53 : vector<8x1xf32> to vector<8x648xf32>
    %55 = arith.addf %52, %54 : vector<8x648xf32>
    %c0_49 = arith.constant 0 : index
    %c0_50 = arith.constant 0 : index
    %56 = vector.load %arg4[%c0_49, %c0_50] : memref<1x648xf32, #tpu.memory_space<vmem>>, vector<1x648xf32>
    %57 = vector.broadcast %56 : vector<1x648xf32> to vector<8x648xf32>
    %58 = arith.mulf %57, %55 : vector<8x648xf32>
    %c0_51 = arith.constant 0 : index
    %c0_52 = arith.constant 0 : index
    %59 = vector.load %arg6[%c0_51, %c0_52] : memref<8x648xf32, #tpu.memory_space<vmem>>, vector<8x648xf32>
    tpu.vector_store %arg6[%c0_51, %c0_52], %58 {strides = array<i32>} : memref<8x648xf32, #tpu.memory_space<vmem>>, vector<8x648xf32>,
    %c0_53 = arith.constant 0 : index
    %c0_54 = arith.constant 0 : index
    %60 = vector.load %arg5[%c0_53, %c0_54] : memref<8x648xf32, #tpu.memory_space<vmem>>, vector<8x648xf32>
    %61 = arith.subf %58, %60 : vector<8x648xf32>
    %62 = arith.mulf %61, %61 : vector<8x648xf32>
    %63 = vector.shape_cast %62 : vector<8x648xf32> to vector<1x8x648xf32>
    %cst_55 = arith.constant dense<0.000000e+00> : vector<1xf32>
    %64 = vector.multi_reduction <add>, %63, %cst_55 [1, 2] : vector<1x8x648xf32> to vector<1xf32>
    %65 = vector.shape_cast %64 : vector<1xf32> to vector<1x1x1xf32>
    %66 = vector.extract %65[0, 0, 0] : f32 from vector<1x1x1xf32>
    %67 = tpu.iota {dimensions = array<i32: 1>} : vector<1x128xi32>
    %c0_i32 = arith.constant 0 : i32
    %68 = vector.broadcast %c0_i32 : i32 to vector<1x128xi32>
    %69 = arith.cmpi eq, %67, %68 : vector<1x128xi32>
    %cst_56 = arith.constant 0.000000e+00 : f32
    %70 = vector.broadcast %66 : f32 to vector<1x128xf32>
    %71 = vector.broadcast %cst_56 : f32 to vector<1x128xf32>
    %72 = arith.select %69, %70, %71 : vector<1x128xi1>, vector<1x128xf32>
    %c0_57 = arith.constant 0 : index
    %c0_58 = arith.constant 0 : index
    %73 = vector.load %arg7[%c0_57, %c0_58] : memref<1x128xf32, #tpu.memory_space<vmem>>, vector<1x128xf32>
    tpu.vector_store %arg7[%c0_57, %c0_58], %72 {strides = array<i32>} : memref<1x128xf32, #tpu.memory_space<vmem>>, vector<1x128xf32>,
    return
  }
  func.func @transform_0(%arg0: i32) -> (i32, i32, i32) {
    %c0_i32 = arith.constant 0 : i32
    %c0_i32_0 = arith.constant 0 : i32
    %c0_i32_1 = arith.constant 0 : i32
    %c0_i32_2 = arith.constant 0 : i32
    return %c0_i32, %c0_i32_0, %c0_i32_1 : i32, i32, i32
  }
  func.func @transform_1(%arg0: i32) -> (i32, i32) {
    %c0_i32 = arith.constant 0 : i32
    %c0_i32_0 = arith.constant 0 : i32
    %c0_i32_1 = arith.constant 0 : i32
    return %c0_i32, %c0_i32_0 : i32, i32
  }
  func.func @transform_2(%arg0: i32) -> (i32, i32, i32) {
    %c0_i32 = arith.constant 0 : i32
    %c0_i32_0 = arith.constant 0 : i32
    %c0_i32_1 = arith.constant 0 : i32
    return %arg0, %c0_i32, %c0_i32_0 : i32, i32, i32
  }
  func.func @transform_3(%arg0: i32) -> (i32, i32) {
    %c0_i32 = arith.constant 0 : i32
    %c0_i32_0 = arith.constant 0 : i32
    return %c0_i32, %arg0 : i32, i32
  }
  func.func @transform_4(%arg0: i32) -> (i32, i32) {
    %c0_i32 = arith.constant 0 : i32
    %c0_i32_0 = arith.constant 0 : i32
    return %c0_i32, %arg0 : i32, i32
  }
  func.func @transform_5(%arg0: i32) -> (i32, i32) {
    %c0_i32 = arith.constant 0 : i32
    %c0_i32_0 = arith.constant 0 : i32
    return %c0_i32, %arg0 : i32, i32
  }
  func.func @transform_6(%arg0: i32) -> (i32, i32) {
    %c0_i32 = arith.constant 0 : i32
    %c0_i32_0 = arith.constant 0 : i32
    return %c0_i32, %arg0 : i32, i32
  }
}

</mosaic_0001>

<bundles_post_ra>
// kernel: tile.6
= control target key start
LH: loop header
LB: loop body
LE: loop exit
PB: predicated region body
PF: predicated region fallthrough
CT: control target
= control target key end

     0   :  { %s46_s0 = inlined_call_operand.vmem [shape: f32[324], index: 0, kind: input, shape index: {}]   ;;  %s47_s1 = inlined_call_operand.vmem [shape: f32[2,324], index: 1, kind: output, shape index: {}]  }
   0x1   :  { %v4_v0 = vld [vmem:[%s46_s0] ss:$0 sm:$0xff]  ;;  %v14_v1 = vld [vmem:[%s46_s0 + $0x1] ss:$0 sm:$0xff]  ;;  %v16_v2 = vld [vmem:[%s46_s0 + $0x2] ss:$0 sm:$0xff] }
   0x2   :  { %5 = vst [vmem:[%s47_s1] sm:$0x3] %v4_v0  ;;  %15 = vst [vmem:[%s47_s1 + $0x2] sm:$0x3] %v14_v1 }
   0x3   :  { %17 = vst [vmem:[%s47_s1 + $0x4] sm:$0x3] %v16_v2 }

// kernel: tile.7
= control target key start
LH: loop header
LB: loop body
LE: loop exit
PB: predicated region body
PF: predicated region fallthrough
CT: control target
= control target key end

     0   :  { %vm30_vm0 = vcmask 1042434   ;;  %s20_s12 = smov 3  ;;  %vm32_vm1 = vcmask 490496   ;;  %vm17_vm2 = vcmask 556032   ;;  %s45_s13 = smov 3  ;;  %vm36_vm3 = vcmask 64512   ;;  %s140_s0 = inlined_call_operand.vmem [shape: f32[2,324], index: 0, kind: input, shape index: {}]   ;;  %s141_s1 = inlined_call_operand.vmem [shape: f32[1,648], index: 1, kind: output, shape index: {}]  }
   0x1   :  { %v92_v0 = vld [vmem:[%s140_s0 + $0x4] sm:$0x3]  ;;  %v93_v1 = vld [vmem:[%s140_s0 + $0x2] sm:$0x3]  ;;  %v13_v2 = vld [vmem:[%s140_s0] sm:$0x3] }
   0x2   :  { %8 = vst [vmem:[#allocation1 + $0x10] sm:$0x3] %v92_v0  ;;  %12 = vst [vmem:[#allocation1 + $0x8] sm:$0x3] %v93_v1  ;;  %s26_s0 = smov 3  ;;  %s100_s14 = smov 68  }
   0x3   :  { %14 = vst [vmem:[#allocation1] sm:$0x3] %v13_v2  ;;  %vm39_vm4 = vcmask 1048096  }
   0x9   :  { %v24_v3 = vld [vmem:[#allocation1 + $0x11] sm:$0x1]   ;;  %v29_v5 = vld [vmem:[#allocation1 + $0x7] sm:$0x4]   ;;  %v16_v8 = vld [vmem:[#allocation1 + $0x10] sm:$0x1]  }
   0xa   :  { %v27_v4 = vld [vmem:[#allocation1 + $0x11] ss:$-16 sm:%s26_s0]   ;;  %v21_v7 = vld [vmem:[#allocation1] ss:$8 sm:%s20_s12]   ;;  %19 = vst.msk [vmem:[#allocation0 + $0x10] sm:$0x1] %vm17_vm2, %v16_v8  }
   0xb   :  { %v31_v6 = vsel %vm30_vm0, %v29_v5, %v27_v4  ;;  %22 = vst [vmem:[#allocation0] ss:$8 sm:$0x3] %v21_v7   ;;  %v46_v10 = vld [vmem:[#allocation1 + $0x9] ss:$-8 sm:%s45_s13]  }
   0xc   :  { %v33_v9 = vsel %vm32_vm1, %v31_v6, %v24_v3 }
   0xd   :  { %34 = vrot.lane.b32.xlu0 %v33_v9, %s100_s14 }
  0x11   :  { %47 = vrot.lane.b32.xlu0 %v46_v10, %s100_s14 }
  0x12   :  { %v55_v11 = vld [vmem:[#allocation0] sm:$0x1]  ;;  %v59_v12 = vld [vmem:[#allocation0 + $0x8] sm:$0x1] }
  0x13   :  { %57 = vst [vmem:[%s141_s1] sm:$0x1] %v55_v11  ;;  %94 = vst [vmem:[%s141_s1 + $0x1] sm:$0x1] %v59_v12 }
  0x7f   :  { %v35_v13 = vpop.permute.xlu0 %34  }
  0x80   :  { %38 = vst.msk [vmem:[#allocation0 + $0x28] sm:$0x1] %vm36_vm3, %v35_v13  }
  0x81   :  { %41 = vst.msk [vmem:[#allocation0 + $0x20] ss:$-16 sm:$0x3] %vm39_vm4, %v35_v13   ;;  %43 = vst.msk [vmem:[#allocation0 + $0x16] sm:$0x4] %vm39_vm4, %v35_v13  }
  0x83   :  { %v48_v14 = vpop.permute.xlu0 %47  }
  0x84   :  { %51 = vst.msk [vmem:[#allocation0 + $0x20] ss:$-8 sm:$0x3] %vm17_vm2, %v48_v14  }
  0x87   :  { %v82_v16 = vld [vmem:[#allocation0 + $0x28] sm:$0x1] }
  0x88   :  { %v64_v15 = vld [vmem:[#allocation0 + $0x10] sm:$0x1]  ;;  %98 = vst [vmem:[%s141_s1 + $0x5] sm:$0x1] %v82_v16 }
  0x89   :  { %95 = vst [vmem:[%s141_s1 + $0x2] sm:$0x1] %v64_v15 }
  0x8b   :  { %v70_v17 = vld [vmem:[#allocation0 + $0x18] sm:$0x1]  ;;  %v76_v18 = vld [vmem:[#allocation0 + $0x20] sm:$0x1] }
  0x8c   :  { %96 = vst [vmem:[%s141_s1 + $0x3] sm:$0x1] %v70_v17  ;;  %97 = vst [vmem:[%s141_s1 + $0x4] sm:$0x1] %v76_v18 }

// kernel: ldm_forward.3
= control target key start
LH: loop header
LB: loop body
LE: loop exit
PB: predicated region body
PF: predicated region fallthrough
CT: control target
= control target key end

     0   :  { %v38_v0 = vlaneseq  ;;  %v2003_v1 = vmov 1983009808   ;;  %v2004_v10 = vmov 0   ;;  %s2005_s26 = smov 127   ;;  %s2006_s29 = smov 126   ;;  %vm81_vm0 = vcmask 1040384   ;;  %s2382_s2 = inlined_call_operand.vmem [shape: bf16[1,3,686], index: 2, kind: input, shape index: {}]   ;;  %s2383_s1 = inlined_call_operand.vmem [shape: f32[8,1], index: 1, kind: input, shape index: {}]   ;;  %s2384_s0 = inlined_call_operand.vmem [shape: bf16[9,8,3], index: 0, kind: input, shape index: {}]   ;;  %s2385_s5 = inlined_call_operand.vmem [shape: f32[1,648], index: 5, kind: input, shape index: {}]   ;;  %s2386_s4 = inlined_call_operand.vmem [shape: f32[1,648], index: 4, kind: input, shape index: {}]   ;;  %s2387_s3 = inlined_call_operand.vmem [shape: f32[1,648], index: 3, kind: input, shape index: {}]   ;;  %s2388_s6 = inlined_call_operand.vmem [shape: f32[8,648], index: 6, kind: input, shape index: {}]   ;;  %s2389_s7 = inlined_call_operand.vmem [shape: bf16[8,648], index: 7, kind: output, shape index: {}]  }
   0x1   :  { %v36_v2 = vunpack.c.l.s4 %v2003_v1  ;;  %v28_v3 = vld [vmem:[%s2382_s2] sm:$0xff]  ;;  %135 = vmatprep.mubr.bf16.mxu0 %v2004_v10  ;;  %176 = vmatprep.mubr.bf16.mxu1 %v2004_v10  ;;  %v2080_v13 = vld.sshfl [vmem:[%s2382_s2 + $0x8] sm:$0x33 pattern:$0x76325410]  ;;  %s2007_s2 = smov 110  }
   0x2   :  { %v2057_v4 = vshrl.u32 %v38_v0, 7  ;;  %v34_v6 = vcombine.high %v28_v3, %v28_v3  ;;  %2001 = vset.pattern.permute.xlu0 %v2004_v10  ;;  %v2085_v14 = vcombine.high %v2080_v13, %v2080_v13  ;;  %s2008_s30 = smov 109   ;;  %s2009_s8 = smov 108   ;;  %v1763_v15 = vld [vmem:[%s2383_s1] sm:$0xff]  ;;  %vm82_vm1 = vcmask 1041408  }
   0x3   :  { %v37_v5 = vunpack.c.0.s8 %v36_v2  ;;  %s2010_s9 = smov 92   ;;  %s2011_s10 = smov 91   ;;  %v2013_v18 = vmov 65535   ;;  %vm71_vm2 = vcmask 1039360   ;;  %v1941_v32 = vld [vmem:[%s2384_s0 + $0x4] sm:$0xf] }
   0x4   :  { %s2012_s11 = smov 90   ;;  %v83_v19 = vsel %vm81_vm0, 4294967295, %v2013_v18  ;;  %vm77_vm3 = vcmask 23552   ;;  %vm413_vm4 = vcmask 1031168   ;;  %v27_v52 = vld [vmem:[%s2384_s0] sm:$0xf] }
   0x5   :  { %v40_v7 = vsub.s32 %v37_v5, %v2057_v4  ;;  %v2135_v21 = vsel %vm82_vm1, %v83_v19, 0  ;;  %vm612_vm5 = vcmask 900096   ;;  %vm811_vm6 = vcmask 891904  }
   0x6   :  { %v245_v43 = vand.u32 %v2135_v21, %v2085_v14  ;;  %v242_v50 = vand.u32 %v2080_v13, %v2135_v21  ;;  %vm1010_vm7 = vcmask 883712   ;;  %vm1209_vm8 = vcmask 752640  }
   0x7   :  { %v2060_v8 = vrot.slane %v28_v3, %v40_v7  ;;  %v2062_v9 = vrot.slane %v34_v6, %v40_v7  ;;  %v1949_v7 = vld [vmem:[%s2384_s0 + $0x8] sm:$0xf]  ;;  %vm1408_vm9 = vcmask 744448   ;;  %vm1607_vm10 = vcmask 736256  }
   0x8   :  { %vm1933_vm11 = vcmask 1043456   ;;  %vm1934_vm12 = vcmask 64516  }
   0x9   :  { %59 = vrot.lane.b32.xlu1 %v2060_v8, %s2005_s26  ;;  %v2069_v11 = vcombine.high %v2060_v8, %v2060_v8  ;;  %v2073_v12 = vcombine.high %v2062_v9, %v2062_v9  ;;  %v230_v41 = vand.u32 %v2135_v21, %v2060_v8  ;;  %v236_v46 = vand.u32 %v2135_v21, %v2062_v9  ;;  %vm1935_vm13 = vmor %vm1934_vm12, %vm1933_vm11 }
   0xb   :  { %61 = vrot.lane.b32.xlu0 %v2069_v11, %s2005_s26  ;;  %v233_v34 = vand.u32 %v2135_v21, %v2069_v11  ;;  %v239_v39 = vand.u32 %v2135_v21, %v2073_v12 }
   0xd   :  { %65 = vrot.lane.b32.xlu1 %v2073_v12, %s2005_s26 }
   0xf   :  { %63 = vrot.lane.b32.xlu0 %v2062_v9, %s2005_s26 }
  0x11   :  { %69 = vrot.lane.b32.xlu1 %v2085_v14, %s2005_s26 }
  0x13   :  { %67 = vrot.lane.b32.xlu0 %v2080_v13, %s2005_s26 }
  0x15   :  { %405 = vrot.lane.b32.xlu1 %v2062_v9, %s2006_s29 }
  0x17   :  { %403 = vrot.lane.b32.xlu0 %v2069_v11, %s2006_s29 }
  0x19   :  { %407 = vrot.lane.b32.xlu1 %v2073_v12, %s2006_s29 }
  0x1b   :  { %401 = vrot.lane.b32.xlu0 %v2060_v8, %s2006_s29 }
  0x1d   :  { %411 = vrot.lane.b32.xlu1 %v2085_v14, %s2006_s29 }
  0x1f   :  { %409 = vrot.lane.b32.xlu0 %v2080_v13, %s2006_s29 }
  0x21   :  { %604 = vrot.lane.b32.xlu1 %v2062_v9, %s2007_s2 }
  0x23   :  { %602 = vrot.lane.b32.xlu0 %v2069_v11, %s2007_s2 }
  0x25   :  { %608 = vrot.lane.b32.xlu1 %v2080_v13, %s2007_s2 }
  0x27   :  { %606 = vrot.lane.b32.xlu0 %v2073_v12, %s2007_s2 }
  0x29   :  { %801 = vrot.lane.b32.xlu1 %v2069_v11, %s2008_s30 }
  0x2b   :  { %600 = vrot.lane.b32.xlu0 %v2060_v8, %s2007_s2 }
  0x2d   :  { %610 = vrot.lane.b32.xlu1 %v2085_v14, %s2007_s2 }
  0x2f   :  { %803 = vrot.lane.b32.xlu0 %v2062_v9, %s2008_s30 }
  0x31   :  { %805 = vrot.lane.b32.xlu1 %v2073_v12, %s2008_s30 }
  0x33   :  { %799 = vrot.lane.b32.xlu0 %v2060_v8, %s2008_s30 }
  0x35   :  { %809 = vrot.lane.b32.xlu1 %v2085_v14, %s2008_s30 }
  0x37   :  { %807 = vrot.lane.b32.xlu0 %v2080_v13, %s2008_s30 }
  0x39   :  { %1002 = vrot.lane.b32.xlu1 %v2062_v9, %s2009_s8 }
  0x3b   :  { %1000 = vrot.lane.b32.xlu0 %v2069_v11, %s2009_s8 }
  0x3d   :  { %1006 = vrot.lane.b32.xlu1 %v2080_v13, %s2009_s8 }
  0x3f   :  { %1004 = vrot.lane.b32.xlu0 %v2073_v12, %s2009_s8 }
  0x41   :  { %1199 = vrot.lane.b32.xlu1 %v2069_v11, %s2010_s9 }
  0x43   :  { %998 = vrot.lane.b32.xlu0 %v2060_v8, %s2009_s8 }
  0x45   :  { %1008 = vrot.lane.b32.xlu1 %v2085_v14, %s2009_s8 }
  0x47   :  { %1201 = vrot.lane.b32.xlu0 %v2062_v9, %s2010_s9 }
  0x49   :  { %1203 = vrot.lane.b32.xlu1 %v2073_v12, %s2010_s9 }
  0x4b   :  { %1197 = vrot.lane.b32.xlu0 %v2060_v8, %s2010_s9 }
  0x4d   :  { %1207 = vrot.lane.b32.xlu1 %v2085_v14, %s2010_s9 }
  0x4f   :  { %1205 = vrot.lane.b32.xlu0 %v2080_v13, %s2010_s9 }
  0x51   :  { %1400 = vrot.lane.b32.xlu1 %v2062_v9, %s2011_s10 }
  0x53   :  { %1398 = vrot.lane.b32.xlu0 %v2069_v11, %s2011_s10 }
  0x55   :  { %1404 = vrot.lane.b32.xlu1 %v2080_v13, %s2011_s10 }
  0x57   :  { %1402 = vrot.lane.b32.xlu0 %v2073_v12, %s2011_s10 }
  0x59   :  { %1597 = vrot.lane.b32.xlu1 %v2069_v11, %s2012_s11 }
  0x5b   :  { %1396 = vrot.lane.b32.xlu0 %v2060_v8, %s2011_s10 }
  0x5d   :  { %1406 = vrot.lane.b32.xlu1 %v2085_v14, %s2011_s10 }
  0x5f   :  { %1599 = vrot.lane.b32.xlu0 %v2062_v9, %s2012_s11 }
  0x61   :  { %1601 = vrot.lane.b32.xlu1 %v2073_v12, %s2012_s11 }
  0x63   :  { %1595 = vrot.lane.b32.xlu0 %v2060_v8, %s2012_s11 }
  0x65   :  { %1605 = vrot.lane.b32.xlu1 %v2085_v14, %s2012_s11 }
  0x67   :  { %1603 = vrot.lane.b32.xlu0 %v2080_v13, %s2012_s11 }
  0x6b   :  { %1766 = vperm.xlu0 %2001, %v1763_v15  }
  0x7b   :  { %v60_v16 = vpop.permute.xlu1 %59 }
  0x7d   :  { %v62_v17 = vpop.permute.xlu0 %61 }
  0x7e   :  { %v72_v22 = vsel %vm71_vm2, %v60_v16, %v62_v17 }
  0x7f   :  { %v66_v20 = vpop.permute.xlu1 %65  ;;  %v86_v27 = vand.u32 %v2135_v21, %v72_v22 }
  0x81   :  { %v64_v23 = vpop.permute.xlu0 %63 }
  0x82   :  { %v73_v24 = vsel %vm71_vm2, %v62_v17, %v64_v23  ;;  %v74_v29 = vsel %vm71_vm2, %v64_v23, %v66_v20 }
  0x83   :  { %v89_v25 = vand.u32 %v2135_v21, %v73_v24  ;;  %v70_v26 = vpop.permute.xlu1 %69  ;;  %v92_v38 = vand.u32 %v2135_v21, %v74_v29 }
  0x84   :  { %v101_v28 = vand.u32 %v2135_v21, %v70_v26 }
  0x85   :  { %103 = vmatprep.subr.bf16.mxu0 %v89_v25  ;;  %v68_v30 = vpop.permute.xlu0 %67 }
  0x86   :  { %104 = vmatpush1.bf16.msra.mxu0 %v86_v27  ;;  %v76_v31 = vsel %vm71_vm2, %v68_v30, %v70_v26  ;;  %v75_v33 = vsel %vm71_vm2, %v66_v20, %v68_v30  ;;  %v1954_v27 = vld [vmem:[%s2384_s0 + $0xc] sm:$0xf] }
  0x87   :  { %v98_v35 = vand.u32 %v2135_v21, %v76_v31  ;;  %v95_v36 = vand.u32 %v2135_v21, %v75_v33  ;;  %185 = vmatprep.subr.bf16.mxu0 %v101_v28  ;;  %v406_v37 = vpop.permute.xlu1 %405 }
  0x89   :  { %1943 = vmatmul.mubr.msk.bf16.vlgmr.msra.gmra.mrb[0].mxu0 %vm77_vm3, %v1941_v32  ;;  %144 = vmatprep.subr.bf16.mxu1 %v95_v36  ;;  %v404_v40 = vpop.permute.xlu0 %403 }
  0x8a   :  { %145 = vmatpush1.bf16.msra.mxu1 %v92_v38  ;;  %186 = vmatpush1.bf16.msra.mxu0 %v98_v35  ;;  %v415_v44 = vsel %vm413_vm4, %v404_v40, %v406_v37 }
  0x8b   :  { %217 = vmatprep.mubr.bf16.mxu0 %v2004_v10  ;;  %247 = vmatprep.subr.bf16.mxu1 %v233_v34  ;;  %v408_v42 = vpop.permute.xlu1 %407  ;;  %v426_v47 = vand.u32 %v415_v44, %v2135_v21 }
  0x8c   :  { %288 = vmatprep.subr.bf16.mxu0 %v239_v39  ;;  %v416_v58 = vsel %vm413_vm4, %v406_v37, %v408_v42 }
  0x8d   :  { %1944 = vmatmul.mubr.msk.bf16.vlgmr.msra.gmra.mrb[0].mxu1 %vm77_vm3, %v1941_v32  ;;  %v402_v45 = vpop.permute.xlu0 %401  ;;  %v429_v63 = vand.u32 %v416_v58, %v2135_v21 }
  0x8e   :  { %248 = vmatpush1.bf16.msra.mxu1 %v230_v41  ;;  %279 = vmatprep.mubr.bf16.mxu1 %v2004_v10  ;;  %v414_v53 = vsel %vm413_vm4, %v402_v45, %v404_v40  ;;  %v1959_v45 = vld [vmem:[%s2384_s0 + $0x10] sm:$0xf] }
  0x8f   :  { %v412_v48 = vpop.permute.xlu1 %411  ;;  %329 = vmatprep.subr.bf16.mxu1 %v245_v43  ;;  %v423_v57 = vand.u32 %v414_v53, %v2135_v21 }
  0x90   :  { %v438_v59 = vand.u32 %v412_v48, %v2135_v21 }
  0x91   :  { %1945 = vmatmul.mubr.msk.bf16.vlgmr.msra.gmra.mrb[4].mxu0 %vm77_vm3, %v1941_v32  ;;  %v410_v49 = vpop.permute.xlu0 %409 }
  0x92   :  { %v417_v51 = vsel %vm413_vm4, %v408_v42, %v410_v49  ;;  %289 = vmatpush1.bf16.msra.mxu0 %v236_v46  ;;  %320 = vmatprep.mubr.bf16.mxu0 %v2004_v10  ;;  %v418_v0 = vsel %vm413_vm4, %v410_v49, %v412_v48 }
  0x93   :  { %v432_v54 = vand.u32 %v417_v51, %v2135_v21  ;;  %440 = vmatprep.subr.bf16.mxu0 %v426_v47  ;;  %v605_v55 = vpop.permute.xlu1 %604  ;;  %v435_v6 = vand.u32 %v418_v0, %v2135_v21 }
  0x95   :  { %1946 = vmatmul.mubr.msk.bf16.vlgmr.msra.gmra.mrb[4].mxu1 %vm77_vm3, %v27_v52  ;;  %v603_v56 = vpop.permute.xlu0 %602 }
  0x96   :  { %330 = vmatpush1.bf16.msra.mxu1 %v242_v50  ;;  %361 = vmatprep.mubr.bf16.mxu1 %v2004_v10  ;;  %v614_v61 = vsel %vm612_vm5, %v603_v56, %v605_v55 }
  0x97   :  { %481 = vmatprep.subr.bf16.mxu1 %v432_v54  ;;  %v609_v60 = vpop.permute.xlu1 %608  ;;  %v625_v1 = vand.u32 %v614_v61, %v2135_v21 }
  0x99   :  { %1947 = vmatmul.mubr.msk.bf16.vlgmr.msra.gmra.mrb[8].mxu0 %vm77_vm3, %v27_v52  ;;  %v607_v62 = vpop.permute.xlu0 %606 }
  0x9a   :  { %441 = vmatpush1.bf16.msra.mxu0 %v423_v57  ;;  %472 = vmatprep.mubr.bf16.mxu0 %v2004_v10  ;;  %v616_v3 = vsel %vm612_vm5, %v607_v62, %v609_v60  ;;  %v615_v14 = vsel %vm612_vm5, %v605_v55, %v607_v62 }
  0x9b   :  { %522 = vmatprep.subr.bf16.mxu0 %v438_v59  ;;  %v802_v2 = vpop.permute.xlu1 %801  ;;  %v631_v8 = vand.u32 %v616_v3, %v2135_v21  ;;  %v628_v19 = vand.u32 %v615_v14, %v2135_v21 }
  0x9d   :  { %1948 = vmatmul.mubr.msk.bf16.vlgmr.msra.gmra.mrb[8].mxu1 %vm77_vm3, %v27_v52  ;;  %v601_v5 = vpop.permute.xlu0 %600 }
  0x9e   :  { %482 = vmatpush1.bf16.msra.mxu1 %v429_v63  ;;  %513 = vmatprep.mubr.bf16.mxu1 %v2004_v10  ;;  %v613_v9 = vsel %vm612_vm5, %v601_v5, %v603_v56  ;;  %v1964_v63 = vld [vmem:[%s2384_s0 + $0x14] sm:$0xf] }
  0x9f   :  { %639 = vmatprep.subr.bf16.mxu1 %v625_v1  ;;  %v611_v11 = vpop.permute.xlu1 %610  ;;  %v622_v13 = vand.u32 %v613_v9, %v2135_v21 }
  0xa0   :  { %v637_v15 = vand.u32 %v611_v11, %v2135_v21  ;;  %v617_v22 = vsel %vm612_vm5, %v609_v60, %v611_v11 }
  0xa1   :  { %1951 = vmatmul.mubr.msk.bf16.vlgmr.msra.gmra.mrb[12].mxu0 %vm77_vm3, %v1949_v7  ;;  %v804_v12 = vpop.permute.xlu0 %803  ;;  %v634_v25 = vand.u32 %v617_v22, %v2135_v21 }
  0xa2   :  { %523 = vmatpush1.bf16.msra.mxu0 %v435_v6  ;;  %554 = vmatprep.mubr.bf16.mxu0 %v2004_v10  ;;  %v813_v17 = vsel %vm811_vm6, %v802_v2, %v804_v12 }
  0xa3   :  { %680 = vmatprep.subr.bf16.mxu0 %v631_v8  ;;  %v806_v16 = vpop.permute.xlu1 %805  ;;  %v824_v20 = vand.u32 %v813_v17, %v2135_v21 }
  0xa4   :  { %v814_v36 = vsel %vm811_vm6, %v804_v12, %v806_v16 }
  0xa5   :  { %1952 = vmatmul.mubr.msk.bf16.vlgmr.msra.gmra.mrb[12].mxu1 %vm77_vm3, %v1949_v7  ;;  %v800_v18 = vpop.permute.xlu0 %799  ;;  %v827_v41 = vand.u32 %v814_v36, %v2135_v21  ;;  %v1974_v36 = vld [vmem:[%s2384_s0 + $0x1c] sm:$0xf] }
  0xa6   :  { %640 = vmatpush1.bf16.msra.mxu1 %v622_v13  ;;  %671 = vmatprep.mubr.bf16.mxu1 %v2004_v10  ;;  %v812_v28 = vsel %vm811_vm6, %v800_v18, %v802_v2 }
  0xa7   :  { %721 = vmatprep.subr.bf16.mxu1 %v637_v15  ;;  %v810_v23 = vpop.permute.xlu1 %809  ;;  %v821_v32 = vand.u32 %v812_v28, %v2135_v21 }
  0xa8   :  { %v836_v33 = vand.u32 %v810_v23, %v2135_v21 }
  0xa9   :  { %1953 = vmatmul.mubr.msk.bf16.vlgmr.msra.gmra.mrb[16].mxu0 %vm77_vm3, %v1949_v7  ;;  %v808_v24 = vpop.permute.xlu0 %807 }
  0xaa   :  { %681 = vmatpush1.bf16.msra.mxu0 %v628_v19  ;;  %v815_v26 = vsel %vm811_vm6, %v806_v16, %v808_v24  ;;  %712 = vmatprep.mubr.bf16.mxu0 %v2004_v10  ;;  %v816_v38 = vsel %vm811_vm6, %v808_v24, %v810_v23  ;;  %v1969_v19 = vld [vmem:[%s2384_s0 + $0x18] sm:$0xf] }
  0xab   :  { %v830_v29 = vand.u32 %v815_v26, %v2135_v21  ;;  %838 = vmatprep.subr.bf16.mxu0 %v824_v20  ;;  %v1003_v30 = vpop.permute.xlu1 %1002  ;;  %v833_v44 = vand.u32 %v816_v38, %v2135_v21 }
  0xad   :  { %1956 = vmatmul.mubr.msk.bf16.vlgmr.msra.gmra.mrb[16].mxu1 %vm77_vm3, %v1954_v27  ;;  %v1001_v31 = vpop.permute.xlu0 %1000 }
  0xae   :  { %722 = vmatpush1.bf16.msra.mxu1 %v634_v25  ;;  %753 = vmatprep.mubr.bf16.mxu1 %v2004_v10  ;;  %v1012_v35 = vsel %vm1010_vm7, %v1001_v31, %v1003_v30 }
  0xaf   :  { %879 = vmatprep.subr.bf16.mxu1 %v830_v29  ;;  %v1007_v34 = vpop.permute.xlu1 %1006  ;;  %v1023_v39 = vand.u32 %v1012_v35, %v2135_v21 }
  0xb1   :  { %1957 = vmatmul.mubr.msk.bf16.vlgmr.msra.gmra.mrb[20].mxu0 %vm77_vm3, %v1954_v27  ;;  %v1005_v37 = vpop.permute.xlu0 %1004 }
  0xb2   :  { %839 = vmatpush1.bf16.msra.mxu0 %v821_v32  ;;  %870 = vmatprep.mubr.bf16.mxu0 %v2004_v10  ;;  %v1014_v42 = vsel %vm1010_vm7, %v1005_v37, %v1007_v34  ;;  %v1013_v51 = vsel %vm1010_vm7, %v1003_v30, %v1005_v37 }
  0xb3   :  { %920 = vmatprep.subr.bf16.mxu0 %v836_v33  ;;  %v1200_v40 = vpop.permute.xlu1 %1199  ;;  %v1029_v46 = vand.u32 %v1014_v42, %v2135_v21  ;;  %v1026_v56 = vand.u32 %v1013_v51, %v2135_v21 }
  0xb5   :  { %1958 = vmatmul.mubr.msk.bf16.vlgmr.msra.gmra.mrb[20].mxu1 %vm77_vm3, %v1954_v27  ;;  %v999_v43 = vpop.permute.xlu0 %998 }
  0xb6   :  { %880 = vmatpush1.bf16.msra.mxu1 %v827_v41  ;;  %911 = vmatprep.mubr.bf16.mxu1 %v2004_v10  ;;  %v1011_v47 = vsel %vm1010_vm7, %v999_v43, %v1001_v31 }
  0xb7   :  { %1037 = vmatprep.subr.bf16.mxu1 %v1023_v39  ;;  %v1009_v48 = vpop.permute.xlu1 %1008  ;;  %v1020_v50 = vand.u32 %v1011_v47, %v2135_v21  ;;  %v1979_v47 = vld [vmem:[%s2384_s0 + $0x20] sm:$0xf] }
  0xb8   :  { %v1035_v52 = vand.u32 %v1009_v48, %v2135_v21  ;;  %v1015_v58 = vsel %vm1010_vm7, %v1007_v34, %v1009_v48 }
  0xb9   :  { %1961 = vmatmul.mubr.msk.bf16.vlgmr.msra.gmra.mrb[24].mxu0 %vm77_vm3, %v1959_v45  ;;  %v1202_v49 = vpop.permute.xlu0 %1201  ;;  %v1032_v61 = vand.u32 %v1015_v58, %v2135_v21 }
  0xba   :  { %921 = vmatpush1.bf16.msra.mxu0 %v833_v44  ;;  %952 = vmatprep.mubr.bf16.mxu0 %v2004_v10  ;;  %v1211_v54 = vsel %vm1209_vm8, %v1200_v40, %v1202_v49 }
  0xbb   :  { %1078 = vmatprep.subr.bf16.mxu0 %v1029_v46  ;;  %v1204_v53 = vpop.permute.xlu1 %1203  ;;  %v1222_v57 = vand.u32 %v1211_v54, %v2135_v21 }
  0xbc   :  { %v1212_v9 = vsel %vm1209_vm8, %v1202_v49, %v1204_v53 }
  0xbd   :  { %1962 = vmatmul.mubr.msk.bf16.vlgmr.msra.gmra.mrb[24].mxu1 %vm77_vm3, %v1959_v45  ;;  %v1198_v55 = vpop.permute.xlu0 %1197  ;;  %v1225_v15 = vand.u32 %v1212_v9, %v2135_v21 }
  0xbe   :  { %1038 = vmatpush1.bf16.msra.mxu1 %v1020_v50  ;;  %1069 = vmatprep.mubr.bf16.mxu1 %v2004_v10  ;;  %v1210_v0 = vsel %vm1209_vm8, %v1198_v55, %v1200_v40 }
  0xbf   :  { %1119 = vmatprep.subr.bf16.mxu1 %v1035_v52  ;;  %v1208_v59 = vpop.permute.xlu1 %1207  ;;  %v1219_v5 = vand.u32 %v1210_v0, %v2135_v21 }
  0xc0   :  { %v1234_v6 = vand.u32 %v1208_v59, %v2135_v21 }
  0xc1   :  { %1963 = vmatmul.mubr.msk.bf16.vlgmr.msra.gmra.mrb[28].mxu0 %vm77_vm3, %v1959_v45  ;;  %v1206_v60 = vpop.permute.xlu0 %1205 }
  0xc2   :  { %1079 = vmatpush1.bf16.msra.mxu0 %v1026_v56  ;;  %v1213_v62 = vsel %vm1209_vm8, %v1204_v53, %v1206_v60  ;;  %1110 = vmatprep.mubr.bf16.mxu0 %v2004_v10  ;;  %v1214_v12 = vsel %vm1209_vm8, %v1206_v60, %v1208_v59 }
  0xc3   :  { %v1228_v1 = vand.u32 %v1213_v62, %v2135_v21  ;;  %1236 = vmatprep.subr.bf16.mxu0 %v1222_v57  ;;  %v1401_v2 = vpop.permute.xlu1 %1400  ;;  %v1231_v18 = vand.u32 %v1214_v12, %v2135_v21 }
  0xc5   :  { %1966 = vmatmul.mubr.msk.bf16.vlgmr.msra.gmra.mrb[28].mxu1 %vm77_vm3, %v1964_v63  ;;  %v1399_v3 = vpop.permute.xlu0 %1398 }
  0xc6   :  { %1120 = vmatpush1.bf16.msra.mxu1 %v1032_v61  ;;  %1151 = vmatprep.mubr.bf16.mxu1 %v2004_v10  ;;  %v1410_v8 = vsel %vm1408_vm9, %v1399_v3, %v1401_v2 }
  0xc7   :  { %1277 = vmatprep.subr.bf16.mxu1 %v1228_v1  ;;  %v1405_v7 = vpop.permute.xlu1 %1404  ;;  %v1421_v13 = vand.u32 %v1410_v8, %v2135_v21 }
  0xc9   :  { %1967 = vmatmul.mubr.msk.bf16.vlgmr.msra.gmra.mrb[32].mxu0 %vm77_vm3, %v1964_v63  ;;  %v1403_v11 = vpop.permute.xlu0 %1402 }
  0xca   :  { %1237 = vmatpush1.bf16.msra.mxu0 %v1219_v5  ;;  %1268 = vmatprep.mubr.bf16.mxu0 %v2004_v10  ;;  %v1412_v16 = vsel %vm1408_vm9, %v1403_v11, %v1405_v7  ;;  %v1411_v26 = vsel %vm1408_vm9, %v1401_v2, %v1403_v11 }
  0xcb   :  { %1318 = vmatprep.subr.bf16.mxu0 %v1234_v6  ;;  %v1598_v14 = vpop.permute.xlu1 %1597  ;;  %v1427_v20 = vand.u32 %v1412_v16, %v2135_v21  ;;  %v1424_v30 = vand.u32 %v1411_v26, %v2135_v21 }
  0xcd   :  { %1968 = vmatmul.mubr.msk.bf16.vlgmr.msra.gmra.mrb[32].mxu1 %vm77_vm3, %v1964_v63  ;;  %v1397_v17 = vpop.permute.xlu0 %1396 }
  0xce   :  { %1278 = vmatpush1.bf16.msra.mxu1 %v1225_v15  ;;  %1309 = vmatprep.mubr.bf16.mxu1 %v2004_v10  ;;  %v1409_v22 = vsel %vm1408_vm9, %v1397_v17, %v1399_v3 }
  0xcf   :  { %1435 = vmatprep.subr.bf16.mxu1 %v1421_v13  ;;  %v1407_v23 = vpop.permute.xlu1 %1406  ;;  %v1418_v25 = vand.u32 %v1409_v22, %v2135_v21 }
  0xd0   :  { %v1433_v27 = vand.u32 %v1407_v23, %v2135_v21  ;;  %v1413_v31 = vsel %vm1408_vm9, %v1405_v7, %v1407_v23 }
  0xd1   :  { %1971 = vmatmul.mubr.msk.bf16.vlgmr.msra.gmra.mrb[36].mxu0 %vm77_vm3, %v1969_v19  ;;  %v1600_v24 = vpop.permute.xlu0 %1599  ;;  %v1430_v35 = vand.u32 %v1413_v31, %v2135_v21 }
  0xd2   :  { %1319 = vmatpush1.bf16.msra.mxu0 %v1231_v18  ;;  %1350 = vmatprep.mubr.bf16.mxu0 %v2004_v10  ;;  %v1609_v28 = vsel %vm1607_vm10, %v1598_v14, %v1600_v24 }
  0xd3   :  { %1476 = vmatprep.subr.bf16.mxu0 %v1427_v20  ;;  %v1620_v32 = vand.u32 %v1609_v28, %v2135_v21  ;;  %v1602_v33 = vpop.permute.xlu1 %1601 }
  0xd4   :  { %v1610_v43 = vsel %vm1607_vm10, %v1600_v24, %v1602_v33 }
  0xd5   :  { %1972 = vmatmul.mubr.msk.bf16.vlgmr.msra.gmra.mrb[36].mxu1 %vm77_vm3, %v1969_v19  ;;  %v1596_v29 = vpop.permute.xlu0 %1595  ;;  %v1623_v45 = vand.u32 %v1610_v43, %v2135_v21 }
  0xd6   :  { %1436 = vmatpush1.bf16.msra.mxu1 %v1418_v25  ;;  %1467 = vmatprep.mubr.bf16.mxu1 %v2004_v10  ;;  %v1608_v38 = vsel %vm1607_vm10, %v1596_v29, %v1598_v14 }
  0xd7   :  { %1517 = vmatprep.subr.bf16.mxu1 %v1433_v27  ;;  %v1606_v40 = vpop.permute.xlu1 %1605  ;;  %v1617_v41 = vand.u32 %v1608_v38, %v2135_v21 }
  0xd8   :  { %v1632_v42 = vand.u32 %v1606_v40, %v2135_v21 }
  0xd9   :  { %1973 = vmatmul.mubr.msk.bf16.vlgmr.msra.gmra.mrb[40].mxu0 %vm77_vm3, %v1969_v19  ;;  %v1604_v34 = vpop.permute.xlu0 %1603 }
  0xda   :  { %1477 = vmatpush1.bf16.msra.mxu0 %v1424_v30  ;;  %v1611_v37 = vsel %vm1607_vm10, %v1602_v33, %v1604_v34  ;;  %1508 = vmatprep.mubr.bf16.mxu0 %v2004_v10  ;;  %v1612_v44 = vsel %vm1607_vm10, %v1604_v34, %v1606_v40 }
  0xdb   :  { %1634 = vmatprep.subr.bf16.mxu0 %v1620_v32  ;;  %v1626_v39 = vand.u32 %v1611_v37, %v2135_v21  ;;  %v1629_v46 = vand.u32 %v1612_v44, %v2135_v21 }
  0xdd   :  { %1976 = vmatmul.mubr.msk.bf16.vlgmr.msra.gmra.mrb[40].mxu1 %vm77_vm3, %v1974_v36 }
  0xde   :  { %1518 = vmatpush1.bf16.msra.mxu1 %v1430_v35  ;;  %1549 = vmatprep.mubr.bf16.mxu1 %v2004_v10 }
  0xdf   :  { %1675 = vmatprep.subr.bf16.mxu1 %v1626_v39 }
  0xe1   :  { %1977 = vmatmul.mubr.msk.bf16.vlgmr.msra.gmra.mrb[44].mxu0 %vm77_vm3, %v1974_v36 }
  0xe2   :  { %1635 = vmatpush1.bf16.msra.mxu0 %v1617_v41  ;;  %1666 = vmatprep.mubr.bf16.mxu0 %v2004_v10 }
  0xe3   :  { %1716 = vmatprep.subr.bf16.mxu0 %v1632_v42 }
  0xe5   :  { %1978 = vmatmul.mubr.msk.bf16.vlgmr.msra.gmra.mrb[44].mxu1 %vm77_vm3, %v1974_v36 }
  0xe6   :  { %1676 = vmatpush1.bf16.msra.mxu1 %v1623_v45  ;;  %1707 = vmatprep.mubr.bf16.mxu1 %v2004_v10 }
  0xe9   :  { %1981 = vmatmul.mubr.msk.bf16.vlgmr.msra.gmra.mrb[48].mxu0 %vm77_vm3, %v1979_v47 }
  0xea   :  { %1717 = vmatpush1.bf16.msra.mxu0 %v1629_v46  ;;  %1748 = vmatprep.mubr.bf16.mxu0 %v2004_v10 }
  0xed   :  { %1982 = vmatmul.mubr.msk.bf16.vlgmr.msra.gmra.mrb[48].mxu1 %vm77_vm3, %v1979_v47 }
  0xf1   :  { %1983 = vmatmul.mubr.msk.bf16.vlgmr.msra.gmra.mrb[52].mxu0 %vm77_vm3, %v1979_v47 }
 0x15c   :  { %v137_v48 = vpop.f32.mrb[0].mxu0 }
 0x15d   :  { %v139_v49 = vpop.f32.mrb[1].mxu0 }
 0x15e   :  { %v141_v50 = vpop.f32.mrb[2].mxu0 }
 0x15f   :  { %v142_v21 = vpop.f32.mrb[3].mxu0 }
 0x160   :  { %v178_v51 = vpop.f32.mrb[0].mxu1 }
 0x161   :  { %v180_v52 = vpop.f32.mrb[1].mxu1 }
 0x162   :  { %v182_v53 = vpop.f32.mrb[2].mxu1 }
 0x163   :  { %v183_v54 = vpop.f32.mrb[3].mxu1 }
 0x164   :  { %v219_v55 = vpop.f32.mrb[4].mxu0 }
 0x165   :  { %v221_v56 = vpop.f32.mrb[5].mxu0 }
 0x166   :  { %v223_v57 = vpop.f32.mrb[6].mxu0 }
 0x167   :  { %v224_v58 = vpop.f32.mrb[7].mxu0 }
 0x168   :  { %v281_v59 = vpop.f32.mrb[4].mxu1 }
 0x169   :  { %v282_v60 = vadd.f32 %v281_v59, %v137_v48  ;;  %v283_v61 = vpop.f32.mrb[5].mxu1 }
 0x16a   :  { %v284_v10 = vadd.f32 %v283_v61, %v139_v49  ;;  %v285_v62 = vpop.f32.mrb[6].mxu1 }
 0x16b   :  { %v286_v63 = vpop.f32.mrb[7].mxu1 }
 0x16c   :  { %v322_v0 = vpop.f32.mrb[8].mxu0 }
 0x16d   :  { %v323_v1 = vadd.f32 %v322_v0, %v178_v51  ;;  %v324_v2 = vpop.f32.mrb[9].mxu0 }
 0x16e   :  { %v325_v3 = vadd.f32 %v324_v2, %v180_v52  ;;  %v326_v5 = vpop.f32.mrb[10].mxu0 }
 0x16f   :  { %v327_v6 = vpop.f32.mrb[11].mxu0 }
 0x170   :  { %v363_v7 = vpop.f32.mrb[8].mxu1 }
 0x171   :  { %v364_v8 = vadd.f32 %v363_v7, %v219_v55  ;;  %v365_v9 = vpop.f32.mrb[9].mxu1 }
 0x172   :  { %v366_v11 = vadd.f32 %v365_v9, %v221_v56  ;;  %v367_v12 = vpop.f32.mrb[10].mxu1 }
 0x173   :  { %v368_v13 = vpop.f32.mrb[11].mxu1 }
 0x174   :  { %v474_v14 = vpop.f32.mrb[12].mxu0 }
 0x175   :  { %v563_v15 = vadd.f32 %v474_v14, %v282_v60  ;;  %v476_v16 = vpop.f32.mrb[13].mxu0 }
 0x176   :  { %v564_v17 = vadd.f32 %v476_v16, %v284_v10  ;;  %v478_v18 = vpop.f32.mrb[14].mxu0 }
 0x177   :  { %v479_v19 = vpop.f32.mrb[15].mxu0 }
 0x178   :  { %v515_v20 = vpop.f32.mrb[12].mxu1 }
 0x179   :  { %v565_v22 = vadd.f32 %v515_v20, %v323_v1  ;;  %v517_v23 = vpop.f32.mrb[13].mxu1 }
 0x17a   :  { %v566_v24 = vadd.f32 %v517_v23, %v325_v3  ;;  %v519_v25 = vpop.f32.mrb[14].mxu1 }
 0x17b   :  { %v520_v26 = vpop.f32.mrb[15].mxu1 }
 0x17c   :  { %v556_v27 = vpop.f32.mrb[16].mxu0 }
 0x17d   :  { %v567_v28 = vadd.f32 %v556_v27, %v364_v8  ;;  %v558_v29 = vpop.f32.mrb[17].mxu0 }
 0x17e   :  { %v568_v30 = vadd.f32 %v558_v29, %v366_v11  ;;  %v560_v31 = vpop.f32.mrb[18].mxu0 }
 0x17f   :  { %v561_v32 = vpop.f32.mrb[19].mxu0 }
 0x180   :  { %v673_v33 = vpop.f32.mrb[16].mxu1 }
 0x181   :  { %v762_v34 = vadd.f32 %v673_v33, %v563_v15  ;;  %v675_v35 = vpop.f32.mrb[17].mxu1 }
 0x182   :  { %v763_v36 = vadd.f32 %v675_v35, %v564_v17  ;;  %v677_v37 = vpop.f32.mrb[18].mxu1 }
 0x183   :  { %v678_v38 = vpop.f32.mrb[19].mxu1 }
 0x184   :  { %v714_v39 = vpop.f32.mrb[20].mxu0 }
 0x185   :  { %v764_v40 = vadd.f32 %v714_v39, %v565_v22  ;;  %v716_v41 = vpop.f32.mrb[21].mxu0 }
 0x186   :  { %v765_v42 = vadd.f32 %v716_v41, %v566_v24  ;;  %v718_v43 = vpop.f32.mrb[22].mxu0 }
 0x187   :  { %v719_v44 = vpop.f32.mrb[23].mxu0 }
 0x188   :  { %v755_v45 = vpop.f32.mrb[20].mxu1 }
 0x189   :  { %v766_v46 = vadd.f32 %v755_v45, %v567_v28  ;;  %v757_v47 = vpop.f32.mrb[21].mxu1 }
 0x18a   :  { %v767_v48 = vadd.f32 %v757_v47, %v568_v30  ;;  %v759_v49 = vpop.f32.mrb[22].mxu1 }
 0x18b   :  { %v760_v50 = vpop.f32.mrb[23].mxu1 }
 0x18c   :  { %v872_v21 = vpop.f32.mrb[24].mxu0 }
 0x18d   :  { %v961_v51 = vadd.f32 %v872_v21, %v762_v34  ;;  %v874_v52 = vpop.f32.mrb[25].mxu0 }
 0x18e   :  { %v962_v53 = vadd.f32 %v874_v52, %v763_v36  ;;  %v876_v54 = vpop.f32.mrb[26].mxu0 }
 0x18f   :  { %v877_v55 = vpop.f32.mrb[27].mxu0  ;;  %v2319_v54 = vld [vmem:[%s2385_s5] sm:$0x3f] }
 0x190   :  { %v913_v56 = vpop.f32.mrb[24].mxu1 }
 0x191   :  { %v963_v57 = vadd.f32 %v913_v56, %v764_v40  ;;  %v915_v58 = vpop.f32.mrb[25].mxu1 }
 0x192   :  { %v964_v59 = vadd.f32 %v915_v58, %v765_v42  ;;  %v917_v60 = vpop.f32.mrb[26].mxu1 }
 0x193   :  { %v918_v61 = vpop.f32.mrb[27].mxu1  ;;  %v1790_v60 = vsub.s32 1, %v2057_v4 }
 0x194   :  { %v954_v10 = vpop.f32.mrb[28].mxu0 }
 0x195   :  { %v965_v62 = vadd.f32 %v954_v10, %v766_v46  ;;  %v956_v63 = vpop.f32.mrb[29].mxu0  ;;  %v2326_v10 = vld [vmem:[%s2386_s4] sm:$0x3f] }
 0x196   :  { %v966_v0 = vadd.f32 %v956_v63, %v767_v48  ;;  %v958_v1 = vpop.f32.mrb[30].mxu0 }
 0x197   :  { %v959_v2 = vpop.f32.mrb[31].mxu0  ;;  %v1858_v1 = vld [vmem:[%s2388_s6] sm:$0xff] }
 0x198   :  { %v1071_v3 = vpop.f32.mrb[28].mxu1  ;;  %v1872_v2 = vrot.slane %v2319_v54, %v1790_v60 }
 0x199   :  { %v1160_v5 = vadd.f32 %v1071_v3, %v961_v51  ;;  %v1073_v6 = vpop.f32.mrb[29].mxu1  ;;  %v1767_v3 = vpop.permute.xlu0 %1766 }
 0x19a   :  { %v1161_v7 = vadd.f32 %v1073_v6, %v962_v53  ;;  %v1075_v8 = vpop.f32.mrb[30].mxu1 }
 0x19b   :  { %v1076_v9 = vpop.f32.mrb[31].mxu1  ;;  %v1794_v8 = vsub.s32 2, %v2057_v4 }
 0x19c   :  { %v1112_v11 = vpop.f32.mrb[32].mxu0 }
 0x19d   :  { %v1162_v12 = vadd.f32 %v1112_v11, %v963_v57  ;;  %v1114_v13 = vpop.f32.mrb[33].mxu0  ;;  %v1786_v57 = vsub.s32 0, %v2057_v4 }
 0x19e   :  { %v1163_v14 = vadd.f32 %v1114_v13, %v964_v59  ;;  %v1116_v15 = vpop.f32.mrb[34].mxu0 }
 0x19f   :  { %v1117_v16 = vpop.f32.mrb[35].mxu0  ;;  %v1787_v11 = vrot.slane %v2326_v10, %v1786_v57 }
 0x1a0   :  { %v1153_v17 = vpop.f32.mrb[32].mxu1 }
 0x1a1   :  { %v1164_v18 = vadd.f32 %v1153_v17, %v965_v62  ;;  %v1155_v19 = vpop.f32.mrb[33].mxu1  ;;  %v1868_v62 = vrot.slane %v2319_v54, %v1786_v57 }
 0x1a2   :  { %v1165_v20 = vadd.f32 %v1155_v19, %v966_v0  ;;  %v1157_v22 = vpop.f32.mrb[34].mxu1  ;;  %v2332_v0 = vld [vmem:[%s2387_s3] sm:$0x3f] }
 0x1a3   :  { %v1158_v23 = vpop.f32.mrb[35].mxu1  ;;  %v1824_v15 = vrot.slane %v2332_v0, %v1786_v57  ;;  %v1828_v16 = vrot.slane %v2332_v0, %v1790_v60  ;;  %v1895_v17 = vmul.f32 %v1868_v62, %v1858_v1 }
 0x1a4   :  { %v1270_v24 = vpop.f32.mrb[36].mxu0 }
 0x1a5   :  { %v1359_v25 = vadd.f32 %v1270_v24, %v1160_v5  ;;  %v1272_v26 = vpop.f32.mrb[37].mxu0  ;;  %v1876_v24 = vrot.slane %v2319_v54, %v1794_v8 }
 0x1a6   :  { %v1360_v27 = vadd.f32 %v1272_v26, %v1161_v7  ;;  %v1274_v28 = vpop.f32.mrb[38].mxu0  ;;  %v1859_v7 = vld [vmem:[%s2388_s6 + $0x8] sm:$0xff] }
 0x1a7   :  { %v1275_v29 = vpop.f32.mrb[39].mxu0  ;;  %v1795_v28 = vrot.slane %v2326_v10, %v1794_v8 }
 0x1a8   :  { %v1311_v30 = vpop.f32.mrb[36].mxu1  ;;  %v1860_v29 = vld [vmem:[%s2388_s6 + $0x10] sm:$0xff] }
 0x1a9   :  { %v1361_v31 = vadd.f32 %v1311_v30, %v1162_v12  ;;  %v1313_v32 = vpop.f32.mrb[37].mxu1  ;;  %v1791_v12 = vrot.slane %v2326_v10, %v1790_v60 }
 0x1aa   :  { %v1362_v33 = vadd.f32 %v1313_v32, %v1163_v14  ;;  %v1315_v34 = vpop.f32.mrb[38].mxu1  ;;  %v1798_v14 = vsub.s32 3, %v2057_v4 }
 0x1ab   :  { %v1316_v35 = vpop.f32.mrb[39].mxu1 }
 0x1ac   :  { %v1352_v36 = vpop.f32.mrb[40].mxu0  ;;  %v1799_v34 = vrot.slane %v2326_v10, %v1798_v14  ;;  %v1861_v35 = vld [vmem:[%s2388_s6 + $0x18] sm:$0xff] }
 0x1ad   :  { %v1363_v37 = vadd.f32 %v1352_v36, %v1164_v18  ;;  %v1354_v38 = vpop.f32.mrb[41].mxu0 }
 0x1ae   :  { %v1364_v39 = vadd.f32 %v1354_v38, %v1165_v20  ;;  %v1356_v40 = vpop.f32.mrb[42].mxu0  ;;  %v1896_v20 = vmul.f32 %v1872_v2, %v1859_v7 }
 0x1af   :  { %v1357_v41 = vpop.f32.mrb[43].mxu0  ;;  %v1832_v40 = vrot.slane %v2332_v0, %v1794_v8  ;;  %v1863_v8 = vld [vmem:[%s2388_s6 + $0x28] sm:$0xff] }
 0x1b0   :  { %v1469_v42 = vpop.f32.mrb[40].mxu1  ;;  %v1836_v41 = vrot.slane %v2332_v0, %v1798_v14 }
 0x1b1   :  { %v1558_v43 = vadd.f32 %v1469_v42, %v1359_v25  ;;  %v1471_v44 = vpop.f32.mrb[41].mxu1  ;;  %v1802_v25 = vsub.s32 4, %v2057_v4 }
 0x1b2   :  { %v1559_v45 = vadd.f32 %v1471_v44, %v1360_v27  ;;  %v1473_v46 = vpop.f32.mrb[42].mxu1  ;;  %v1897_v44 = vmul.f32 %v1876_v24, %v1860_v29 }
 0x1b3   :  { %v1474_v47 = vpop.f32.mrb[43].mxu1  ;;  %v1884_v62 = vrot.slane %v2319_v54, %v1802_v25 }
 0x1b4   :  { %v1510_v48 = vpop.f32.mrb[44].mxu0  ;;  %v1803_v47 = vrot.slane %v2326_v10, %v1802_v25 }
 0x1b5   :  { %v1560_v49 = vadd.f32 %v1510_v48, %v1361_v31  ;;  %v1512_v50 = vpop.f32.mrb[45].mxu0  ;;  %v1880_v31 = vrot.slane %v2319_v54, %v1798_v14 }
 0x1b6   :  { %v1561_v21 = vadd.f32 %v1512_v50, %v1362_v33  ;;  %v1514_v51 = vpop.f32.mrb[46].mxu0 }
 0x1b7   :  { %v1515_v52 = vpop.f32.mrb[47].mxu0  ;;  %v1898_v50 = vmul.f32 %v1880_v31, %v1861_v35 }
 0x1b8   :  { %v1551_v53 = vpop.f32.mrb[44].mxu1 }
 0x1b9   :  { %v1562_v55 = vadd.f32 %v1551_v53, %v1363_v37  ;;  %v1553_v56 = vpop.f32.mrb[45].mxu1  ;;  %v1806_v37 = vsub.s32 5, %v2057_v4 }
 0x1ba   :  { %v1563_v58 = vadd.f32 %v1553_v56, %v1364_v39  ;;  %v1555_v59 = vpop.f32.mrb[46].mxu1 }
 0x1bb   :  { %v1556_v61 = vpop.f32.mrb[47].mxu1  ;;  %v1807_v56 = vrot.slane %v2326_v10, %v1806_v37  ;;  %v1840_v10 = vrot.slane %v2332_v0, %v1802_v25 }
 0x1bc   :  { %v1668_v63 = vpop.f32.mrb[48].mxu0 }
 0x1bd   :  { %v1757_v5 = vadd.f32 %v1668_v63, %v1558_v43  ;;  %v1670_v6 = vpop.f32.mrb[49].mxu0 }
 0x1be   :  { %v1758_v9 = vadd.f32 %v1670_v6, %v1559_v45  ;;  %v1672_v13 = vpop.f32.mrb[50].mxu0  ;;  %v1888_v6 = vrot.slane %v2319_v54, %v1806_v37 }
 0x1bf   :  { %v1769_v18 = vadd.f32 %v1767_v3, %v1757_v5  ;;  %v1673_v19 = vpop.f32.mrb[51].mxu0  ;;  %v1862_v5 = vld [vmem:[%s2388_s6 + $0x20] sm:$0xff]  ;;  %v1844_v13 = vrot.slane %v2332_v0, %v1806_v37 }
 0x1c0   :  { %v1770_v22 = vadd.f32 %v1767_v3, %v1758_v9  ;;  %v1709_v23 = vpop.f32.mrb[48].mxu1 }
 0x1c1   :  { %v1775_v26 = vmax.f32 %v1769_v18, 0.0  ;;  %v1759_v27 = vadd.f32 %v1709_v23, %v1560_v49  ;;  %v1711_v30 = vpop.f32.mrb[49].mxu1 }
 0x1c2   :  { %v1776_v32 = vmax.f32 %v1770_v22, 0.0  ;;  %v1760_v33 = vadd.f32 %v1711_v30, %v1561_v21  ;;  %v1713_v36 = vpop.f32.mrb[50].mxu1 }
 0x1c3   :  { %v1814_v38 = vmul.f32 %v1787_v11, %v1775_v26  ;;  %v1771_v39 = vadd.f32 %v1767_v3, %v1759_v27  ;;  %v1714_v42 = vpop.f32.mrb[51].mxu1 }
 0x1c4   :  { %v1815_v43 = vmul.f32 %v1791_v12, %v1776_v32  ;;  %v1772_v45 = vadd.f32 %v1767_v3, %v1760_v33  ;;  %v1750_v46 = vpop.f32.mrb[52].mxu0 }
 0x1c5   :  { %v1851_v48 = vmul.f32 %v1824_v15, %v1814_v38  ;;  %v1777_v49 = vmax.f32 %v1771_v39, 0.0  ;;  %v1761_v21 = vadd.f32 %v1750_v46, %v1562_v55  ;;  %v1752_v51 = vpop.f32.mrb[53].mxu0 }
 0x1c6   :  { %v1852_v52 = vmul.f32 %v1828_v16, %v1815_v43  ;;  %v1778_v4 = vmax.f32 %v1772_v45, 0.0  ;;  %v1762_v53 = vadd.f32 %v1752_v51, %v1563_v58  ;;  %v1754_v57 = vpop.f32.mrb[54].mxu0  ;;  %v1899_v16 = vmul.f32 %v1884_v62, %v1862_v5 }
 0x1c7   :  { %v1901_v59 = vadd.f32 %v1895_v17, %v1851_v48  ;;  %v1816_v60 = vmul.f32 %v1795_v28, %v1777_v49  ;;  %v1773_v61 = vadd.f32 %v1767_v3, %v1761_v21  ;;  %v1755_v63 = vpop.f32.mrb[55].mxu0 }
 0x1c8   :  { %v1902_v1 = vadd.f32 %v1896_v20, %v1852_v52  ;;  %v1817_v2 = vmul.f32 %v1799_v34, %v1778_v4  ;;  %v1774_v55 = vadd.f32 %v1767_v3, %v1762_v53  ;;  %v1900_v3 = vmul.f32 %v1888_v6, %v1863_v8 }
 0x1c9   :  { %v1853_v7 = vmul.f32 %v1832_v40, %v1816_v60  ;;  %v1779_v58 = vmax.f32 %v1773_v61, 0.0 }
 0x1ca   :  { %v1987_v9 = vpack.c.bf16 %v1902_v1, %v1901_v59  ;;  %v1854_v11 = vmul.f32 %v1836_v41, %v1817_v2  ;;  %v1780_v12 = vmax.f32 %v1774_v55, 0.0 }
 0x1cb   :  { %v1903_v14 = vadd.f32 %v1897_v44, %v1853_v7  ;;  %v1818_v15 = vmul.f32 %v1803_v47, %v1779_v58 }
 0x1cc   :  { %v1904_v17 = vadd.f32 %v1898_v50, %v1854_v11  ;;  %1931 = vst [vmem:[%s2389_s7] sm:$0xff] %v1987_v9  ;;  %v1819_v54 = vmul.f32 %v1807_v56, %v1780_v12 }
 0x1cd   :  { %v1855_v18 = vmul.f32 %v1840_v10, %v1818_v15 }
 0x1ce   :  { %v1988_v19 = vpack.c.bf16 %v1904_v17, %v1903_v14  ;;  %v1856_v20 = vmul.f32 %v1844_v13, %v1819_v54 }
 0x1cf   :  { %v1905_v22 = vadd.f32 %v1899_v16, %v1855_v18 }
 0x1d0   :  { %1932 = vst [vmem:[%s2389_s7 + $0x8] sm:$0xff] %v1988_v19  ;;  %v1906_v0 = vadd.f32 %v1900_v3, %v1856_v20 }
 0x1d2   :  { %v1989_v23 = vpack.c.bf16 %v1906_v0, %v1905_v22 }
 0x1d4   :  { %1936 = vst.msk [vmem:[%s2389_s7 + $0x10] sm:$0xff] %vm1935_vm13, %v1989_v23 }

// kernel: ldm_forward.4
= control target key start
LH: loop header
LB: loop body
LE: loop exit
PB: predicated region body
PF: predicated region fallthrough
CT: control target
= control target key end

     0   :  { %vm86_vm0 = vcmask 1043456   ;;  %v3115_v3 = vmov 0   ;;  %s3116_s27 = smov 127   ;;  %vm79_vm1 = vcmask 64512   ;;  %s3117_s29 = smov 126   ;;  %vm73_vm2 = vcmask 1039360   ;;  %s3781_s2 = inlined_call_operand.vmem [shape: bf16[1,8,686], index: 2, kind: input, shape index: {}]   ;;  %s3782_s0 = inlined_call_operand.vmem [shape: bf16[9,32,8], index: 0, kind: input, shape index: {}]   ;;  %s3783_s1 = inlined_call_operand.vmem [shape: f32[32,1], index: 1, kind: input, shape index: {}]   ;;  %s3784_s5 = inlined_call_operand.vmem [shape: f32[2,648], index: 5, kind: input, shape index: {}]   ;;  %s3785_s4 = inlined_call_operand.vmem [shape: f32[32,2], index: 4, kind: input, shape index: {}]   ;;  %s3786_s3 = inlined_call_operand.vmem [shape: f32[1,648], index: 3, kind: input, shape index: {}]   ;;  %s3787_s6 = inlined_call_operand.vmem [shape: bf16[32,648], index: 6, kind: output, shape index: {}]  }
   0x1   :  { %v29_v0 = vld [vmem:[%s3781_s2 + $0x8] sm:$0xff]  ;;  %v28_v1 = vld [vmem:[%s3781_s2] sm:$0xff]  ;;  %v30_v2 = vld [vmem:[%s3781_s2 + $0x10] sm:$0xff]  ;;  %436 = vmatprep.mubr.bf16.mxu0 %v3115_v3  ;;  %137 = vmatprep.mubr.bf16.mxu1 %v3115_v3  ;;  %s3118_s8 = smov 110   ;;  %s3119_s9 = smov 109   ;;  %vm484_vm3 = vcmask 1031168  }
   0x2   :  { %v3172_v4 = vcombine.low %v29_v0, %v29_v0  ;;  %v3174_v5 = vcombine.low %v28_v1, %v28_v1  ;;  %v3176_v6 = vcombine.low %v30_v2, %v30_v2  ;;  %3088 = vset.pattern.permute.xlu0 %v3115_v3  ;;  %v3179_v7 = vcombine.high %v30_v2, %v30_v2  ;;  %v3193_v10 = vld [vmem:[%s3782_s0] sm:$0xff]   ;;  %v3203_v11 = vld [vmem:[%s3782_s0 + $0x8] sm:$0xff]   ;;  %s3120_s10 = smov 108   ;;  %s3121_s11 = smov 92   ;;  %v3261_v20 = vld [vmem:[%s3782_s0 + $0x10] sm:$0xff]  }
   0x3   :  { %3089 = vset.pattern.permute.xlu1 %v3115_v3  ;;  %v3184_v8 = vcombine.high %v28_v1, %v28_v1  ;;  %v3207_v12 = vcombine.high %v29_v0, %v29_v0  ;;  %s3122_s12 = smov 91   ;;  %s3123_s13 = smov 90   ;;  %v3272_v26 = vld [vmem:[%s3782_s0 + $0x20] sm:$0xff]   ;;  %v3100_v32 = vld [vmem:[%s3782_s0 + $0x18] sm:$0xff]   ;;  %v3295_v37 = vld [vmem:[%s3782_s0 + $0x28] sm:$0xff]   ;;  %vm724_vm4 = vcmask 900096  }
   0x4   :  { %65 = vrot.lane.b32.xlu1 %v3172_v4, %s3116_s27  ;;  %61 = vrot.lane.b32.xlu0 %v3174_v5, %s3116_s27  ;;  %v293_v9 = vsel %vm86_vm0, %v3176_v6, 0  ;;  %v281_v55 = vsel %vm86_vm0, %v3174_v5, 0  ;;  %vm964_vm5 = vcmask 891904   ;;  %v3335_v57 = vld [vmem:[%s3782_s0 + $0x30] sm:$0xff]   ;;  %v3352_v62 = vld [vmem:[%s3782_s0 + $0x38] sm:$0xff]   ;;  %v287_v63 = vsel %vm86_vm0, %v3172_v4, 0 }
   0x5   :  { %2734 = vmatprep.subr.msk.bf16.mxu0 %vm86_vm0, %v3179_v7  ;;  %vm1204_vm6 = vcmask 883712   ;;  %vm1444_vm7 = vcmask 752640   ;;  %vm1684_vm8 = vcmask 744448   ;;  %vm1924_vm9 = vcmask 736256  }
   0x6   :  { %405 = vmatpush1.bf16.msra.mxu0 %v293_v9  ;;  %vm2231_vm10 = vcmask 1041408   ;;  %vm2218_vm11 = vcmask 15360   ;;  %vm2689_vm12 = vcmask 64516  }
   0x7   :  { %vm3753_vm13 = vmor %vm2689_vm12, %vm86_vm0 }
   0x8   :  { %472 = vrot.lane.b32.xlu1 %v3174_v5, %s3117_s29  ;;  %63 = vrot.lane.b32.xlu0 %v3184_v8, %s3116_s27 }
   0x9   :  { %2735 = vmatmul.mubr.msk.bf16.vlgmr.msra.gmra.mrb[0].mxu0 %vm79_vm1, %v3193_v10 }
   0xa   :  { %446 = vmatprep.mubr.bf16.mxu0 %v3115_v3 }
   0xc   :  { %476 = vrot.lane.b32.xlu1 %v3172_v4, %s3117_s29  ;;  %474 = vrot.lane.b32.xlu0 %v3184_v8, %s3117_s29 }
  0x10   :  { %69 = vrot.lane.b32.xlu1 %v3176_v6, %s3116_s27  ;;  %67 = vrot.lane.b32.xlu0 %v3207_v12, %s3116_s27 }
  0x11   :  { %2736 = vmatmul.mubr.msk.bf16.gmra.mrb[4].mxu0 %vm79_vm1, %v3203_v11 }
  0x12   :  { %546 = vmatprep.mubr.bf16.mxu0 %v3115_v3 }
  0x14   :  { %482 = vrot.lane.b32.xlu1 %v3179_v7, %s3117_s29  ;;  %480 = vrot.lane.b32.xlu0 %v3176_v6, %s3117_s29 }
  0x18   :  { %712 = vrot.lane.b32.xlu1 %v3174_v5, %s3118_s8  ;;  %71 = vrot.lane.b32.xlu0 %v3179_v7, %s3116_s27 }
  0x1c   :  { %716 = vrot.lane.b32.xlu1 %v3172_v4, %s3118_s8  ;;  %714 = vrot.lane.b32.xlu0 %v3184_v8, %s3118_s8 }
  0x20   :  { %722 = vrot.lane.b32.xlu1 %v3179_v7, %s3118_s8  ;;  %720 = vrot.lane.b32.xlu0 %v3176_v6, %s3118_s8 }
  0x24   :  { %954 = vrot.lane.b32.xlu1 %v3184_v8, %s3119_s9  ;;  %952 = vrot.lane.b32.xlu0 %v3174_v5, %s3119_s9 }
  0x28   :  { %478 = vrot.lane.b32.xlu1 %v3207_v12, %s3117_s29  ;;  %956 = vrot.lane.b32.xlu0 %v3172_v4, %s3119_s9 }
  0x2c   :  { %960 = vrot.lane.b32.xlu0 %v3176_v6, %s3119_s9  ;;  %962 = vrot.lane.b32.xlu1 %v3179_v7, %s3119_s9 }
  0x30   :  { %718 = vrot.lane.b32.xlu0 %v3207_v12, %s3118_s8  ;;  %1192 = vrot.lane.b32.xlu1 %v3174_v5, %s3120_s10 }
  0x34   :  { %1194 = vrot.lane.b32.xlu0 %v3184_v8, %s3120_s10  ;;  %1196 = vrot.lane.b32.xlu1 %v3172_v4, %s3120_s10 }
  0x38   :  { %958 = vrot.lane.b32.xlu0 %v3207_v12, %s3119_s9  ;;  %1200 = vrot.lane.b32.xlu1 %v3176_v6, %s3120_s10 }
  0x3c   :  { %1198 = vrot.lane.b32.xlu1 %v3207_v12, %s3120_s10  ;;  %1202 = vrot.lane.b32.xlu0 %v3179_v7, %s3120_s10 }
  0x40   :  { %1432 = vrot.lane.b32.xlu0 %v3174_v5, %s3121_s11  ;;  %1434 = vrot.lane.b32.xlu1 %v3184_v8, %s3121_s11 }
  0x44   :  { %1436 = vrot.lane.b32.xlu0 %v3172_v4, %s3121_s11  ;;  %1438 = vrot.lane.b32.xlu1 %v3207_v12, %s3121_s11 }
  0x48   :  { %1440 = vrot.lane.b32.xlu0 %v3176_v6, %s3121_s11  ;;  %1442 = vrot.lane.b32.xlu1 %v3179_v7, %s3121_s11 }
  0x4c   :  { %1676 = vrot.lane.b32.xlu0 %v3172_v4, %s3122_s12  ;;  %1678 = vrot.lane.b32.xlu1 %v3207_v12, %s3122_s12 }
  0x50   :  { %1680 = vrot.lane.b32.xlu0 %v3176_v6, %s3122_s12  ;;  %1672 = vrot.lane.b32.xlu1 %v3174_v5, %s3122_s12 }
  0x54   :  { %1674 = vrot.lane.b32.xlu0 %v3184_v8, %s3122_s12  ;;  %1916 = vrot.lane.b32.xlu1 %v3172_v4, %s3123_s13 }
  0x58   :  { %1918 = vrot.lane.b32.xlu0 %v3207_v12, %s3123_s13  ;;  %1920 = vrot.lane.b32.xlu1 %v3176_v6, %s3123_s13 }
  0x5c   :  { %1682 = vrot.lane.b32.xlu0 %v3179_v7, %s3122_s12  ;;  %1912 = vrot.lane.b32.xlu1 %v3174_v5, %s3123_s13 }
  0x60   :  { %1914 = vrot.lane.b32.xlu0 %v3184_v8, %s3123_s13  ;;  %1922 = vrot.lane.b32.xlu1 %v3179_v7, %s3123_s13 }
  0x76   :  { %v66_v13 = vpop.permute.xlu1 %65  ;;  %v62_v14 = vpop.permute.xlu0 %61 }
  0x7a   :  { %v473_v15 = vpop.permute.xlu1 %472  ;;  %v64_v16 = vpop.permute.xlu0 %63 }
  0x7b   :  { %v75_v17 = vsel %vm73_vm2, %v64_v16, %v66_v13  ;;  %v74_v18 = vsel %vm73_vm2, %v62_v14, %v64_v16 }
  0x7c   :  { %2717 = vmatprep.subr.msk.bf16.mxu1 %vm86_vm0, %v75_v17  ;;  %v88_v19 = vsel %vm86_vm0, %v74_v18, 0 }
  0x7d   :  { %106 = vmatpush1.bf16.msra.mxu1 %v88_v19 }
  0x7e   :  { %v477_v21 = vpop.permute.xlu1 %476  ;;  %v475_v22 = vpop.permute.xlu0 %474 }
  0x7f   :  { %v485_v23 = vsel %vm484_vm3, %v473_v15, %v475_v22  ;;  %v486_v24 = vsel %vm484_vm3, %v475_v22, %v477_v21  ;;  %v3405_v15 = vld [vmem:[%s3782_s0 + $0x48] sm:$0xff]  }
  0x80   :  { %v497_v25 = vsel %vm86_vm0, %v485_v23, 0  ;;  %2718 = vmatmul.mubr.msk.bf16.vlgmr.msra.gmra.mrb[0].mxu1 %vm79_vm1, %v3261_v20  ;;  %2743 = vmatprep.subr.msk.bf16.mxu0 %vm86_vm0, %v486_v24 }
  0x81   :  { %515 = vmatpush1.bf16.msra.mxu0 %v497_v25  ;;  %147 = vmatprep.mubr.bf16.mxu1 %v3115_v3 }
  0x82   :  { %v70_v27 = vpop.permute.xlu1 %69  ;;  %v68_v28 = vpop.permute.xlu0 %67 }
  0x83   :  { %v76_v29 = vsel %vm73_vm2, %v66_v13, %v68_v28  ;;  %v77_v30 = vsel %vm73_vm2, %v68_v28, %v70_v27  ;;  %v3106_v28 = vld [vmem:[%s3782_s0 + $0x50] sm:$0xff]  }
  0x84   :  { %v94_v31 = vsel %vm86_vm0, %v76_v29, 0  ;;  %2720 = vmatprep.subr.msk.bf16.mxu1 %vm86_vm0, %v77_v30  ;;  %2744 = vmatmul.mubr.msk.bf16.vlgmr.msra.gmra.mrb[8].mxu0 %vm79_vm1, %v3272_v26 }
  0x85   :  { %159 = vmatpush1.bf16.msra.mxu1 %v94_v31  ;;  %556 = vmatprep.mubr.bf16.mxu0 %v3115_v3 }
  0x86   :  { %v483_v33 = vpop.permute.xlu1 %482  ;;  %v3285_v34 = vpop.permute.xlu0 %480 }
  0x87   :  { %v489_v35 = vsel %vm484_vm3, %v3285_v34, %v483_v33  ;;  %2749 = vmatprep.subr.msk.bf16.mxu0 %vm86_vm0, %v483_v33  ;;  %v3107_v33 = vld [vmem:[%s3782_s0 + $0x58] sm:$0xff]  }
  0x88   :  { %v509_v36 = vsel %vm86_vm0, %v489_v35, 0  ;;  %2719 = vmatmul.mubr.msk.bf16.gmra.mrb[4].mxu1 %vm79_vm1, %v3100_v32 }
  0x89   :  { %190 = vmatprep.mubr.bf16.mxu1 %v3115_v3  ;;  %621 = vmatpush1.bf16.msra.mxu0 %v509_v36 }
  0x8a   :  { %v713_v38 = vpop.permute.xlu1 %712  ;;  %v72_v39 = vpop.permute.xlu0 %71 }
  0x8b   :  { %2723 = vmatprep.subr.msk.bf16.mxu1 %vm86_vm0, %v72_v39  ;;  %v78_v40 = vsel %vm73_vm2, %v70_v27, %v72_v39 }
  0x8c   :  { %2745 = vmatmul.mubr.msk.bf16.gmra.mrb[12].mxu0 %vm79_vm1, %v3295_v37  ;;  %v100_v45 = vsel %vm86_vm0, %v78_v40, 0 }
  0x8d   :  { %652 = vmatprep.mubr.bf16.mxu0 %v3115_v3 }
  0x8e   :  { %v717_v41 = vpop.permute.xlu1 %716  ;;  %v715_v42 = vpop.permute.xlu0 %714 }
  0x8f   :  { %v725_v43 = vsel %vm724_vm4, %v713_v38, %v715_v42  ;;  %v726_v44 = vsel %vm724_vm4, %v715_v42, %v717_v41 }
  0x90   :  { %2721 = vmatmul.mubr.msk.bf16.vlgmr.msra.gmra.mrb[8].mxu1 %vm79_vm1, %v3261_v20  ;;  %2758 = vmatprep.subr.msk.bf16.mxu0 %vm86_vm0, %v726_v44  ;;  %v737_v46 = vsel %vm86_vm0, %v725_v43, 0 }
  0x91   :  { %212 = vmatpush1.bf16.msra.mxu1 %v100_v45  ;;  %200 = vmatprep.mubr.bf16.mxu1 %v3115_v3 }
  0x92   :  { %v723_v47 = vpop.permute.xlu1 %722  ;;  %v721_v48 = vpop.permute.xlu0 %720  ;;  %2728 = vmatprep.subr.msk.bf16.mxu1 %vm86_vm0, %v3184_v8  ;;  %v3386_v8 = vld [vmem:[%s3782_s0 + $0x40] sm:$0xff]  }
  0x93   :  { %v729_v56 = vsel %vm724_vm4, %v721_v48, %v723_v47 }
  0x94   :  { %2750 = vmatmul.mubr.msk.bf16.vlgmr.msra.gmra.mrb[0].mxu0 %vm79_vm1, %v3272_v26  ;;  %v749_v58 = vsel %vm86_vm0, %v729_v56, 0  ;;  %v3109_v56 = vld [vmem:[%s3782_s0 + $0x68] sm:$0xff]  }
  0x95   :  { %662 = vmatprep.mubr.bf16.mxu0 %v3115_v3  ;;  %755 = vmatpush1.bf16.msra.mxu0 %v737_v46 }
  0x96   :  { %v955_v49 = vpop.permute.xlu1 %954  ;;  %v953_v50 = vpop.permute.xlu0 %952  ;;  %2764 = vmatprep.subr.msk.bf16.mxu0 %vm86_vm0, %v723_v47 }
  0x97   :  { %v965_v0 = vsel %vm964_vm5, %v953_v50, %v955_v49 }
  0x98   :  { %2722 = vmatmul.mubr.msk.bf16.gmra.mrb[12].mxu1 %vm79_vm1, %v3100_v32  ;;  %v977_v2 = vsel %vm86_vm0, %v965_v0, 0  ;;  %v3124_v0 = vmov 1983009808  }
  0x99   :  { %243 = vmatprep.mubr.bf16.mxu1 %v3115_v3 }
  0x9a   :  { %v479_v51 = vpop.permute.xlu1 %478  ;;  %v3319_v52 = vpop.permute.xlu0 %956 }
  0x9b   :  { %v487_v53 = vsel %vm484_vm3, %v477_v21, %v479_v51  ;;  %v966_v60 = vsel %vm964_vm5, %v955_v49, %v3319_v52  ;;  %v488_v1 = vsel %vm484_vm3, %v479_v51, %v3285_v34  ;;  %v3108_v49 = vld [vmem:[%s3782_s0 + $0x60] sm:$0xff]  }
  0x9c   :  { %2751 = vmatmul.mubr.msk.bf16.gmra.mrb[4].mxu0 %vm79_vm1, %v3295_v37  ;;  %v503_v7 = vsel %vm86_vm0, %v487_v53, 0 }
  0x9d   :  { %786 = vmatprep.mubr.bf16.mxu0 %v3115_v3 }
  0x9e   :  { %v3325_v54 = vpop.permute.xlu0 %960  ;;  %v963_v5 = vpop.permute.xlu1 %962 }
  0x9f   :  { %v969_v6 = vsel %vm964_vm5, %v3325_v54, %v963_v5 }
  0xa0   :  { %2724 = vmatmul.mubr.msk.bf16.vlgmr.msra.gmra.mrb[16].mxu1 %vm79_vm1, %v3261_v20  ;;  %v989_v14 = vsel %vm86_vm0, %v969_v6, 0 }
  0xa1   :  { %299 = vmatpush1.bf16.msra.mxu1 %v281_v55  ;;  %253 = vmatprep.mubr.bf16.mxu1 %v3115_v3  ;;  %v2138_v55 = vld [vmem:[%s3783_s1 + $0x8] sm:$0xff] }
  0xa2   :  { %v719_v59 = vpop.permute.xlu0 %718  ;;  %2731 = vmatprep.subr.msk.bf16.mxu1 %vm86_vm0, %v3207_v12  ;;  %v1193_v4 = vpop.permute.xlu1 %1192  ;;  %2148 = vperm.xlu1 %3089, %v2138_v55  }
  0xa3   :  { %v727_v61 = vsel %vm724_vm4, %v717_v41, %v719_v59  ;;  %v728_v12 = vsel %vm724_vm4, %v719_v59, %v721_v48  ;;  %v2139_v59 = vld [vmem:[%s3783_s1 + $0x10] sm:$0xff] }
  0xa4   :  { %2759 = vmatmul.mubr.msk.bf16.vlgmr.msra.gmra.mrb[8].mxu0 %vm79_vm1, %v3335_v57 }
  0xa5   :  { %796 = vmatprep.mubr.bf16.mxu0 %v3115_v3  ;;  %861 = vmatpush1.bf16.msra.mxu0 %v749_v58 }
  0xa6   :  { %2773 = vmatprep.subr.msk.bf16.mxu0 %vm86_vm0, %v966_v60  ;;  %v3388_v9 = vpop.permute.xlu1 %1196  ;;  %v1195_v13 = vpop.permute.xlu0 %1194  ;;  %2153 = vperm.xlu1 %3089, %v2139_v59   ;;  %v2140_v60 = vld [vmem:[%s3783_s1 + $0x18] sm:$0xff] }
  0xa7   :  { %v1205_v18 = vsel %vm1204_vm6, %v1193_v4, %v1195_v13 }
  0xa8   :  { %2725 = vmatmul.mubr.msk.bf16.gmra.mrb[20].mxu1 %vm79_vm1, %v3100_v32  ;;  %v1217_v19 = vsel %vm86_vm0, %v1205_v18, 0 }
  0xa9   :  { %330 = vmatprep.mubr.bf16.mxu1 %v3115_v3 }
  0xaa   :  { %v959_v16 = vpop.permute.xlu0 %958  ;;  %v1201_v21 = vpop.permute.xlu1 %1200 }
  0xab   :  { %v968_v17 = vsel %vm964_vm5, %v959_v16, %v3325_v54  ;;  %v967_v24 = vsel %vm964_vm5, %v3319_v52, %v959_v16  ;;  %v2137_v54 = vld [vmem:[%s3783_s1] sm:$0xff] }
  0xac   :  { %2760 = vmatmul.mubr.msk.bf16.gmra.mrb[12].mxu0 %vm79_vm1, %v3352_v62  ;;  %v983_v27 = vsel %vm86_vm0, %v967_v24, 0  ;;  %2143 = vperm.xlu0 %3088, %v2137_v54   ;;  %v3112_v24 = vld [vmem:[%s3782_s0 + $0x80] sm:$0xff]  }
  0xad   :  { %892 = vmatprep.mubr.bf16.mxu0 %v3115_v3 }
  0xae   :  { %v1203_v20 = vpop.permute.xlu0 %1202  ;;  %v1199_v23 = vpop.permute.xlu1 %1198 }
  0xaf   :  { %v1208_v25 = vsel %vm1204_vm6, %v1199_v23, %v1201_v21  ;;  %v1207_v36 = vsel %vm1204_vm6, %v3388_v9, %v1199_v23 }
  0xb0   :  { %2729 = vmatmul.mubr.msk.bf16.vlgmr.msra.gmra.mrb[0].mxu1 %vm79_vm1, %v3193_v10  ;;  %v1223_v39 = vsel %vm86_vm0, %v1207_v36, 0  ;;  %2158 = vperm.xlu0 %3088, %v2140_v60   ;;  %v2186_v36 = vld [vmem:[%s3785_s4 + $0x8] sm:$0xff] }
  0xb1   :  { %352 = vmatpush1.bf16.msra.mxu1 %v287_v63  ;;  %340 = vmatprep.mubr.bf16.mxu1 %v3115_v3 }
  0xb2   :  { %2746 = vmatprep.subr.msk.bf16.mxu1 %vm86_vm0, %v488_v1  ;;  %v1433_v22 = vpop.permute.xlu0 %1432  ;;  %v1435_v29 = vpop.permute.xlu1 %1434  ;;  %v2195_v1 = vunpack.c.l.s4 %v3124_v0 }
  0xb4   :  { %2765 = vmatmul.mubr.msk.bf16.vlgmr.msra.gmra.mrb[0].mxu0 %vm79_vm1, %v3335_v57 }
  0xb5   :  { %902 = vmatprep.mubr.bf16.mxu0 %v3115_v3  ;;  %995 = vmatpush1.bf16.msra.mxu0 %v977_v2  ;;  %v2197_v2 = vlaneseq }
  0xb6   :  { %2779 = vmatprep.subr.msk.bf16.mxu0 %vm86_vm0, %v963_v5  ;;  %v1437_v30 = vpop.permute.xlu0 %1436  ;;  %v1439_v34 = vpop.permute.xlu1 %1438 }
  0xb7   :  { %v1446_v32 = vsel %vm1444_vm7, %v1435_v29, %v1437_v30  ;;  %v1447_v43 = vsel %vm1444_vm7, %v1437_v30, %v1439_v34 }
  0xb8   :  { %2730 = vmatmul.mubr.msk.bf16.gmra.mrb[4].mxu1 %vm79_vm1, %v3203_v11  ;;  %v1463_v46 = vsel %vm86_vm0, %v1447_v43, 0 }
  0xb9   :  { %383 = vmatprep.mubr.bf16.mxu1 %v3115_v3 }
  0xba   :  { %v1441_v35 = vpop.permute.xlu0 %1440  ;;  %v1443_v41 = vpop.permute.xlu1 %1442 }
  0xbb   :  { %v1448_v38 = vsel %vm1444_vm7, %v1439_v34, %v1441_v35  ;;  %v1449_v47 = vsel %vm1444_vm7, %v1441_v35, %v1443_v41 }
  0xbc   :  { %2766 = vmatmul.mubr.msk.bf16.gmra.mrb[4].mxu0 %vm79_vm1, %v3352_v62  ;;  %v1469_v50 = vsel %vm86_vm0, %v1449_v47, 0 }
  0xbd   :  { %1026 = vmatprep.mubr.bf16.mxu0 %v3115_v3 }
  0xbe   :  { %v1677_v42 = vpop.permute.xlu0 %1676  ;;  %v1679_v45 = vpop.permute.xlu1 %1678 }
  0xbf   :  { %v1687_v58 = vsel %vm1684_vm8, %v1677_v42, %v1679_v45 }
  0xc0   :  { %2732 = vmatmul.mubr.msk.bf16.vlgmr.msra.gmra.mrb[8].mxu1 %vm79_vm1, %v3193_v10  ;;  %v1206_v10 = vsel %vm1204_vm6, %v1195_v13, %v3388_v9  ;;  %v2189_v13 = vld [vmem:[%s3784_s5] sm:$0xff] }
  0xc1   :  { %568 = vmatpush1.bf16.msra.mxu1 %v503_v7  ;;  %393 = vmatprep.mubr.bf16.mxu1 %v3115_v3  ;;  %v2196_v7 = vunpack.c.0.s8 %v2195_v1 }
  0xc2   :  { %2761 = vmatprep.subr.msk.bf16.mxu1 %vm86_vm0, %v728_v12  ;;  %v3473_v44 = vpop.permute.xlu0 %1680  ;;  %v1673_v52 = vpop.permute.xlu1 %1672 }
  0xc3   :  { %v1688_v48 = vsel %vm1684_vm8, %v1679_v45, %v3473_v44 }
  0xc4   :  { %2774 = vmatmul.mubr.msk.bf16.vlgmr.msra.gmra.mrb[8].mxu0 %vm79_vm1, %v3386_v8 }
  0xc5   :  { %1036 = vmatprep.mubr.bf16.mxu0 %v3115_v3  ;;  %1101 = vmatpush1.bf16.msra.mxu0 %v989_v14 }
  0xc6   :  { %2788 = vmatprep.subr.msk.bf16.mxu0 %vm86_vm0, %v1206_v10  ;;  %v1675_v51 = vpop.permute.xlu0 %1674 }
  0xc7   :  { %v1686_v53 = vsel %vm1684_vm8, %v1675_v51, %v1677_v42  ;;  %v1685_v5 = vsel %vm1684_vm8, %v1673_v52, %v1675_v51 }
  0xc8   :  { %2733 = vmatmul.mubr.msk.bf16.gmra.mrb[12].mxu1 %vm79_vm1, %v3203_v11  ;;  %v743_v11 = vsel %vm86_vm0, %v727_v61, 0  ;;  %v1703_v61 = vsel %vm86_vm0, %v1687_v58, 0  ;;  %v1697_v6 = vsel %vm86_vm0, %v1685_v5, 0 }
  0xc9   :  { %599 = vmatprep.mubr.bf16.mxu1 %v3115_v3 }
  0xcc   :  { %2775 = vmatmul.mubr.msk.bf16.gmra.mrb[12].mxu0 %vm79_vm1, %v3405_v15 }
  0xcd   :  { %1132 = vmatprep.mubr.bf16.mxu0 %v3115_v3 }
  0xd0   :  { %2747 = vmatmul.mubr.msk.bf16.vlgmr.msra.gmra.mrb[8].mxu1 %vm79_vm1, %v3272_v26  ;;  %v1209_v26 = vsel %vm1204_vm6, %v1201_v21, %v1203_v20  ;;  %v3111_v21 = vld [vmem:[%s3782_s0 + $0x78] sm:$0xff]  }
  0xd1   :  { %808 = vmatpush1.bf16.msra.mxu1 %v743_v11  ;;  %609 = vmatprep.mubr.bf16.mxu1 %v3115_v3  ;;  %v1229_v31 = vsel %vm86_vm0, %v1209_v26, 0 }
  0xd2   :  { %2776 = vmatprep.subr.msk.bf16.mxu1 %vm86_vm0, %v968_v17 }
  0xd4   :  { %2780 = vmatmul.mubr.msk.bf16.vlgmr.msra.gmra.mrb[0].mxu0 %vm79_vm1, %v3386_v8 }
  0xd5   :  { %1142 = vmatprep.mubr.bf16.mxu0 %v3115_v3  ;;  %1235 = vmatpush1.bf16.msra.mxu0 %v1217_v19 }
  0xd6   :  { %2794 = vmatprep.subr.msk.bf16.mxu0 %vm86_vm0, %v1203_v20 }
  0xd8   :  { %2748 = vmatmul.mubr.msk.bf16.gmra.mrb[12].mxu1 %vm79_vm1, %v3295_v37  ;;  %v1445_v37 = vsel %vm1444_vm7, %v1433_v22, %v1435_v29  ;;  %v2193_v22 = vcombine.high %v2189_v13, %v2189_v13  ;;  %v3113_v29 = vld [vmem:[%s3782_s0 + $0x88] sm:$0xff]  }
  0xd9   :  { %839 = vmatprep.mubr.bf16.mxu1 %v3115_v3  ;;  %v1457_v40 = vsel %vm86_vm0, %v1445_v37, 0 }
  0xdc   :  { %2781 = vmatmul.mubr.msk.bf16.gmra.mrb[4].mxu0 %vm79_vm1, %v3405_v15 }
  0xdd   :  { %1266 = vmatprep.mubr.bf16.mxu0 %v3115_v3 }
  0xe0   :  { %2762 = vmatmul.mubr.msk.bf16.vlgmr.msra.gmra.mrb[8].mxu1 %vm79_vm1, %v3335_v57  ;;  %v1917_v57 = vpop.permute.xlu1 %1916 }
  0xe1   :  { %1048 = vmatpush1.bf16.msra.mxu1 %v983_v27  ;;  %849 = vmatprep.mubr.bf16.mxu1 %v3115_v3 }
  0xe2   :  { %2791 = vmatprep.subr.msk.bf16.mxu1 %vm86_vm0, %v1208_v25 }
  0xe4   :  { %2789 = vmatmul.mubr.msk.bf16.vlgmr.msra.gmra.mrb[8].mxu0 %vm79_vm1, %v3106_v28  ;;  %v3512_v63 = vpop.permute.xlu1 %1920 }
  0xe5   :  { %1276 = vmatprep.mubr.bf16.mxu0 %v3115_v3  ;;  %1341 = vmatpush1.bf16.msra.mxu0 %v1229_v31  ;;  %v3125_v31 = vmov 0.0  }
  0xe6   :  { %2803 = vmatprep.subr.msk.bf16.mxu0 %vm86_vm0, %v1446_v32  ;;  %v2842_v32 = vld.sshfl [vmem:[%s3784_s5 + $0x8] sm:$0x33 pattern:$0x76325410] }
  0xe7   :  { %v2217_v34 = vcombine.high %v2842_v32, %v2842_v32 }
  0xe8   :  { %2763 = vmatmul.mubr.msk.bf16.gmra.mrb[12].mxu1 %vm79_vm1, %v3352_v62  ;;  %v1919_v62 = vpop.permute.xlu0 %1918  ;;  %v1913_v25 = vpop.permute.xlu1 %1912 }
  0xe9   :  { %1079 = vmatprep.mubr.bf16.mxu1 %v3115_v3  ;;  %v1928_v4 = vsel %vm1924_vm9, %v1919_v62, %v3512_v63  ;;  %v1927_v10 = vsel %vm1924_vm9, %v1917_v57, %v1919_v62 }
  0xea   :  { %v1943_v16 = vsel %vm86_vm0, %v1927_v10, 0 }
  0xec   :  { %2790 = vmatmul.mubr.msk.bf16.gmra.mrb[12].mxu0 %vm79_vm1, %v3107_v33  ;;  %v1683_v9 = vpop.permute.xlu0 %1682  ;;  %v1923_v30 = vpop.permute.xlu1 %1922 }
  0xed   :  { %1372 = vmatprep.mubr.bf16.mxu0 %v3115_v3  ;;  %v1689_v11 = vsel %vm1684_vm8, %v3473_v44, %v1683_v9  ;;  %v1929_v35 = vsel %vm1924_vm9, %v3512_v63, %v1923_v30 }
  0xee   :  { %v1709_v20 = vsel %vm86_vm0, %v1689_v11, 0  ;;  %v1949_v37 = vsel %vm86_vm0, %v1929_v35, 0 }
  0xf0   :  { %2777 = vmatmul.mubr.msk.bf16.vlgmr.msra.gmra.mrb[8].mxu1 %vm79_vm1, %v3386_v8  ;;  %v3521_v8 = vshrl.u32 %v2197_v2, 7  ;;  %v1915_v18 = vpop.permute.xlu0 %1914 }
  0xf1   :  { %1288 = vmatpush1.bf16.msra.mxu1 %v1223_v39  ;;  %1089 = vmatprep.mubr.bf16.mxu1 %v3115_v3  ;;  %v1926_v19 = vsel %vm1924_vm9, %v1915_v18, %v1917_v57  ;;  %v1925_v27 = vsel %vm1924_vm9, %v1913_v25, %v1915_v18  ;;  %v2188_v39 = vld [vmem:[%s3785_s4 + $0x18] sm:$0xff] }
  0xf2   :  { %2806 = vmatprep.subr.msk.bf16.mxu1 %vm86_vm0, %v1448_v38  ;;  %v2199_v12 = vsub.s32 %v2196_v7, %v3521_v8  ;;  %v2187_v38 = vld [vmem:[%s3785_s4 + $0x10] sm:$0xff] }
  0xf4   :  { %2795 = vmatmul.mubr.msk.bf16.vlgmr.msra.gmra.mrb[0].mxu0 %vm79_vm1, %v3106_v28  ;;  %v2200_v14 = vrot.slane %v2189_v13, %v2199_v12  ;;  %v2207_v23 = vrot.slane %v2193_v22, %v2199_v12  ;;  %v3650_v12 = vld [vmem:[%s3786_s3] sm:$0x3f]  ;;  %v2575_v22 = vsub.s32 3, %v3521_v8 }
  0xf5   :  { %1382 = vmatprep.mubr.bf16.mxu0 %v3115_v3  ;;  %1475 = vmatpush1.bf16.msra.mxu0 %v1457_v40 }
  0xf6   :  { %2809 = vmatprep.subr.msk.bf16.mxu0 %vm86_vm0, %v1443_v41  ;;  %v2208_v17 = vcombine.high %v2200_v14, %v2200_v14  ;;  %v2209_v26 = vcombine.high %v2207_v23, %v2207_v23 }
  0xf8   :  { %2778 = vmatmul.mubr.msk.bf16.gmra.mrb[12].mxu1 %vm79_vm1, %v3405_v15  ;;  %v3110_v15 = vld [vmem:[%s3782_s0 + $0x70] sm:$0xff]  }
  0xf9   :  { %1319 = vmatprep.mubr.bf16.mxu1 %v3115_v3 }
  0xfc   :  { %2796 = vmatmul.mubr.msk.bf16.gmra.mrb[4].mxu0 %vm79_vm1, %v3107_v33 }
  0xfd   :  { %1506 = vmatprep.mubr.bf16.mxu0 %v3115_v3 }
 0x100   :  { %2792 = vmatmul.mubr.msk.bf16.vlgmr.msra.gmra.mrb[8].mxu1 %vm79_vm1, %v3106_v28  ;;  %v1937_v28 = vsel %vm86_vm0, %v1925_v27, 0 }
 0x101   :  { %1528 = vmatpush1.bf16.msra.mxu1 %v1463_v46  ;;  %1329 = vmatprep.mubr.bf16.mxu1 %v3115_v3 }
 0x102   :  { %2821 = vmatprep.subr.msk.bf16.mxu1 %vm86_vm0, %v1688_v48 }
 0x104   :  { %2804 = vmatmul.mubr.msk.bf16.vlgmr.msra.gmra.mrb[8].mxu0 %vm79_vm1, %v3108_v49 }
 0x105   :  { %1581 = vmatpush1.bf16.msra.mxu0 %v1469_v50  ;;  %1516 = vmatprep.mubr.bf16.mxu0 %v3115_v3 }
 0x106   :  { %2818 = vmatprep.subr.msk.bf16.mxu0 %vm86_vm0, %v1686_v53 }
 0x108   :  { %2793 = vmatmul.mubr.msk.bf16.gmra.mrb[12].mxu1 %vm79_vm1, %v3107_v33  ;;  %v2185_v33 = vld [vmem:[%s3785_s4] sm:$0xff] }
 0x109   :  { %1559 = vmatprep.mubr.bf16.mxu1 %v3115_v3 }
 0x10c   :  { %2805 = vmatmul.mubr.msk.bf16.gmra.mrb[12].mxu0 %vm79_vm1, %v3109_v56 }
 0x10d   :  { %1612 = vmatprep.mubr.bf16.mxu0 %v3115_v3 }
 0x110   :  { %2807 = vmatmul.mubr.msk.bf16.vlgmr.msra.gmra.mrb[8].mxu1 %vm79_vm1, %v3108_v49 }
 0x111   :  { %1768 = vmatpush1.bf16.msra.mxu1 %v1703_v61  ;;  %1569 = vmatprep.mubr.bf16.mxu1 %v3115_v3 }
 0x112   :  { %2836 = vmatprep.subr.msk.bf16.mxu1 %vm86_vm0, %v1928_v4  ;;  %v2563_v4 = vsub.s32 0, %v3521_v8 }
 0x114   :  { %2810 = vmatmul.mubr.msk.bf16.vlgmr.msra.gmra.mrb[0].mxu0 %vm79_vm1, %v3108_v49 }
 0x115   :  { %1622 = vmatprep.mubr.bf16.mxu0 %v3115_v3  ;;  %1715 = vmatpush1.bf16.msra.mxu0 %v1697_v6 }
 0x116   :  { %2824 = vmatprep.subr.msk.bf16.mxu0 %vm86_vm0, %v1683_v9 }
 0x118   :  { %2808 = vmatmul.mubr.msk.bf16.gmra.mrb[12].mxu1 %vm79_vm1, %v3109_v56 }
 0x119   :  { %1799 = vmatprep.mubr.bf16.mxu1 %v3115_v3 }
 0x11c   :  { %2811 = vmatmul.mubr.msk.bf16.gmra.mrb[4].mxu0 %vm79_vm1, %v3109_v56 }
 0x11d   :  { %1746 = vmatprep.mubr.bf16.mxu0 %v3115_v3 }
 0x120   :  { %2822 = vmatmul.mubr.msk.bf16.vlgmr.msra.gmra.mrb[8].mxu1 %vm79_vm1, %v3110_v15 }
 0x121   :  { %2008 = vmatpush1.bf16.msra.mxu1 %v1943_v16  ;;  %1809 = vmatprep.mubr.bf16.mxu1 %v3115_v3  ;;  %v3654_v18 = vpop.permute.xlu1 %2148 }
 0x122   :  { %2843 = vmatprep.subr.msk.mxu1 %vm2231_vm10, %v2208_v17 }
 0x124   :  { %2819 = vmatmul.mubr.msk.bf16.vlgmr.msra.gmra.mrb[8].mxu0 %vm79_vm1, %v3110_v15 }
 0x125   :  { %1821 = vmatpush1.bf16.msra.mxu0 %v1709_v20  ;;  %1756 = vmatprep.mubr.bf16.mxu0 %v3115_v3 }
 0x126   :  { %2833 = vmatprep.subr.msk.bf16.mxu0 %vm86_vm0, %v1926_v19 }
 0x128   :  { %2823 = vmatmul.mubr.msk.bf16.gmra.mrb[12].mxu1 %vm79_vm1, %v3111_v21 }
 0x129   :  { %2039 = vmatprep.mubr.bf16.mxu1 %v3115_v3 }
 0x12b   :  { %v3645_v9 = vpop.permute.xlu0 %2143 }
 0x12c   :  { %2820 = vmatmul.mubr.msk.bf16.gmra.mrb[12].mxu0 %vm79_vm1, %v3111_v21 }
 0x12d   :  { %1852 = vmatprep.mubr.bf16.mxu0 %v3115_v3 }
 0x130   :  { %2837 = vmatmul.mubr.msk.bf16.vlgmr.msra.gmra.mrb[8].mxu1 %vm79_vm1, %v3112_v24 }
 0x131   :  { %2844 = vmatpush1.msk.msra.mxu1 %vm2231_vm10, %v2200_v14  ;;  %2049 = vmatprep.mubr.bf16.mxu1 %v3115_v3  ;;  %v2567_v14 = vsub.s32 1, %v3521_v8 }
 0x132   :  { %2849 = vmatprep.subr.msk.mxu1 %vm2231_vm10, %v2209_v26 }
 0x134   :  { %2825 = vmatmul.mubr.msk.bf16.vlgmr.msra.gmra.mrb[0].mxu0 %vm79_vm1, %v3110_v15 }
 0x135   :  { %1862 = vmatprep.mubr.bf16.mxu0 %v3115_v3  ;;  %1955 = vmatpush1.bf16.msra.mxu0 %v1937_v28  ;;  %v3664_v28 = vrot.slane %v3650_v12, %v2567_v14  ;;  %v3683_v14 = vpop.permute.xlu0 %2158 }
 0x136   :  { %2839 = vmatprep.subr.msk.bf16.mxu0 %vm86_vm0, %v1923_v30 }
 0x138   :  { %2838 = vmatmul.mubr.msk.bf16.gmra.mrb[12].mxu1 %vm79_vm1, %v3113_v29 }
 0x139   :  { %2308 = vmatprep.mubr.f32.mxu1 %v3125_v31 }
 0x13c   :  { %2826 = vmatmul.mubr.msk.bf16.gmra.mrb[4].mxu0 %vm79_vm1, %v3111_v21  ;;  %v2571_v21 = vsub.s32 2, %v3521_v8 }
 0x13d   :  { %1986 = vmatprep.mubr.bf16.mxu0 %v3115_v3 }
 0x140   :  { %2845 = vmatmul.mubr.msk.f32.vlgmr.msra.gmra.mrb[24].mxu1 %vm2218_vm11, %v2185_v33 }
 0x141   :  { %2314 = vmatprep.mubr.f32.mxu1 %v3125_v31  ;;  %2850 = vmatpush1.msk.msra.mxu1 %vm2231_vm10, %v2207_v23 }
 0x142   :  { %2855 = vmatprep.subr.msk.mxu1 %vm2231_vm10, %v2217_v34 }
 0x144   :  { %2834 = vmatmul.mubr.msk.bf16.vlgmr.msra.gmra.mrb[8].mxu0 %vm79_vm1, %v3112_v24  ;;  %2846 = vmatmul.mubr.msk.f32.gmra.mrb[26].mxu1 %vm2218_vm11, %v2186_v36 }
 0x145   :  { %2061 = vmatpush1.bf16.msra.mxu0 %v1949_v37  ;;  %2320 = vmatprep.mubr.f32.mxu1 %v3125_v31  ;;  %v3671_v37 = vrot.slane %v3650_v12, %v2575_v22 }
 0x146   :  { %1996 = vmatprep.mubr.bf16.mxu0 %v3115_v3 }
 0x148   :  { %2847 = vmatmul.mubr.msk.f32.gmra.mrb[28].mxu1 %vm2218_vm11, %v2187_v38 }
 0x149   :  { %2326 = vmatprep.mubr.f32.mxu1 %v3125_v31 }
 0x14c   :  { %2835 = vmatmul.mubr.msk.bf16.gmra.mrb[12].mxu0 %vm79_vm1, %v3113_v29  ;;  %2848 = vmatmul.mubr.msk.f32.gmra.mrb[30].mxu1 %vm2218_vm11, %v2188_v39 }
 0x14d   :  { %2397 = vmatprep.mubr.f32.mxu1 %v3125_v31  ;;  %2092 = vmatprep.mubr.bf16.mxu0 %v3115_v3 }
 0x150   :  { %2851 = vmatmul.mubr.msk.f32.vlgmr.msra.gmra.mrb[32].mxu1 %vm2218_vm11, %v2185_v33 }
 0x151   :  { %2403 = vmatprep.mubr.f32.mxu1 %v3125_v31  ;;  %2856 = vmatpush1.msk.msra.mxu1 %vm2231_vm10, %v2842_v32 }
 0x154   :  { %2840 = vmatmul.mubr.msk.bf16.vlgmr.msra.gmra.mrb[0].mxu0 %vm79_vm1, %v3112_v24  ;;  %2852 = vmatmul.mubr.msk.f32.gmra.mrb[34].mxu1 %vm2218_vm11, %v2186_v36  ;;  %v3660_v24 = vrot.slane %v3650_v12, %v2563_v4 }
 0x155   :  { %2409 = vmatprep.mubr.f32.mxu1 %v3125_v31  ;;  %2102 = vmatprep.mubr.bf16.mxu0 %v3115_v3 }
 0x158   :  { %2853 = vmatmul.mubr.msk.f32.gmra.mrb[36].mxu1 %vm2218_vm11, %v2187_v38 }
 0x159   :  { %2415 = vmatprep.mubr.f32.mxu1 %v3125_v31 }
 0x15c   :  { %2841 = vmatmul.mubr.msk.bf16.gmra.mrb[4].mxu0 %vm79_vm1, %v3113_v29  ;;  %2854 = vmatmul.mubr.msk.f32.gmra.mrb[38].mxu1 %vm2218_vm11, %v2188_v39 }
 0x15d   :  { %2486 = vmatprep.mubr.f32.mxu1 %v3125_v31 }
 0x160   :  { %2857 = vmatmul.mubr.msk.f32.vlgmr.msra.gmra.mrb[40].mxu1 %vm2218_vm11, %v2185_v33 }
 0x161   :  { %2492 = vmatprep.mubr.f32.mxu1 %v3125_v31 }
 0x164   :  { %2858 = vmatmul.mubr.msk.f32.gmra.mrb[42].mxu1 %vm2218_vm11, %v2186_v36  ;;  %v3668_v36 = vrot.slane %v3650_v12, %v2571_v21 }
 0x165   :  { %2498 = vmatprep.mubr.f32.mxu1 %v3125_v31 }
 0x168   :  { %2859 = vmatmul.mubr.msk.f32.gmra.mrb[44].mxu1 %vm2218_vm11, %v2187_v38 }
 0x169   :  { %2504 = vmatprep.mubr.f32.mxu1 %v3125_v31 }
 0x16c   :  { %2860 = vmatmul.mubr.msk.f32.gmra.mrb[46].mxu1 %vm2218_vm11, %v2188_v39 }
 0x173   :  { %v3614_v3 = vpop.f32.mrb[16].mxu1 }
 0x174   :  { %v3616_v40 = vpop.f32.mrb[17].mxu1 }
 0x175   :  { %v3618_v41 = vpop.f32.mrb[18].mxu1 }
 0x176   :  { %v3620_v42 = vpop.f32.mrb[19].mxu1 }
 0x17b   :  { %v3622_v43 = vpop.f32.mrb[20].mxu1 }
 0x17c   :  { %v3624_v44 = vpop.f32.mrb[21].mxu1 }
 0x17d   :  { %v3626_v45 = vpop.f32.mrb[22].mxu1 }
 0x17e   :  { %v3628_v46 = vpop.f32.mrb[23].mxu1 }
 0x183   :  { %v332_v47 = vpop.f32.mrb[0].mxu1 }
 0x184   :  { %v334_v48 = vpop.f32.mrb[1].mxu1 }
 0x185   :  { %v336_v49 = vpop.f32.mrb[2].mxu1 }
 0x186   :  { %v338_v50 = vpop.f32.mrb[3].mxu1 }
 0x18b   :  { %v342_v51 = vpop.f32.mrb[4].mxu1 }
 0x18c   :  { %v344_v52 = vpop.f32.mrb[5].mxu1 }
 0x18d   :  { %v3630_v53 = vpop.f32.mrb[6].mxu1 }
 0x18e   :  { %v3632_v54 = vpop.f32.mrb[7].mxu1 }
 0x203   :  { %v2041_v55 = vpop.f32.mrb[8].mxu1 }
 0x204   :  { %v2043_v56 = vpop.f32.mrb[9].mxu1  ;;  %v2163_v38 = vadd.f32 %v3645_v9, %v2041_v55 }
 0x205   :  { %v2045_v57 = vpop.f32.mrb[10].mxu1 }
 0x206   :  { %v3634_v58 = vpop.f32.mrb[11].mxu1 }
 0x20b   :  { %v3636_v59 = vpop.f32.mrb[12].mxu1 }
 0x20c   :  { %v3638_v60 = vpop.f32.mrb[13].mxu1 }
 0x20d   :  { %v3640_v61 = vpop.f32.mrb[14].mxu1 }
 0x20e   :  { %v3642_v62 = vpop.f32.mrb[15].mxu1 }
 0x213   :  { %v2310_v63 = vpop.f32.mrb[24].mxu1 }
 0x214   :  { %v2312_v0 = vpop.f32.mrb[25].mxu1 }
 0x217   :  { %v1988_v1 = vpop.f32.mrb[8].mxu0  ;;  %v2316_v2 = vpop.f32.mrb[26].mxu1 }
 0x218   :  { %v2885_v5 = vadd.f32 %v1988_v1, %v332_v47  ;;  %v1990_v6 = vpop.f32.mrb[9].mxu0  ;;  %v2318_v7 = vpop.f32.mrb[27].mxu1 }
 0x219   :  { %v2886_v13 = vadd.f32 %v1990_v6, %v334_v48  ;;  %v1992_v10 = vpop.f32.mrb[10].mxu0  ;;  %v2169_v6 = vadd.f32 %v3654_v18, %v2045_v57  ;;  %v2170_v57 = vadd.f32 %v3654_v18, %v3634_v58 }
 0x21a   :  { %v2161_v15 = vadd.f32 %v2885_v5, %v3645_v9  ;;  %v2887_v16 = vadd.f32 %v1992_v10, %v336_v49  ;;  %v1994_v17 = vpop.f32.mrb[11].mxu0 }
 0x21b   :  { %v2162_v11 = vadd.f32 %v2886_v13, %v3645_v9  ;;  %v2888_v19 = vadd.f32 %v1994_v17, %v338_v50  ;;  %v2322_v20 = vpop.f32.mrb[28].mxu1 }
 0x21c   :  { %v2511_v23 = vadd.f32 %v2310_v63, %v2161_v15  ;;  %v2167_v25 = vadd.f32 %v2887_v16, %v3654_v18  ;;  %v2324_v26 = vpop.f32.mrb[29].mxu1  ;;  %v2164_v63 = vadd.f32 %v3645_v9, %v2043_v56 }
 0x21d   :  { %v2512_v27 = vadd.f32 %v2312_v0, %v2162_v11  ;;  %v2168_v29 = vadd.f32 %v2888_v19, %v3654_v18  ;;  %v3676_v0 = vpop.permute.xlu1 %2153 }
 0x21e   :  { %v2535_v30 = vmax.f32 %v2511_v23, 0.0  ;;  %v2517_v31 = vadd.f32 %v2316_v2, %v2167_v25 }
 0x21f   :  { %v2536_v32 = vmax.f32 %v2512_v27, 0.0  ;;  %v2518_v33 = vadd.f32 %v2318_v7, %v2168_v29  ;;  %v1998_v34 = vpop.f32.mrb[12].mxu0  ;;  %v2328_v35 = vpop.f32.mrb[30].mxu1 }
 0x220   :  { %v2591_v39 = vmul.f32 %v3660_v24, %v2535_v30  ;;  %v2541_v47 = vmax.f32 %v2517_v31, 0.0  ;;  %v2889_v48 = vadd.f32 %v1998_v34, %v342_v51  ;;  %v2000_v49 = vpop.f32.mrb[13].mxu0  ;;  %v2330_v50 = vpop.f32.mrb[31].mxu1 }
 0x221   :  { %v2592_v1 = vmul.f32 %v3664_v28, %v2536_v32  ;;  %v2542_v2 = vmax.f32 %v2518_v33, 0.0  ;;  %v2890_v5 = vadd.f32 %v2000_v49, %v344_v52  ;;  %v2002_v4 = vpop.f32.mrb[14].mxu0 }
 0x222   :  { %v2597_v7 = vmul.f32 %v3660_v24, %v2541_v47  ;;  %v2173_v55 = vadd.f32 %v2889_v48, %v3676_v0  ;;  %v2891_v13 = vadd.f32 %v2002_v4, %v3630_v53  ;;  %v2004_v51 = vpop.f32.mrb[15].mxu0 }
 0x223   :  { %v2873_v10 = vpack.c.bf16 %v2592_v1, %v2591_v39  ;;  %v2598_v56 = vmul.f32 %v3664_v28, %v2542_v2  ;;  %v2174_v15 = vadd.f32 %v2890_v5, %v3676_v0  ;;  %v2892_v16 = vadd.f32 %v2004_v51, %v3632_v54  ;;  %v2399_v52 = vpop.f32.mrb[32].mxu1 }
 0x224   :  { %v2523_v17 = vadd.f32 %v2322_v20, %v2173_v55  ;;  %v2179_v11 = vadd.f32 %v2891_v13, %v3683_v14  ;;  %v2513_v19 = vadd.f32 %v2399_v52, %v2163_v38  ;;  %v2401_v21 = vpop.f32.mrb[33].mxu1  ;;  %v2175_v54 = vadd.f32 %v3676_v0, %v3636_v59 }
 0x225   :  { %2687 = vst [vmem:[%s3787_s6] sm:$0xff] %v2873_v10  ;;  %v2876_v53 = vpack.c.bf16 %v2598_v56, %v2597_v7  ;;  %v2524_v22 = vadd.f32 %v2324_v26, %v2174_v15  ;;  %v2180_v23 = vadd.f32 %v2892_v16, %v3683_v14  ;;  %v2514_v25 = vadd.f32 %v2401_v21, %v2164_v63 }
 0x226   :  { %v2547_v27 = vmax.f32 %v2523_v17, 0.0  ;;  %v2529_v29 = vadd.f32 %v2328_v35, %v2179_v11  ;;  %v2537_v58 = vmax.f32 %v2513_v19, 0.0  ;;  %v2176_v20 = vadd.f32 %v3676_v0, %v3638_v60 }
 0x227   :  { %2692 = vst [vmem:[%s3787_s6 + $0x18] sm:$0xff] %v2876_v53  ;;  %v2548_v30 = vmax.f32 %v2524_v22, 0.0  ;;  %v2530_v31 = vadd.f32 %v2330_v50, %v2180_v23  ;;  %v2538_v32 = vmax.f32 %v2514_v25, 0.0  ;;  %v2094_v26 = vpop.f32.mrb[0].mxu0  ;;  %v2405_v33 = vpop.f32.mrb[34].mxu1  ;;  %v2579_v21 = vsub.s32 4, %v3521_v8 }
 0x228   :  { %v2603_v34 = vmul.f32 %v3660_v24, %v2547_v27  ;;  %v2553_v38 = vmax.f32 %v2529_v29, 0.0  ;;  %v2593_v59 = vmul.f32 %v3668_v36, %v2537_v58  ;;  %v2893_v35 = vadd.f32 %v2094_v26, %v3614_v3  ;;  %v2096_v39 = vpop.f32.mrb[1].mxu0  ;;  %v2407_v47 = vpop.f32.mrb[35].mxu1 }
 0x229   :  { %v2604_v60 = vmul.f32 %v3664_v28, %v2548_v30  ;;  %v2554_v48 = vmax.f32 %v2530_v31, 0.0  ;;  %v2594_v49 = vmul.f32 %v3671_v37, %v2538_v32  ;;  %v2519_v63 = vadd.f32 %v2405_v33, %v2169_v6  ;;  %v2098_v1 = vpop.f32.mrb[2].mxu0 }
 0x22a   :  { %v2609_v50 = vmul.f32 %v3660_v24, %v2553_v38  ;;  %v2894_v2 = vadd.f32 %v2096_v39, %v3616_v40  ;;  %v2520_v5 = vadd.f32 %v2407_v47, %v2170_v57  ;;  %v2895_v4 = vadd.f32 %v2098_v1, %v3618_v41  ;;  %v2100_v7 = vpop.f32.mrb[3].mxu0 }
 0x22b   :  { %v2879_v55 = vpack.c.bf16 %v2604_v60, %v2603_v34  ;;  %v2610_v3 = vmul.f32 %v3664_v28, %v2554_v48  ;;  %v2874_v13 = vpack.c.bf16 %v2594_v49, %v2593_v59  ;;  %v2543_v51 = vmax.f32 %v2519_v63, 0.0  ;;  %v2411_v10 = vpop.f32.mrb[36].mxu1 }
 0x22c   :  { %v2544_v56 = vmax.f32 %v2520_v5, 0.0  ;;  %v2896_v15 = vadd.f32 %v2100_v7, %v3620_v42  ;;  %v2525_v16 = vadd.f32 %v2411_v10, %v2175_v54  ;;  %v2413_v6 = vpop.f32.mrb[37].mxu1  ;;  %v2181_v28 = vadd.f32 %v3683_v14, %v3640_v61 }
 0x22d   :  { %2695 = vst [vmem:[%s3787_s6 + $0x30] sm:$0xff] %v2879_v55  ;;  %v2882_v40 = vpack.c.bf16 %v2610_v3, %v2609_v50  ;;  %2688 = vst [vmem:[%s3787_s6 + $0x8] sm:$0xff] %v2874_v13  ;;  %v2599_v41 = vmul.f32 %v3668_v36, %v2543_v51  ;;  %v2526_v24 = vadd.f32 %v2413_v6, %v2176_v20  ;;  %v2583_v20 = vsub.s32 5, %v3521_v8 }
 0x22e   :  { %v2600_v52 = vmul.f32 %v3671_v37, %v2544_v56  ;;  %v2549_v42 = vmax.f32 %v2525_v16, 0.0  ;;  %v2182_v57 = vadd.f32 %v3683_v14, %v3642_v62  ;;  %v2580_v39 = vrot.slane %v3650_v12, %v2579_v21 }
 0x22f   :  { %2698 = vst [vmem:[%s3787_s6 + $0x48] sm:$0xff] %v2882_v40  ;;  %v2550_v17 = vmax.f32 %v2526_v24, 0.0  ;;  %v2104_v11 = vpop.f32.mrb[4].mxu0  ;;  %v2417_v19 = vpop.f32.mrb[38].mxu1  ;;  %v2584_v60 = vrot.slane %v3650_v12, %v2583_v20  ;;  %v2172_v63 = vadd.f32 %v2896_v15, %v3654_v18 }
 0x230   :  { %v2877_v53 = vpack.c.bf16 %v2600_v52, %v2599_v41  ;;  %v2605_v22 = vmul.f32 %v3668_v36, %v2549_v42  ;;  %v2897_v61 = vadd.f32 %v2104_v11, %v3622_v43  ;;  %v2531_v23 = vadd.f32 %v2417_v19, %v2181_v28  ;;  %v2106_v25 = vpop.f32.mrb[5].mxu0  ;;  %v2419_v54 = vpop.f32.mrb[39].mxu1 }
 0x231   :  { %v2606_v27 = vmul.f32 %v3671_v37, %v2550_v17  ;;  %v2898_v62 = vadd.f32 %v2106_v25, %v3624_v44  ;;  %v2532_v29 = vadd.f32 %v2419_v54, %v2182_v57  ;;  %v2108_v58 = vpop.f32.mrb[6].mxu0  ;;  %v2165_v43 = vadd.f32 %v2893_v35, %v3645_v9 }
 0x232   :  { %2693 = vst [vmem:[%s3787_s6 + $0x20] sm:$0xff] %v2877_v53  ;;  %v2555_v30 = vmax.f32 %v2531_v23, 0.0  ;;  %v2899_v31 = vadd.f32 %v2108_v58, %v3626_v45  ;;  %v2110_v32 = vpop.f32.mrb[7].mxu0  ;;  %v2166_v44 = vadd.f32 %v2894_v2, %v3645_v9  ;;  %v2177_v7 = vadd.f32 %v2897_v61, %v3676_v0 }
 0x233   :  { %v2880_v26 = vpack.c.bf16 %v2606_v27, %v2605_v22  ;;  %v2556_v33 = vmax.f32 %v2532_v29, 0.0  ;;  %v2900_v34 = vadd.f32 %v2110_v32, %v3628_v46  ;;  %v2488_v38 = vpop.f32.mrb[40].mxu1  ;;  %v2171_v46 = vadd.f32 %v2895_v4, %v3654_v18 }
 0x234   :  { %v2611_v59 = vmul.f32 %v3668_v36, %v2555_v30  ;;  %v2515_v8 = vadd.f32 %v2488_v38, %v2165_v43  ;;  %v2490_v47 = vpop.f32.mrb[41].mxu1  ;;  %v2178_v13 = vadd.f32 %v2898_v62, %v3676_v0  ;;  %v2183_v40 = vadd.f32 %v2899_v31, %v3683_v14 }
 0x235   :  { %2696 = vst [vmem:[%s3787_s6 + $0x38] sm:$0xff] %v2880_v26  ;;  %v2612_v45 = vmul.f32 %v3671_v37, %v2556_v33  ;;  %v2516_v35 = vadd.f32 %v2490_v47, %v2166_v44  ;;  %v2184_v52 = vadd.f32 %v2900_v34, %v3683_v14 }
 0x236   :  { %v2539_v48 = vmax.f32 %v2515_v8, 0.0 }
 0x237   :  { %v2883_v49 = vpack.c.bf16 %v2612_v45, %v2611_v59  ;;  %v2540_v9 = vmax.f32 %v2516_v35, 0.0  ;;  %v2494_v36 = vpop.f32.mrb[42].mxu1 }
 0x238   :  { %v2595_v1 = vmul.f32 %v2580_v39, %v2539_v48  ;;  %v2521_v50 = vadd.f32 %v2494_v36, %v2171_v46  ;;  %v2496_v2 = vpop.f32.mrb[43].mxu1 }
 0x239   :  { %2699 = vst [vmem:[%s3787_s6 + $0x50] sm:$0xff] %v2883_v49  ;;  %v2596_v37 = vmul.f32 %v2584_v60, %v2540_v9  ;;  %v2522_v5 = vadd.f32 %v2496_v2, %v2172_v63 }
 0x23a   :  { %v2545_v4 = vmax.f32 %v2521_v50, 0.0 }
 0x23b   :  { %v2875_v55 = vpack.c.bf16 %v2596_v37, %v2595_v1  ;;  %v2546_v3 = vmax.f32 %v2522_v5, 0.0  ;;  %v2500_v18 = vpop.f32.mrb[44].mxu1 }
 0x23c   :  { %v2601_v51 = vmul.f32 %v2580_v39, %v2545_v4  ;;  %v2527_v10 = vadd.f32 %v2500_v18, %v2177_v7  ;;  %v2502_v56 = vpop.f32.mrb[45].mxu1 }
 0x23d   :  { %2691 = vst.msk [vmem:[%s3787_s6 + $0x10] sm:$0xff] %vm3753_vm13, %v2875_v55  ;;  %v2602_v15 = vmul.f32 %v2584_v60, %v2546_v3  ;;  %v2528_v16 = vadd.f32 %v2502_v56, %v2178_v13 }
 0x23e   :  { %v2551_v6 = vmax.f32 %v2527_v10, 0.0 }
 0x23f   :  { %v2878_v41 = vpack.c.bf16 %v2602_v15, %v2601_v51  ;;  %v2552_v24 = vmax.f32 %v2528_v16, 0.0  ;;  %v2506_v28 = vpop.f32.mrb[46].mxu1 }
 0x240   :  { %v2607_v0 = vmul.f32 %v2580_v39, %v2551_v6  ;;  %v2533_v42 = vadd.f32 %v2506_v28, %v2183_v40  ;;  %v2508_v57 = vpop.f32.mrb[47].mxu1 }
 0x241   :  { %2694 = vst.msk [vmem:[%s3787_s6 + $0x28] sm:$0xff] %vm3753_vm13, %v2878_v41  ;;  %v2608_v17 = vmul.f32 %v2584_v60, %v2552_v24  ;;  %v2534_v11 = vadd.f32 %v2508_v57, %v2184_v52 }
 0x242   :  { %v2557_v19 = vmax.f32 %v2533_v42, 0.0 }
 0x243   :  { %v2881_v21 = vpack.c.bf16 %v2608_v17, %v2607_v0  ;;  %v2558_v53 = vmax.f32 %v2534_v11, 0.0 }
 0x244   :  { %v2613_v22 = vmul.f32 %v2580_v39, %v2557_v19 }
 0x245   :  { %2697 = vst.msk [vmem:[%s3787_s6 + $0x40] sm:$0xff] %vm3753_vm13, %v2881_v21  ;;  %v2614_v14 = vmul.f32 %v2584_v60, %v2558_v53 }
 0x247   :  { %v2884_v61 = vpack.c.bf16 %v2614_v14, %v2613_v22 }
 0x249   :  { %2700 = vst.msk [vmem:[%s3787_s6 + $0x58] sm:$0xff] %vm3753_vm13, %v2884_v61 }

// kernel: ldm_forward.5
= control target key start
LH: loop header
LB: loop body
LE: loop exit
PB: predicated region body
PF: predicated region fallthrough
CT: control target
= control target key end

     0   :  { %s1846_s25 = smov 127   ;;  %v1847_v7 = vmov 0   ;;  %s1848_s22 = smov 126   ;;  %vm110_vm0 = vcmask 1039360   ;;  %vm133_vm1 = vcmask 261120   ;;  %vm424_vm2 = vcmask 1031168   ;;  %s2303_s2 = inlined_call_operand.vmem [shape: bf16[1,32,686], index: 2, kind: input, shape index: {}]   ;;  %s2304_s0 = inlined_call_operand.vmem [shape: bf16[9,8,32], index: 0, kind: input, shape index: {}]   ;;  %s2305_s1 = inlined_call_operand.vmem [shape: f32[8,1], index: 1, kind: input, shape index: {}]   ;;  %s2306_s3 = inlined_call_operand.vmem [shape: f32[1,648], index: 3, kind: input, shape index: {}]   ;;  %s2307_s4 = inlined_call_operand.vmem [shape: f32[8,648], index: 4, kind: input, shape index: {}]   ;;  %s2308_s5 = inlined_call_operand.vmem [shape: f32[8,648], index: 5, kind: output, shape index: {0}]   ;;  %s2309_s6 = inlined_call_operand.vmem [shape: f32[1,128], index: 6, kind: output, shape index: {1}]  }
   0x1   :  { %v1893_v0 = vld [vmem:[%s2303_s2 + $0x4] ss:$24 sps:$4 sm:$0xff]   ;;  %v1898_v1 = vld [vmem:[%s2303_s2] ss:$24 sps:$4 sm:$0xff]   ;;  %v1916_v4 = vld [vmem:[%s2303_s2 + $0x10] ss:$24 sps:$4 sm:$0xff]   ;;  %169 = vmatprep.mubr.bf16.mxu0 %v1847_v7  ;;  %210 = vmatprep.mubr.bf16.mxu1 %v1847_v7 }
   0x2   :  { %88 = vrot.lane.b32.xlu0 %v1893_v0, %s1846_s25  ;;  %v1904_v2 = vld [vmem:[%s2303_s2 + $0x8] ss:$24 sps:$4 sm:$0xff]   ;;  %86 = vrot.lane.b32.xlu1 %v1898_v1, %s1846_s25  ;;  %v1910_v3 = vld [vmem:[%s2303_s2 + $0xc] ss:$24 sps:$4 sm:$0xff]   ;;  %s1850_s23 = smov 109   ;;  %s1851_s24 = smov 108  }
   0x3   :  { %v1922_v5 = vld [vmem:[%s2303_s2 + $0x34] ss:$24 sps:$4 sm:$0xff]   ;;  %v1928_v6 = vld [vmem:[%s2303_s2 + $0x38] ss:$24 sps:$4 sm:$0xff]   ;;  %1827 = vset.pattern.permute.xlu0 %v1847_v7  ;;  %v1961_v12 = vld [vmem:[%s2303_s2 + $0x44] ss:$24 sps:$4 sm:$0xff]  }
   0x4   :  { %v1935_v8 = vld [vmem:[%s2303_s2 + $0x30] ss:$24 sps:$4 sm:$0xff]   ;;  %v1943_v9 = vld [vmem:[%s2303_s2 + $0x3c] ss:$24 sps:$4 sm:$0xff]   ;;  %v1949_v10 = vld [vmem:[%s2303_s2 + $0x40] ss:$24 sps:$4 sm:$0xff]  }
   0x5   :  { %v1955_v11 = vld [vmem:[%s2303_s2 + $0x14] ss:$24 sps:$4 sm:$0xff]   ;;  %s1849_s2 = smov 110   ;;  %v1769_v27 = vld [vmem:[%s2304_s0 + $0x4] sm:$0xf]  ;;  %s1853_s28 = smov 91  }
   0x6   :  { %90 = vrot.lane.b32.xlu0 %v1904_v2, %s1846_s25  ;;  %92 = vrot.lane.b32.xlu1 %v1910_v3, %s1846_s25  ;;  %v23_v39 = vld [vmem:[%s2304_s0] sm:$0xf]  ;;  %v1788_v55 = vld [vmem:[%s2304_s0 + $0x8] sm:$0xf]  ;;  %vm605_vm3 = vcmask 900096   ;;  %s1854_s9 = smov 90  }
   0x7   :  { %vm786_vm4 = vcmask 891904   ;;  %vm967_vm5 = vcmask 883712   ;;  %vm1148_vm6 = vcmask 752640   ;;  %vm1329_vm7 = vcmask 744448  }
   0x8   :  { %vm1510_vm8 = vcmask 736256   ;;  %vm1720_vm9 = vcmask 64512  }
   0xa   :  { %94 = vrot.lane.b32.xlu0 %v1916_v4, %s1846_s25  ;;  %100 = vrot.lane.b32.xlu1 %v1922_v5, %s1846_s25 }
   0xe   :  { %102 = vrot.lane.b32.xlu0 %v1928_v6, %s1846_s25  ;;  %98 = vrot.lane.b32.xlu1 %v1935_v8, %s1846_s25 }
  0x12   :  { %104 = vrot.lane.b32.xlu0 %v1943_v9, %s1846_s25  ;;  %106 = vrot.lane.b32.xlu1 %v1949_v10, %s1846_s25 }
  0x16   :  { %96 = vrot.lane.b32.xlu0 %v1955_v11, %s1846_s25  ;;  %108 = vrot.lane.b32.xlu1 %v1961_v12, %s1846_s25  ;;  %s1852_s25 = smov 92  }
  0x1a   :  { %402 = vrot.lane.b32.xlu0 %v1893_v0, %s1848_s22  ;;  %404 = vrot.lane.b32.xlu1 %v1904_v2, %s1848_s22 }
  0x1e   :  { %400 = vrot.lane.b32.xlu0 %v1898_v1, %s1848_s22  ;;  %406 = vrot.lane.b32.xlu1 %v1910_v3, %s1848_s22 }
  0x22   :  { %408 = vrot.lane.b32.xlu0 %v1916_v4, %s1848_s22  ;;  %414 = vrot.lane.b32.xlu1 %v1922_v5, %s1848_s22 }
  0x26   :  { %416 = vrot.lane.b32.xlu0 %v1928_v6, %s1848_s22  ;;  %412 = vrot.lane.b32.xlu1 %v1935_v8, %s1848_s22 }
  0x2a   :  { %418 = vrot.lane.b32.xlu0 %v1943_v9, %s1848_s22  ;;  %420 = vrot.lane.b32.xlu1 %v1949_v10, %s1848_s22 }
  0x2e   :  { %410 = vrot.lane.b32.xlu0 %v1955_v11, %s1848_s22  ;;  %583 = vrot.lane.b32.xlu1 %v1893_v0, %s1849_s2 }
  0x32   :  { %585 = vrot.lane.b32.xlu0 %v1904_v2, %s1849_s2  ;;  %422 = vrot.lane.b32.xlu1 %v1961_v12, %s1848_s22 }
  0x36   :  { %581 = vrot.lane.b32.xlu0 %v1898_v1, %s1849_s2  ;;  %587 = vrot.lane.b32.xlu1 %v1910_v3, %s1849_s2 }
  0x3a   :  { %589 = vrot.lane.b32.xlu0 %v1916_v4, %s1849_s2  ;;  %595 = vrot.lane.b32.xlu1 %v1922_v5, %s1849_s2 }
  0x3e   :  { %597 = vrot.lane.b32.xlu0 %v1928_v6, %s1849_s2  ;;  %593 = vrot.lane.b32.xlu1 %v1935_v8, %s1849_s2 }
  0x42   :  { %599 = vrot.lane.b32.xlu0 %v1943_v9, %s1849_s2  ;;  %601 = vrot.lane.b32.xlu1 %v1949_v10, %s1849_s2 }
  0x46   :  { %591 = vrot.lane.b32.xlu0 %v1955_v11, %s1849_s2  ;;  %764 = vrot.lane.b32.xlu1 %v1893_v0, %s1850_s23 }
  0x4a   :  { %766 = vrot.lane.b32.xlu0 %v1904_v2, %s1850_s23  ;;  %603 = vrot.lane.b32.xlu1 %v1961_v12, %s1849_s2 }
  0x4e   :  { %762 = vrot.lane.b32.xlu0 %v1898_v1, %s1850_s23  ;;  %768 = vrot.lane.b32.xlu1 %v1910_v3, %s1850_s23 }
  0x52   :  { %770 = vrot.lane.b32.xlu0 %v1916_v4, %s1850_s23  ;;  %776 = vrot.lane.b32.xlu1 %v1922_v5, %s1850_s23 }
  0x56   :  { %778 = vrot.lane.b32.xlu0 %v1928_v6, %s1850_s23  ;;  %774 = vrot.lane.b32.xlu1 %v1935_v8, %s1850_s23 }
  0x5a   :  { %780 = vrot.lane.b32.xlu0 %v1943_v9, %s1850_s23  ;;  %782 = vrot.lane.b32.xlu1 %v1949_v10, %s1850_s23 }
  0x5e   :  { %772 = vrot.lane.b32.xlu0 %v1955_v11, %s1850_s23  ;;  %945 = vrot.lane.b32.xlu1 %v1893_v0, %s1851_s24 }
  0x62   :  { %947 = vrot.lane.b32.xlu0 %v1904_v2, %s1851_s24  ;;  %784 = vrot.lane.b32.xlu1 %v1961_v12, %s1850_s23 }
  0x66   :  { %943 = vrot.lane.b32.xlu0 %v1898_v1, %s1851_s24  ;;  %949 = vrot.lane.b32.xlu1 %v1910_v3, %s1851_s24 }
  0x6a   :  { %951 = vrot.lane.b32.xlu0 %v1916_v4, %s1851_s24  ;;  %957 = vrot.lane.b32.xlu1 %v1922_v5, %s1851_s24 }
  0x6e   :  { %959 = vrot.lane.b32.xlu0 %v1928_v6, %s1851_s24  ;;  %955 = vrot.lane.b32.xlu1 %v1935_v8, %s1851_s24 }
  0x72   :  { %961 = vrot.lane.b32.xlu0 %v1943_v9, %s1851_s24  ;;  %963 = vrot.lane.b32.xlu1 %v1949_v10, %s1851_s24 }
  0x74   :  { %v89_v13 = vpop.permute.xlu0 %88  ;;  %v87_v14 = vpop.permute.xlu1 %86 }
  0x75   :  { %v111_v18 = vsel %vm110_vm0, %v87_v14, %v89_v13 }
  0x76   :  { %953 = vrot.lane.b32.xlu0 %v1955_v11, %s1851_s24  ;;  %1126 = vrot.lane.b32.xlu1 %v1893_v0, %s1852_s25 }
  0x78   :  { %v91_v15 = vpop.permute.xlu0 %90  ;;  %v93_v16 = vpop.permute.xlu1 %92 }
  0x79   :  { %v112_v17 = vsel %vm110_vm0, %v89_v13, %v91_v15  ;;  %v113_v22 = vsel %vm110_vm0, %v91_v15, %v93_v16 }
  0x7a   :  { %137 = vmatprep.subr.bf16.mxu0 %v112_v17  ;;  %1128 = vrot.lane.b32.xlu0 %v1904_v2, %s1852_s25 }
  0x7b   :  { %965 = vrot.lane.b32.xlu1 %v1961_v12, %s1851_s24  ;;  %138 = vmatpush1.bf16.msra.mxu0 %v111_v18 }
  0x7c   :  { %v95_v19 = vpop.permute.xlu0 %94  ;;  %v101_v20 = vpop.permute.xlu1 %100 }
  0x7d   :  { %v114_v21 = vsel %vm110_vm0, %v93_v16, %v95_v19 }
  0x7e   :  { %1124 = vrot.lane.b32.xlu0 %v1898_v1, %s1852_s25  ;;  %178 = vmatprep.subr.bf16.mxu1 %v114_v21 }
  0x7f   :  { %1130 = vrot.lane.b32.xlu1 %v1910_v3, %s1852_s25  ;;  %179 = vmatpush1.bf16.msra.mxu1 %v113_v22 }
  0x80   :  { %v103_v23 = vpop.permute.xlu0 %102  ;;  %v99_v24 = vpop.permute.xlu1 %98 }
  0x81   :  { %v117_v25 = vsel %vm110_vm0, %v101_v20, %v103_v23  ;;  %v116_v26 = vsel %vm110_vm0, %v99_v24, %v101_v20 }
  0x82   :  { %1132 = vrot.lane.b32.xlu0 %v1916_v4, %s1852_s25  ;;  %139 = vmatprep.subr.bf16.mxu0 %v117_v25 }
  0x83   :  { %1138 = vrot.lane.b32.xlu1 %v1922_v5, %s1852_s25  ;;  %140 = vmatpush1.bf16.msra.mxu0 %v116_v26 }
  0x84   :  { %v105_v28 = vpop.permute.xlu0 %104  ;;  %v107_v29 = vpop.permute.xlu1 %106 }
  0x85   :  { %v118_v30 = vsel %vm110_vm0, %v103_v23, %v105_v28  ;;  %v119_v31 = vsel %vm110_vm0, %v105_v28, %v107_v29 }
  0x86   :  { %1140 = vrot.lane.b32.xlu0 %v1928_v6, %s1852_s25  ;;  %1782 = vmatmul.mubr.msk.bf16.vlgmr.msra.gmra.mrb[0].mxu0 %vm133_vm1, %v1769_v27 }
  0x87   :  { %1136 = vrot.lane.b32.xlu1 %v1935_v8, %s1852_s25  ;;  %180 = vmatprep.subr.bf16.mxu1 %v119_v31 }
  0x88   :  { %181 = vmatpush1.bf16.msra.mxu1 %v118_v30  ;;  %v97_v32 = vpop.permute.xlu0 %96  ;;  %251 = vmatprep.mubr.bf16.mxu0 %v1847_v7  ;;  %v109_v34 = vpop.permute.xlu1 %108 }
  0x89   :  { %v115_v33 = vsel %vm110_vm0, %v95_v19, %v97_v32  ;;  %219 = vmatprep.subr.bf16.mxu0 %v97_v32  ;;  %275 = vmatprep.subr.bf16.mxu1 %v1893_v0  ;;  %v120_v36 = vsel %vm110_vm0, %v107_v29, %v109_v34 }
  0x8a   :  { %1142 = vrot.lane.b32.xlu0 %v1943_v9, %s1852_s25  ;;  %220 = vmatpush1.bf16.msra.mxu0 %v115_v33 }
  0x8b   :  { %1144 = vrot.lane.b32.xlu1 %v1949_v10, %s1852_s25  ;;  %1783 = vmatmul.mubr.msk.bf16.vlgmr.msra.gmra.mrb[0].mxu1 %vm133_vm1, %v1769_v27 }
  0x8c   :  { %276 = vmatpush1.bf16.msra.mxu1 %v1898_v1  ;;  %v403_v35 = vpop.permute.xlu0 %402  ;;  %221 = vmatprep.subr.bf16.mxu0 %v109_v34  ;;  %v405_v37 = vpop.permute.xlu1 %404 }
  0x8d   :  { %277 = vmatprep.subr.bf16.mxu1 %v1922_v5  ;;  %307 = vmatprep.mubr.bf16.mxu1 %v1847_v7  ;;  %v426_v43 = vsel %vm424_vm2, %v403_v35, %v405_v37 }
  0x8e   :  { %1134 = vrot.lane.b32.xlu0 %v1955_v11, %s1852_s25  ;;  %222 = vmatpush1.bf16.msra.mxu0 %v120_v36 }
  0x8f   :  { %1307 = vrot.lane.b32.xlu1 %v1893_v0, %s1853_s28  ;;  %316 = vmatprep.subr.bf16.mxu0 %v1910_v3 }
  0x90   :  { %278 = vmatpush1.bf16.msra.mxu1 %v1935_v8  ;;  %v401_v38 = vpop.permute.xlu0 %400  ;;  %v407_v40 = vpop.permute.xlu1 %406 }
  0x91   :  { %1784 = vmatmul.mubr.msk.bf16.vlgmr.msra.gmra.mrb[4].mxu0 %vm133_vm1, %v1769_v27  ;;  %357 = vmatprep.subr.bf16.mxu1 %v1955_v11  ;;  %v425_v46 = vsel %vm424_vm2, %v401_v38, %v403_v35  ;;  %v427_v49 = vsel %vm424_vm2, %v405_v37, %v407_v40  ;;  %v1796_v35 = vld [vmem:[%s2304_s0 + $0x10] sm:$0xf] }
  0x92   :  { %1309 = vrot.lane.b32.xlu0 %v1904_v2, %s1853_s28  ;;  %317 = vmatpush1.bf16.msra.mxu0 %v1904_v2 }
  0x93   :  { %1146 = vrot.lane.b32.xlu1 %v1961_v12, %s1852_s25  ;;  %1785 = vmatmul.mubr.msk.bf16.vlgmr.msra.gmra.mrb[4].mxu1 %vm133_vm1, %v23_v39 }
  0x94   :  { %358 = vmatpush1.bf16.msra.mxu1 %v1916_v4  ;;  %v409_v41 = vpop.permute.xlu0 %408  ;;  %318 = vmatprep.subr.bf16.mxu0 %v1943_v9  ;;  %v415_v42 = vpop.permute.xlu1 %414 }
  0x95   :  { %359 = vmatprep.subr.bf16.mxu1 %v1961_v12  ;;  %348 = vmatprep.mubr.bf16.mxu0 %v1847_v7  ;;  %v428_v45 = vsel %vm424_vm2, %v407_v40, %v409_v41 }
  0x96   :  { %1305 = vrot.lane.b32.xlu0 %v1898_v1, %s1853_s28  ;;  %319 = vmatpush1.bf16.msra.mxu0 %v1928_v6 }
  0x97   :  { %1311 = vrot.lane.b32.xlu1 %v1910_v3, %s1853_s28  ;;  %450 = vmatprep.subr.bf16.mxu0 %v426_v43 }
  0x98   :  { %360 = vmatpush1.bf16.msra.mxu1 %v1949_v10  ;;  %v417_v44 = vpop.permute.xlu0 %416  ;;  %389 = vmatprep.mubr.bf16.mxu1 %v1847_v7  ;;  %v413_v47 = vpop.permute.xlu1 %412 }
  0x99   :  { %491 = vmatprep.subr.bf16.mxu1 %v428_v45  ;;  %1786 = vmatmul.mubr.msk.bf16.vlgmr.msra.gmra.mrb[8].mxu0 %vm133_vm1, %v23_v39  ;;  %v431_v48 = vsel %vm424_vm2, %v415_v42, %v417_v44  ;;  %v430_v51 = vsel %vm424_vm2, %v413_v47, %v415_v42 }
  0x9a   :  { %1313 = vrot.lane.b32.xlu0 %v1916_v4, %s1853_s28  ;;  %451 = vmatpush1.bf16.msra.mxu0 %v425_v46 }
  0x9b   :  { %1319 = vrot.lane.b32.xlu1 %v1922_v5, %s1853_s28  ;;  %1787 = vmatmul.mubr.msk.bf16.vlgmr.msra.gmra.mrb[8].mxu1 %vm133_vm1, %v23_v39 }
  0x9c   :  { %452 = vmatprep.subr.bf16.mxu0 %v431_v48  ;;  %492 = vmatpush1.bf16.msra.mxu1 %v427_v49  ;;  %v419_v50 = vpop.permute.xlu0 %418  ;;  %v421_v53 = vpop.permute.xlu1 %420 }
  0x9d   :  { %v432_v52 = vsel %vm424_vm2, %v417_v44, %v419_v50  ;;  %482 = vmatprep.mubr.bf16.mxu0 %v1847_v7  ;;  %523 = vmatprep.mubr.bf16.mxu1 %v1847_v7  ;;  %v433_v54 = vsel %vm424_vm2, %v419_v50, %v421_v53 }
  0x9e   :  { %1321 = vrot.lane.b32.xlu0 %v1928_v6, %s1853_s28  ;;  %453 = vmatpush1.bf16.msra.mxu0 %v430_v51 }
  0x9f   :  { %1317 = vrot.lane.b32.xlu1 %v1935_v8, %s1853_s28  ;;  %493 = vmatprep.subr.bf16.mxu1 %v433_v54 }
  0xa0   :  { %494 = vmatpush1.bf16.msra.mxu1 %v432_v52  ;;  %v411_v56 = vpop.permute.xlu0 %410  ;;  %v584_v58 = vpop.permute.xlu1 %583 }
  0xa1   :  { %v429_v57 = vsel %vm424_vm2, %v409_v41, %v411_v56  ;;  %532 = vmatprep.subr.bf16.mxu0 %v411_v56  ;;  %1789 = vmatmul.mubr.msk.bf16.vlgmr.msra.gmra.mrb[12].mxu0 %vm133_vm1, %v1788_v55 }
  0xa2   :  { %1323 = vrot.lane.b32.xlu0 %v1943_v9, %s1853_s28  ;;  %533 = vmatpush1.bf16.msra.mxu0 %v429_v57 }
  0xa3   :  { %1325 = vrot.lane.b32.xlu1 %v1949_v10, %s1853_s28  ;;  %1790 = vmatmul.mubr.msk.bf16.vlgmr.msra.gmra.mrb[12].mxu1 %vm133_vm1, %v1788_v55 }
  0xa4   :  { %v586_v59 = vpop.permute.xlu0 %585  ;;  %564 = vmatprep.mubr.bf16.mxu0 %v1847_v7  ;;  %663 = vmatprep.mubr.bf16.mxu1 %v1847_v7  ;;  %v423_v60 = vpop.permute.xlu1 %422 }
  0xa5   :  { %v607_v61 = vsel %vm605_vm3, %v584_v58, %v586_v59  ;;  %v434_v62 = vsel %vm424_vm2, %v421_v53, %v423_v60  ;;  %534 = vmatprep.subr.bf16.mxu0 %v423_v60 }
  0xa6   :  { %1315 = vrot.lane.b32.xlu0 %v1955_v11, %s1853_s28  ;;  %535 = vmatpush1.bf16.msra.mxu0 %v434_v62 }
  0xa7   :  { %1488 = vrot.lane.b32.xlu1 %v1893_v0, %s1854_s9  ;;  %631 = vmatprep.subr.bf16.mxu1 %v607_v61 }
  0xa8   :  { %v582_v63 = vpop.permute.xlu0 %581  ;;  %v588_v14 = vpop.permute.xlu1 %587 }
  0xa9   :  { %v606_v13 = vsel %vm605_vm3, %v582_v63, %v584_v58  ;;  %1791 = vmatmul.mubr.msk.bf16.vlgmr.msra.gmra.mrb[16].mxu0 %vm133_vm1, %v1788_v55  ;;  %v608_v17 = vsel %vm605_vm3, %v586_v59, %v588_v14  ;;  %v1800_v58 = vld [vmem:[%s2304_s0 + $0x14] sm:$0xf] }
  0xaa   :  { %1490 = vrot.lane.b32.xlu0 %v1904_v2, %s1854_s9  ;;  %632 = vmatpush1.bf16.msra.mxu1 %v606_v13 }
  0xab   :  { %1327 = vrot.lane.b32.xlu1 %v1961_v12, %s1853_s28  ;;  %704 = vmatprep.mubr.bf16.mxu0 %v1847_v7 }
  0xac   :  { %v590_v15 = vpop.permute.xlu0 %589  ;;  %v596_v16 = vpop.permute.xlu1 %595 }
  0xad   :  { %v609_v0 = vsel %vm605_vm3, %v588_v14, %v590_v15 }
  0xae   :  { %1486 = vrot.lane.b32.xlu0 %v1898_v1, %s1854_s9  ;;  %672 = vmatprep.subr.bf16.mxu0 %v609_v0  ;;  %v1792_v1 = vld [vmem:[%s2304_s0 + $0xc] sm:$0xf] }
  0xaf   :  { %1492 = vrot.lane.b32.xlu1 %v1910_v3, %s1854_s9  ;;  %673 = vmatpush1.bf16.msra.mxu0 %v608_v17 }
  0xb0   :  { %v598_v2 = vpop.permute.xlu0 %597  ;;  %v594_v18 = vpop.permute.xlu1 %593 }
  0xb1   :  { %v612_v19 = vsel %vm605_vm3, %v596_v16, %v598_v2  ;;  %v611_v20 = vsel %vm605_vm3, %v594_v18, %v596_v16 }
  0xb2   :  { %1494 = vrot.lane.b32.xlu0 %v1916_v4, %s1854_s9  ;;  %633 = vmatprep.subr.bf16.mxu1 %v612_v19 }
  0xb3   :  { %1500 = vrot.lane.b32.xlu1 %v1922_v5, %s1854_s9  ;;  %634 = vmatpush1.bf16.msra.mxu1 %v611_v20 }
  0xb4   :  { %v600_v3 = vpop.permute.xlu0 %599  ;;  %v602_v22 = vpop.permute.xlu1 %601 }
  0xb5   :  { %v613_v21 = vsel %vm605_vm3, %v598_v2, %v600_v3  ;;  %v614_v23 = vsel %vm605_vm3, %v600_v3, %v602_v22 }
  0xb6   :  { %1502 = vrot.lane.b32.xlu0 %v1928_v6, %s1854_s9  ;;  %1793 = vmatmul.mubr.msk.bf16.vlgmr.msra.gmra.mrb[16].mxu1 %vm133_vm1, %v1792_v1 }
  0xb7   :  { %1498 = vrot.lane.b32.xlu1 %v1935_v8, %s1854_s9  ;;  %674 = vmatprep.subr.bf16.mxu0 %v614_v23 }
  0xb8   :  { %675 = vmatpush1.bf16.msra.mxu0 %v613_v21  ;;  %v592_v4 = vpop.permute.xlu0 %591  ;;  %745 = vmatprep.mubr.bf16.mxu1 %v1847_v7  ;;  %v765_v24 = vpop.permute.xlu1 %764 }
  0xb9   :  { %v610_v5 = vsel %vm605_vm3, %v590_v15, %v592_v4  ;;  %713 = vmatprep.subr.bf16.mxu1 %v592_v4 }
  0xba   :  { %1504 = vrot.lane.b32.xlu0 %v1943_v9, %s1854_s9  ;;  %714 = vmatpush1.bf16.msra.mxu1 %v610_v5 }
  0xbb   :  { %1506 = vrot.lane.b32.xlu1 %v1949_v10, %s1854_s9  ;;  %1794 = vmatmul.mubr.msk.bf16.vlgmr.msra.gmra.mrb[20].mxu0 %vm133_vm1, %v1792_v1  ;;  %v1665_v10 = vld [vmem:[%s2305_s1] sm:$0xff] }
  0xbc   :  { %v767_v6 = vpop.permute.xlu0 %766  ;;  %844 = vmatprep.mubr.bf16.mxu0 %v1847_v7  ;;  %v604_v8 = vpop.permute.xlu1 %603 }
  0xbd   :  { %v788_v25 = vsel %vm786_vm4, %v765_v24, %v767_v6  ;;  %v615_v26 = vsel %vm605_vm3, %v602_v22, %v604_v8  ;;  %715 = vmatprep.subr.bf16.mxu1 %v604_v8 }
  0xbe   :  { %1496 = vrot.lane.b32.xlu0 %v1955_v11, %s1854_s9  ;;  %716 = vmatpush1.bf16.msra.mxu1 %v615_v26 }
  0xbf   :  { %1508 = vrot.lane.b32.xlu1 %v1961_v12, %s1854_s9  ;;  %812 = vmatprep.subr.bf16.mxu0 %v788_v25 }
  0xc0   :  { %v763_v9 = vpop.permute.xlu0 %762  ;;  %v769_v28 = vpop.permute.xlu1 %768 }
  0xc1   :  { %v787_v27 = vsel %vm786_vm4, %v763_v9, %v765_v24  ;;  %1795 = vmatmul.mubr.msk.bf16.vlgmr.msra.gmra.mrb[20].mxu1 %vm133_vm1, %v1792_v1  ;;  %v789_v30 = vsel %vm786_vm4, %v767_v6, %v769_v28  ;;  %v1804_v24 = vld [vmem:[%s2304_s0 + $0x18] sm:$0xf] }
  0xc2   :  { %813 = vmatpush1.bf16.msra.mxu0 %v787_v27  ;;  %885 = vmatprep.mubr.bf16.mxu1 %v1847_v7 }
  0xc3   :  { %1668 = vperm.xlu0 %1827, %v1665_v10  }
  0xc4   :  { %v771_v11 = vpop.permute.xlu0 %770  ;;  %v777_v29 = vpop.permute.xlu1 %776 }
  0xc5   :  { %v790_v12 = vsel %vm786_vm4, %v769_v28, %v771_v11 }
  0xc6   :  { %853 = vmatprep.subr.bf16.mxu1 %v790_v12 }
  0xc7   :  { %854 = vmatpush1.bf16.msra.mxu1 %v789_v30 }
  0xc8   :  { %v779_v31 = vpop.permute.xlu0 %778  ;;  %v775_v32 = vpop.permute.xlu1 %774 }
  0xc9   :  { %v793_v33 = vsel %vm786_vm4, %v777_v29, %v779_v31  ;;  %v792_v34 = vsel %vm786_vm4, %v775_v32, %v777_v29 }
  0xca   :  { %814 = vmatprep.subr.bf16.mxu0 %v793_v33 }
  0xcb   :  { %815 = vmatpush1.bf16.msra.mxu0 %v792_v34 }
  0xcc   :  { %v781_v36 = vpop.permute.xlu0 %780  ;;  %v783_v38 = vpop.permute.xlu1 %782 }
  0xcd   :  { %v794_v37 = vsel %vm786_vm4, %v779_v31, %v781_v36  ;;  %v795_v39 = vsel %vm786_vm4, %v781_v36, %v783_v38 }
  0xce   :  { %1797 = vmatmul.mubr.msk.bf16.vlgmr.msra.gmra.mrb[24].mxu0 %vm133_vm1, %v1796_v35  ;;  %855 = vmatprep.subr.bf16.mxu1 %v795_v39 }
  0xcf   :  { %926 = vmatprep.mubr.bf16.mxu0 %v1847_v7  ;;  %856 = vmatpush1.bf16.msra.mxu1 %v794_v37 }
  0xd0   :  { %v773_v40 = vpop.permute.xlu0 %772  ;;  %v946_v42 = vpop.permute.xlu1 %945 }
  0xd1   :  { %v791_v41 = vsel %vm786_vm4, %v771_v11, %v773_v40  ;;  %894 = vmatprep.subr.bf16.mxu0 %v773_v40 }
  0xd2   :  { %895 = vmatpush1.bf16.msra.mxu0 %v791_v41  ;;  %1798 = vmatmul.mubr.msk.bf16.vlgmr.msra.gmra.mrb[24].mxu1 %vm133_vm1, %v1796_v35  ;;  %v1808_v41 = vld [vmem:[%s2304_s0 + $0x1c] sm:$0xf] }
  0xd3   :  { %1025 = vmatprep.mubr.bf16.mxu1 %v1847_v7 }
  0xd4   :  { %v948_v43 = vpop.permute.xlu0 %947  ;;  %v785_v44 = vpop.permute.xlu1 %784 }
  0xd5   :  { %v969_v45 = vsel %vm967_vm5, %v946_v42, %v948_v43  ;;  %v796_v46 = vsel %vm786_vm4, %v783_v38, %v785_v44  ;;  %896 = vmatprep.subr.bf16.mxu0 %v785_v44 }
  0xd6   :  { %993 = vmatprep.subr.bf16.mxu1 %v969_v45  ;;  %897 = vmatpush1.bf16.msra.mxu0 %v796_v46 }
  0xd8   :  { %v944_v47 = vpop.permute.xlu0 %943  ;;  %v950_v49 = vpop.permute.xlu1 %949 }
  0xd9   :  { %v968_v48 = vsel %vm967_vm5, %v944_v47, %v946_v42  ;;  %1799 = vmatmul.mubr.msk.bf16.vlgmr.msra.gmra.mrb[28].mxu0 %vm133_vm1, %v1796_v35  ;;  %v970_v53 = vsel %vm967_vm5, %v948_v43, %v950_v49 }
  0xda   :  { %994 = vmatpush1.bf16.msra.mxu1 %v968_v48  ;;  %1066 = vmatprep.mubr.bf16.mxu0 %v1847_v7 }
  0xdc   :  { %v952_v50 = vpop.permute.xlu0 %951  ;;  %v958_v51 = vpop.permute.xlu1 %957 }
  0xdd   :  { %v971_v52 = vsel %vm967_vm5, %v950_v49, %v952_v50 }
  0xde   :  { %1034 = vmatprep.subr.bf16.mxu0 %v971_v52 }
  0xdf   :  { %1035 = vmatpush1.bf16.msra.mxu0 %v970_v53 }
  0xe0   :  { %v960_v54 = vpop.permute.xlu0 %959  ;;  %v956_v55 = vpop.permute.xlu1 %955 }
  0xe1   :  { %v974_v56 = vsel %vm967_vm5, %v958_v51, %v960_v54  ;;  %v973_v57 = vsel %vm967_vm5, %v956_v55, %v958_v51 }
  0xe2   :  { %995 = vmatprep.subr.bf16.mxu1 %v974_v56 }
  0xe3   :  { %996 = vmatpush1.bf16.msra.mxu1 %v973_v57 }
  0xe4   :  { %v962_v59 = vpop.permute.xlu0 %961  ;;  %v964_v61 = vpop.permute.xlu1 %963 }
  0xe5   :  { %v975_v60 = vsel %vm967_vm5, %v960_v54, %v962_v59  ;;  %v976_v62 = vsel %vm967_vm5, %v962_v59, %v964_v61 }
  0xe6   :  { %1801 = vmatmul.mubr.msk.bf16.vlgmr.msra.gmra.mrb[28].mxu1 %vm133_vm1, %v1800_v58  ;;  %1036 = vmatprep.subr.bf16.mxu0 %v976_v62 }
  0xe7   :  { %1107 = vmatprep.mubr.bf16.mxu1 %v1847_v7  ;;  %1037 = vmatpush1.bf16.msra.mxu0 %v975_v60 }
  0xe8   :  { %v954_v63 = vpop.permute.xlu0 %953  ;;  %v1127_v14 = vpop.permute.xlu1 %1126 }
  0xe9   :  { %v972_v13 = vsel %vm967_vm5, %v952_v50, %v954_v63  ;;  %1075 = vmatprep.subr.bf16.mxu1 %v954_v63 }
  0xea   :  { %1076 = vmatpush1.bf16.msra.mxu1 %v972_v13  ;;  %1802 = vmatmul.mubr.msk.bf16.vlgmr.msra.gmra.mrb[32].mxu0 %vm133_vm1, %v1800_v58  ;;  %v1812_v13 = vld [vmem:[%s2304_s0 + $0x20] sm:$0xf] }
  0xeb   :  { %1206 = vmatprep.mubr.bf16.mxu0 %v1847_v7 }
  0xec   :  { %v1129_v15 = vpop.permute.xlu0 %1128 }
  0xed   :  { %v966_v16 = vpop.permute.xlu1 %965  ;;  %v1150_v0 = vsel %vm1148_vm6, %v1127_v14, %v1129_v15 }
  0xee   :  { %v977_v17 = vsel %vm967_vm5, %v964_v61, %v966_v16  ;;  %1077 = vmatprep.subr.bf16.mxu1 %v966_v16  ;;  %1174 = vmatprep.subr.bf16.mxu0 %v1150_v0 }
  0xef   :  { %1078 = vmatpush1.bf16.msra.mxu1 %v977_v17 }
  0xf0   :  { %v1125_v2 = vpop.permute.xlu0 %1124 }
  0xf1   :  { %v1149_v18 = vsel %vm1148_vm6, %v1125_v2, %v1127_v14  ;;  %v1131_v19 = vpop.permute.xlu1 %1130 }
  0xf2   :  { %1803 = vmatmul.mubr.msk.bf16.vlgmr.msra.gmra.mrb[32].mxu1 %vm133_vm1, %v1800_v58  ;;  %1175 = vmatpush1.bf16.msra.mxu0 %v1149_v18  ;;  %v1151_v21 = vsel %vm1148_vm6, %v1129_v15, %v1131_v19 }
  0xf3   :  { %1247 = vmatprep.mubr.bf16.mxu1 %v1847_v7 }
  0xf4   :  { %v1133_v20 = vpop.permute.xlu0 %1132 }
  0xf5   :  { %v1139_v1 = vpop.permute.xlu1 %1138  ;;  %v1152_v3 = vsel %vm1148_vm6, %v1131_v19, %v1133_v20 }
  0xf6   :  { %1215 = vmatprep.subr.bf16.mxu1 %v1152_v3 }
  0xf7   :  { %1216 = vmatpush1.bf16.msra.mxu1 %v1151_v21 }
  0xf8   :  { %v1141_v22 = vpop.permute.xlu0 %1140 }
  0xf9   :  { %v1137_v23 = vpop.permute.xlu1 %1136  ;;  %v1155_v4 = vsel %vm1148_vm6, %v1139_v1, %v1141_v22 }
  0xfa   :  { %v1154_v5 = vsel %vm1148_vm6, %v1137_v23, %v1139_v1  ;;  %1176 = vmatprep.subr.bf16.mxu0 %v1155_v4 }
  0xfb   :  { %1177 = vmatpush1.bf16.msra.mxu0 %v1154_v5 }
  0xfc   :  { %v1143_v6 = vpop.permute.xlu0 %1142 }
  0xfd   :  { %v1156_v8 = vsel %vm1148_vm6, %v1141_v22, %v1143_v6  ;;  %v1145_v25 = vpop.permute.xlu1 %1144 }
  0xfe   :  { %1805 = vmatmul.mubr.msk.bf16.vlgmr.msra.gmra.mrb[36].mxu0 %vm133_vm1, %v1804_v24  ;;  %v1157_v26 = vsel %vm1148_vm6, %v1143_v6, %v1145_v25 }
  0xff   :  { %1217 = vmatprep.subr.bf16.mxu1 %v1157_v26  ;;  %1288 = vmatprep.mubr.bf16.mxu0 %v1847_v7 }
 0x100   :  { %1218 = vmatpush1.bf16.msra.mxu1 %v1156_v8  ;;  %v1135_v9 = vpop.permute.xlu0 %1134 }
 0x101   :  { %v1153_v10 = vsel %vm1148_vm6, %v1133_v20, %v1135_v9  ;;  %v1308_v27 = vpop.permute.xlu1 %1307  ;;  %1256 = vmatprep.subr.bf16.mxu0 %v1135_v9 }
 0x102   :  { %1257 = vmatpush1.bf16.msra.mxu0 %v1153_v10 }
 0x103   :  { %1806 = vmatmul.mubr.msk.bf16.vlgmr.msra.gmra.mrb[36].mxu1 %vm133_vm1, %v1804_v24 }
 0x104   :  { %v1310_v28 = vpop.permute.xlu0 %1309  ;;  %1387 = vmatprep.mubr.bf16.mxu1 %v1847_v7 }
 0x105   :  { %v1147_v11 = vpop.permute.xlu1 %1146  ;;  %v1331_v29 = vsel %vm1329_vm7, %v1308_v27, %v1310_v28 }
 0x106   :  { %v1158_v12 = vsel %vm1148_vm6, %v1145_v25, %v1147_v11  ;;  %1258 = vmatprep.subr.bf16.mxu0 %v1147_v11  ;;  %1355 = vmatprep.subr.bf16.mxu1 %v1331_v29 }
 0x107   :  { %1259 = vmatpush1.bf16.msra.mxu0 %v1158_v12 }
 0x108   :  { %v1306_v30 = vpop.permute.xlu0 %1305 }
 0x109   :  { %v1330_v31 = vsel %vm1329_vm7, %v1306_v30, %v1308_v27  ;;  %v1312_v32 = vpop.permute.xlu1 %1311 }
 0x10a   :  { %1807 = vmatmul.mubr.msk.bf16.vlgmr.msra.gmra.mrb[40].mxu0 %vm133_vm1, %v1804_v24  ;;  %1356 = vmatpush1.bf16.msra.mxu1 %v1330_v31  ;;  %v1332_v36 = vsel %vm1329_vm7, %v1310_v28, %v1312_v32 }
 0x10b   :  { %1428 = vmatprep.mubr.bf16.mxu0 %v1847_v7 }
 0x10c   :  { %v1314_v33 = vpop.permute.xlu0 %1313 }
 0x10d   :  { %v1320_v34 = vpop.permute.xlu1 %1319  ;;  %v1333_v35 = vsel %vm1329_vm7, %v1312_v32, %v1314_v33 }
 0x10e   :  { %1396 = vmatprep.subr.bf16.mxu0 %v1333_v35 }
 0x10f   :  { %1397 = vmatpush1.bf16.msra.mxu0 %v1332_v36 }
 0x110   :  { %v1322_v37 = vpop.permute.xlu0 %1321 }
 0x111   :  { %v1318_v38 = vpop.permute.xlu1 %1317  ;;  %v1336_v39 = vsel %vm1329_vm7, %v1320_v34, %v1322_v37 }
 0x112   :  { %v1335_v40 = vsel %vm1329_vm7, %v1318_v38, %v1320_v34  ;;  %1357 = vmatprep.subr.bf16.mxu1 %v1336_v39 }
 0x113   :  { %1358 = vmatpush1.bf16.msra.mxu1 %v1335_v40 }
 0x114   :  { %v1324_v42 = vpop.permute.xlu0 %1323 }
 0x115   :  { %v1337_v43 = vsel %vm1329_vm7, %v1322_v37, %v1324_v42  ;;  %v1326_v44 = vpop.permute.xlu1 %1325 }
 0x116   :  { %1809 = vmatmul.mubr.msk.bf16.vlgmr.msra.gmra.mrb[40].mxu1 %vm133_vm1, %v1808_v41  ;;  %v1338_v45 = vsel %vm1329_vm7, %v1324_v42, %v1326_v44 }
 0x117   :  { %1398 = vmatprep.subr.bf16.mxu0 %v1338_v45  ;;  %1469 = vmatprep.mubr.bf16.mxu1 %v1847_v7 }
 0x118   :  { %1399 = vmatpush1.bf16.msra.mxu0 %v1337_v43  ;;  %v1316_v46 = vpop.permute.xlu0 %1315 }
 0x119   :  { %v1334_v47 = vsel %vm1329_vm7, %v1314_v33, %v1316_v46  ;;  %v1489_v48 = vpop.permute.xlu1 %1488  ;;  %1437 = vmatprep.subr.bf16.mxu1 %v1316_v46 }
 0x11a   :  { %1438 = vmatpush1.bf16.msra.mxu1 %v1334_v47 }
 0x11b   :  { %1810 = vmatmul.mubr.msk.bf16.vlgmr.msra.gmra.mrb[44].mxu0 %vm133_vm1, %v1808_v41 }
 0x11c   :  { %v1491_v49 = vpop.permute.xlu0 %1490  ;;  %1568 = vmatprep.mubr.bf16.mxu0 %v1847_v7 }
 0x11d   :  { %v1328_v50 = vpop.permute.xlu1 %1327  ;;  %v1512_v51 = vsel %vm1510_vm8, %v1489_v48, %v1491_v49 }
 0x11e   :  { %v1339_v52 = vsel %vm1329_vm7, %v1326_v44, %v1328_v50  ;;  %1439 = vmatprep.subr.bf16.mxu1 %v1328_v50  ;;  %1536 = vmatprep.subr.bf16.mxu0 %v1512_v51 }
 0x11f   :  { %1440 = vmatpush1.bf16.msra.mxu1 %v1339_v52 }
 0x120   :  { %v1487_v53 = vpop.permute.xlu0 %1486 }
 0x121   :  { %v1511_v54 = vsel %vm1510_vm8, %v1487_v53, %v1489_v48  ;;  %v1493_v55 = vpop.permute.xlu1 %1492 }
 0x122   :  { %1811 = vmatmul.mubr.msk.bf16.vlgmr.msra.gmra.mrb[44].mxu1 %vm133_vm1, %v1808_v41  ;;  %1537 = vmatpush1.bf16.msra.mxu0 %v1511_v54  ;;  %v1513_v59 = vsel %vm1510_vm8, %v1491_v49, %v1493_v55 }
 0x123   :  { %1609 = vmatprep.mubr.bf16.mxu1 %v1847_v7 }
 0x124   :  { %v1495_v56 = vpop.permute.xlu0 %1494 }
 0x125   :  { %v1501_v57 = vpop.permute.xlu1 %1500  ;;  %v1514_v58 = vsel %vm1510_vm8, %v1493_v55, %v1495_v56 }
 0x126   :  { %1577 = vmatprep.subr.bf16.mxu1 %v1514_v58 }
 0x127   :  { %1578 = vmatpush1.bf16.msra.mxu1 %v1513_v59 }
 0x128   :  { %v1503_v60 = vpop.permute.xlu0 %1502 }
 0x129   :  { %v1499_v61 = vpop.permute.xlu1 %1498  ;;  %v1517_v62 = vsel %vm1510_vm8, %v1501_v57, %v1503_v60 }
 0x12a   :  { %v1516_v63 = vsel %vm1510_vm8, %v1499_v61, %v1501_v57  ;;  %1538 = vmatprep.subr.bf16.mxu0 %v1517_v62 }
 0x12b   :  { %1539 = vmatpush1.bf16.msra.mxu0 %v1516_v63 }
 0x12c   :  { %v1505_v14 = vpop.permute.xlu0 %1504 }
 0x12d   :  { %v1518_v15 = vsel %vm1510_vm8, %v1503_v60, %v1505_v14  ;;  %v1507_v16 = vpop.permute.xlu1 %1506 }
 0x12e   :  { %1813 = vmatmul.mubr.msk.bf16.vlgmr.msra.gmra.mrb[48].mxu0 %vm133_vm1, %v1812_v13  ;;  %v1519_v0 = vsel %vm1510_vm8, %v1505_v14, %v1507_v16 }
 0x12f   :  { %1579 = vmatprep.subr.bf16.mxu1 %v1519_v0  ;;  %1650 = vmatprep.mubr.bf16.mxu0 %v1847_v7 }
 0x130   :  { %1580 = vmatpush1.bf16.msra.mxu1 %v1518_v15  ;;  %v1497_v17 = vpop.permute.xlu0 %1496 }
 0x131   :  { %v1515_v2 = vsel %vm1510_vm8, %v1495_v56, %v1497_v17  ;;  %1618 = vmatprep.subr.bf16.mxu0 %v1497_v17  ;;  %v1509_v18 = vpop.permute.xlu1 %1508 }
 0x132   :  { %1619 = vmatpush1.bf16.msra.mxu0 %v1515_v2  ;;  %v1520_v19 = vsel %vm1510_vm8, %v1507_v16, %v1509_v18 }
 0x133   :  { %1814 = vmatmul.mubr.msk.bf16.vlgmr.msra.gmra.mrb[48].mxu1 %vm133_vm1, %v1812_v13  ;;  %1620 = vmatprep.subr.bf16.mxu0 %v1509_v18 }
 0x136   :  { %1621 = vmatpush1.bf16.msra.mxu0 %v1520_v19 }
 0x139   :  { %1815 = vmatmul.mubr.msk.bf16.vlgmr.msra.gmra.mrb[52].mxu0 %vm133_vm1, %v1812_v13 }
 0x159   :  { %v171_v20 = vpop.f32.mrb[0].mxu0 }
 0x15a   :  { %v173_v1 = vpop.f32.mrb[1].mxu0 }
 0x15b   :  { %v175_v3 = vpop.f32.mrb[2].mxu0 }
 0x15c   :  { %v176_v21 = vpop.f32.mrb[3].mxu0 }
 0x15e   :  { %v212_v7 = vpop.f32.mrb[0].mxu1 }
 0x15f   :  { %v214_v22 = vpop.f32.mrb[1].mxu1 }
 0x160   :  { %v216_v23 = vpop.f32.mrb[2].mxu1 }
 0x161   :  { %v217_v4 = vpop.f32.mrb[3].mxu1 }
 0x164   :  { %v253_v5 = vpop.f32.mrb[4].mxu0 }
 0x165   :  { %v255_v24 = vpop.f32.mrb[5].mxu0 }
 0x166   :  { %v257_v6 = vpop.f32.mrb[6].mxu0  ;;  %v309_v8 = vpop.f32.mrb[4].mxu1 }
 0x167   :  { %v258_v25 = vpop.f32.mrb[7].mxu0  ;;  %v310_v26 = vadd.f32 %v309_v8, %v171_v20  ;;  %v311_v9 = vpop.f32.mrb[5].mxu1 }
 0x168   :  { %v312_v10 = vadd.f32 %v311_v9, %v173_v1  ;;  %v313_v27 = vpop.f32.mrb[6].mxu1 }
 0x169   :  { %v314_v28 = vpop.f32.mrb[7].mxu1 }
 0x16c   :  { %v350_v11 = vpop.f32.mrb[8].mxu0 }
 0x16d   :  { %v351_v29 = vadd.f32 %v350_v11, %v212_v7  ;;  %v352_v12 = vpop.f32.mrb[9].mxu0 }
 0x16e   :  { %v353_v30 = vadd.f32 %v352_v12, %v214_v22  ;;  %v354_v31 = vpop.f32.mrb[10].mxu0  ;;  %v391_v32 = vpop.f32.mrb[8].mxu1 }
 0x16f   :  { %v355_v33 = vpop.f32.mrb[11].mxu0  ;;  %v392_v34 = vadd.f32 %v391_v32, %v253_v5  ;;  %v393_v35 = vpop.f32.mrb[9].mxu1 }
 0x170   :  { %v394_v36 = vadd.f32 %v393_v35, %v255_v24  ;;  %v395_v37 = vpop.f32.mrb[10].mxu1 }
 0x171   :  { %v396_v38 = vpop.f32.mrb[11].mxu1 }
 0x174   :  { %v484_v39 = vpop.f32.mrb[12].mxu0 }
 0x175   :  { %v573_v40 = vadd.f32 %v484_v39, %v310_v26  ;;  %v486_v41 = vpop.f32.mrb[13].mxu0 }
 0x176   :  { %v574_v42 = vadd.f32 %v486_v41, %v312_v10  ;;  %v488_v43 = vpop.f32.mrb[14].mxu0  ;;  %v525_v44 = vpop.f32.mrb[12].mxu1 }
 0x177   :  { %v489_v45 = vpop.f32.mrb[15].mxu0  ;;  %v575_v46 = vadd.f32 %v525_v44, %v351_v29  ;;  %v527_v47 = vpop.f32.mrb[13].mxu1 }
 0x178   :  { %v576_v48 = vadd.f32 %v527_v47, %v353_v30  ;;  %v529_v49 = vpop.f32.mrb[14].mxu1 }
 0x179   :  { %v530_v50 = vpop.f32.mrb[15].mxu1 }
 0x17c   :  { %v566_v51 = vpop.f32.mrb[16].mxu0 }
 0x17d   :  { %v577_v52 = vadd.f32 %v566_v51, %v392_v34  ;;  %v568_v53 = vpop.f32.mrb[17].mxu0 }
 0x17e   :  { %v578_v54 = vadd.f32 %v568_v53, %v394_v36  ;;  %v570_v55 = vpop.f32.mrb[18].mxu0 }
 0x17f   :  { %v571_v56 = vpop.f32.mrb[19].mxu0 }
 0x189   :  { %v665_v57 = vpop.f32.mrb[16].mxu1 }
 0x18a   :  { %v754_v58 = vadd.f32 %v665_v57, %v573_v40  ;;  %v667_v59 = vpop.f32.mrb[17].mxu1 }
 0x18b   :  { %v755_v60 = vadd.f32 %v667_v59, %v574_v42  ;;  %v669_v61 = vpop.f32.mrb[18].mxu1 }
 0x18c   :  { %v670_v62 = vpop.f32.mrb[19].mxu1 }
 0x18e   :  { %v706_v63 = vpop.f32.mrb[20].mxu0 }
 0x18f   :  { %v756_v13 = vadd.f32 %v706_v63, %v575_v46  ;;  %v708_v14 = vpop.f32.mrb[21].mxu0 }
 0x190   :  { %v757_v15 = vadd.f32 %v708_v14, %v576_v48  ;;  %v710_v16 = vpop.f32.mrb[22].mxu0 }
 0x191   :  { %v711_v0 = vpop.f32.mrb[23].mxu0 }
 0x194   :  { %v747_v17 = vpop.f32.mrb[20].mxu1 }
 0x195   :  { %v758_v2 = vadd.f32 %v747_v17, %v577_v52  ;;  %v749_v18 = vpop.f32.mrb[21].mxu1 }
 0x196   :  { %v759_v19 = vadd.f32 %v749_v18, %v578_v54  ;;  %v751_v20 = vpop.f32.mrb[22].mxu1 }
 0x197   :  { %v752_v1 = vpop.f32.mrb[23].mxu1 }
 0x1a1   :  { %v846_v3 = vpop.f32.mrb[24].mxu0 }
 0x1a2   :  { %v935_v21 = vadd.f32 %v846_v3, %v754_v58  ;;  %v848_v7 = vpop.f32.mrb[25].mxu0 }
 0x1a3   :  { %v936_v22 = vadd.f32 %v848_v7, %v755_v60  ;;  %v850_v23 = vpop.f32.mrb[26].mxu0 }
 0x1a4   :  { %v851_v4 = vpop.f32.mrb[27].mxu0 }
 0x1a5   :  { %v887_v5 = vpop.f32.mrb[24].mxu1  ;;  %v1679_v4 = vlaneseq }
 0x1a6   :  { %v937_v24 = vadd.f32 %v887_v5, %v756_v13  ;;  %v889_v6 = vpop.f32.mrb[25].mxu1 }
 0x1a7   :  { %v938_v8 = vadd.f32 %v889_v6, %v757_v15  ;;  %v891_v25 = vpop.f32.mrb[26].mxu1 }
 0x1a8   :  { %v892_v26 = vpop.f32.mrb[27].mxu1 }
 0x1a9   :  { %v1677_v26 = vld [vmem:[%s2306_s3] sm:$0x3f] }
 0x1ac   :  { %v928_v9 = vpop.f32.mrb[28].mxu0 }
 0x1ad   :  { %v939_v10 = vadd.f32 %v928_v9, %v758_v2  ;;  %v930_v27 = vpop.f32.mrb[29].mxu0 }
 0x1ae   :  { %v940_v28 = vadd.f32 %v930_v27, %v759_v19  ;;  %v932_v11 = vpop.f32.mrb[30].mxu0  ;;  %v1669_v27 = vpop.permute.xlu0 %1668 }
 0x1af   :  { %v933_v29 = vpop.f32.mrb[31].mxu0 }
 0x1b9   :  { %v1027_v12 = vpop.f32.mrb[28].mxu1 }
 0x1ba   :  { %v1116_v30 = vadd.f32 %v1027_v12, %v935_v21  ;;  %v1029_v31 = vpop.f32.mrb[29].mxu1 }
 0x1bb   :  { %v1117_v32 = vadd.f32 %v1029_v31, %v936_v22  ;;  %v1031_v33 = vpop.f32.mrb[30].mxu1 }
 0x1bc   :  { %v1032_v34 = vpop.f32.mrb[31].mxu1 }
 0x1bd   :  { %v1068_v35 = vpop.f32.mrb[32].mxu0 }
 0x1be   :  { %v1118_v36 = vadd.f32 %v1068_v35, %v937_v24  ;;  %v1070_v37 = vpop.f32.mrb[33].mxu0 }
 0x1bf   :  { %v1119_v38 = vadd.f32 %v1070_v37, %v938_v8  ;;  %v1072_v39 = vpop.f32.mrb[34].mxu0  ;;  %v1680_v8 = vshrl.u32 %v1679_v4, 7  ;;  %v1722_v37 = vld [vmem:[%s2307_s4] sm:$0xff] }
 0x1c0   :  { %v1073_v40 = vpop.f32.mrb[35].mxu0 }
 0x1c1   :  { %v1681_v25 = vsub.s32 0, %v1680_v8  ;;  %v1685_v9 = vsub.s32 1, %v1680_v8  ;;  %v1693_v35 = vsub.s32 3, %v1680_v8  ;;  %v1723_v40 = vld [vmem:[%s2307_s4 + $0x8] sm:$0xff] }
 0x1c3   :  { %v1682_v29 = vrot.slane %v1677_v26, %v1681_v25 }
 0x1c5   :  { %v1109_v41 = vpop.f32.mrb[32].mxu1 }
 0x1c6   :  { %v1120_v42 = vadd.f32 %v1109_v41, %v939_v10  ;;  %v1111_v43 = vpop.f32.mrb[33].mxu1 }
 0x1c7   :  { %v1121_v44 = vadd.f32 %v1111_v43, %v940_v28  ;;  %v1113_v45 = vpop.f32.mrb[34].mxu1 }
 0x1c8   :  { %v1114_v46 = vpop.f32.mrb[35].mxu1 }
 0x1c9   :  { %v1694_v46 = vrot.slane %v1677_v26, %v1693_v35 }
 0x1d1   :  { %v1208_v47 = vpop.f32.mrb[36].mxu0 }
 0x1d2   :  { %v1297_v48 = vadd.f32 %v1208_v47, %v1116_v30  ;;  %v1210_v49 = vpop.f32.mrb[37].mxu0  ;;  %v1686_v30 = vrot.slane %v1677_v26, %v1685_v9 }
 0x1d3   :  { %v1298_v50 = vadd.f32 %v1210_v49, %v1117_v32  ;;  %v1212_v51 = vpop.f32.mrb[38].mxu0  ;;  %v1689_v32 = vsub.s32 2, %v1680_v8 }
 0x1d4   :  { %v1213_v52 = vpop.f32.mrb[39].mxu0  ;;  %v1697_v51 = vsub.s32 4, %v1680_v8 }
 0x1d5   :  { %v1690_v43 = vrot.slane %v1677_v26, %v1689_v32 }
 0x1d6   :  { %v1249_v53 = vpop.f32.mrb[36].mxu1 }
 0x1d7   :  { %v1299_v54 = vadd.f32 %v1249_v53, %v1118_v36  ;;  %v1251_v55 = vpop.f32.mrb[37].mxu1  ;;  %v1724_v53 = vld [vmem:[%s2307_s4 + $0x10] sm:$0xff] }
 0x1d8   :  { %v1300_v56 = vadd.f32 %v1251_v55, %v1119_v38  ;;  %v1253_v57 = vpop.f32.mrb[38].mxu1  ;;  %v1701_v55 = vsub.s32 5, %v1680_v8 }
 0x1d9   :  { %v1254_v58 = vpop.f32.mrb[39].mxu1 }
 0x1da   :  { %v1725_v58 = vld [vmem:[%s2307_s4 + $0x18] sm:$0xff] }
 0x1dd   :  { %v1290_v59 = vpop.f32.mrb[40].mxu0 }
 0x1de   :  { %v1301_v60 = vadd.f32 %v1290_v59, %v1120_v42  ;;  %v1292_v61 = vpop.f32.mrb[41].mxu0 }
 0x1df   :  { %v1302_v62 = vadd.f32 %v1292_v61, %v1121_v44  ;;  %v1294_v63 = vpop.f32.mrb[42].mxu0 }
 0x1e0   :  { %v1295_v13 = vpop.f32.mrb[43].mxu0 }
 0x1e1   :  { %v1698_v13 = vrot.slane %v1677_v26, %v1697_v51 }
 0x1e9   :  { %v1389_v14 = vpop.f32.mrb[40].mxu1 }
 0x1ea   :  { %v1478_v15 = vadd.f32 %v1389_v14, %v1297_v48  ;;  %v1391_v16 = vpop.f32.mrb[41].mxu1 }
 0x1eb   :  { %v1479_v0 = vadd.f32 %v1391_v16, %v1298_v50  ;;  %v1393_v17 = vpop.f32.mrb[42].mxu1 }
 0x1ec   :  { %v1394_v2 = vpop.f32.mrb[43].mxu1  ;;  %v1702_v17 = vrot.slane %v1677_v26, %v1701_v55 }
 0x1ee   :  { %v1430_v18 = vpop.f32.mrb[44].mxu0 }
 0x1ef   :  { %v1480_v19 = vadd.f32 %v1430_v18, %v1299_v54  ;;  %v1432_v20 = vpop.f32.mrb[45].mxu0 }
 0x1f0   :  { %v1481_v1 = vadd.f32 %v1432_v20, %v1300_v56  ;;  %v1434_v3 = vpop.f32.mrb[46].mxu0 }
 0x1f1   :  { %v1435_v21 = vpop.f32.mrb[47].mxu0 }
 0x1f2   :  { %v1726_v21 = vld [vmem:[%s2307_s4 + $0x20] sm:$0xff] }
 0x1f5   :  { %v1471_v7 = vpop.f32.mrb[44].mxu1 }
 0x1f6   :  { %v1482_v22 = vadd.f32 %v1471_v7, %v1301_v60  ;;  %v1473_v23 = vpop.f32.mrb[45].mxu1 }
 0x1f7   :  { %v1483_v5 = vadd.f32 %v1473_v23, %v1302_v62  ;;  %v1475_v24 = vpop.f32.mrb[46].mxu1 }
 0x1f8   :  { %v1476_v6 = vpop.f32.mrb[47].mxu1 }
 0x201   :  { %v1570_v10 = vpop.f32.mrb[48].mxu0 }
 0x202   :  { %v1659_v28 = vadd.f32 %v1570_v10, %v1478_v15  ;;  %v1572_v11 = vpop.f32.mrb[49].mxu0 }
 0x203   :  { %v1660_v12 = vadd.f32 %v1572_v11, %v1479_v0  ;;  %v1574_v31 = vpop.f32.mrb[50].mxu0 }
 0x204   :  { %v1671_v33 = vadd.f32 %v1669_v27, %v1659_v28  ;;  %v1575_v34 = vpop.f32.mrb[51].mxu0 }
 0x205   :  { %v1672_v36 = vadd.f32 %v1669_v27, %v1660_v12 }
 0x206   :  { %v1709_v38 = vmul.f32 %v1682_v29, %v1671_v33  ;;  %v1611_v39 = vpop.f32.mrb[48].mxu1  ;;  %v1756_v33 = vand.u32 127, %v1679_v4 }
 0x207   :  { %v1710_v41 = vmul.f32 %v1686_v30, %v1672_v36  ;;  %v1661_v42 = vadd.f32 %v1611_v39, %v1480_v19  ;;  %v1613_v44 = vpop.f32.mrb[49].mxu1 }
 0x208   :  { %1715 = vst [vmem:[%s2308_s5] sm:$0xff] %v1709_v38  ;;  %v1662_v45 = vadd.f32 %v1613_v44, %v1481_v1  ;;  %v1615_v47 = vpop.f32.mrb[50].mxu1  ;;  %v1728_v48 = vsub.f32 %v1709_v38, %v1722_v37  ;;  %vm1757_vm10 = vcmp.eq.s32.totalorder %v1756_v33, 0 }
 0x209   :  { %1716 = vst [vmem:[%s2308_s5 + $0x8] sm:$0xff] %v1710_v41  ;;  %v1673_v49 = vadd.f32 %v1669_v27, %v1661_v42  ;;  %v1616_v50 = vpop.f32.mrb[51].mxu1  ;;  %v1729_v52 = vsub.f32 %v1710_v41, %v1723_v40 }
 0x20a   :  { %v1674_v54 = vadd.f32 %v1669_v27, %v1662_v45  ;;  %v1734_v56 = vmul.f32 %v1728_v48, %v1728_v48 }
 0x20b   :  { %v1711_v57 = vmul.f32 %v1690_v43, %v1673_v49  ;;  %v1735_v59 = vmul.f32 %v1729_v52, %v1729_v52 }
 0x20c   :  { %v1712_v60 = vmul.f32 %v1694_v46, %v1674_v54  ;;  %v1652_v61 = vpop.f32.mrb[52].mxu0 }
 0x20d   :  { %1717 = vst [vmem:[%s2308_s5 + $0x10] sm:$0xff] %v1711_v57  ;;  %v1730_v62 = vsub.f32 %v1711_v57, %v1724_v53  ;;  %v1663_v63 = vadd.f32 %v1652_v61, %v1482_v22  ;;  %v1654_v14 = vpop.f32.mrb[53].mxu0  ;;  %v1740_v15 = vadd.f32 %v1735_v59, %v1734_v56  ;;  %v1727_v22 = vld [vmem:[%s2307_s4 + $0x28] sm:$0xff] }
 0x20e   :  { %1718 = vst [vmem:[%s2308_s5 + $0x18] sm:$0xff] %v1712_v60  ;;  %v1731_v16 = vsub.f32 %v1712_v60, %v1725_v58  ;;  %v1664_v0 = vadd.f32 %v1654_v14, %v1483_v5  ;;  %v1656_v2 = vpop.f32.mrb[54].mxu0 }
 0x20f   :  { %v1736_v18 = vmul.f32 %v1730_v62, %v1730_v62  ;;  %v1675_v19 = vadd.f32 %v1669_v27, %v1663_v63  ;;  %v1657_v20 = vpop.f32.mrb[55].mxu0 }
 0x210   :  { %v1737_v1 = vmul.f32 %v1731_v16, %v1731_v16  ;;  %v1676_v3 = vadd.f32 %v1669_v27, %v1664_v0 }
 0x211   :  { %v1713_v7 = vmul.f32 %v1698_v13, %v1675_v19  ;;  %v1741_v23 = vadd.f32 %v1740_v15, %v1736_v18 }
 0x212   :  { %v1714_v24 = vmul.f32 %v1702_v17, %v1676_v3 }
 0x213   :  { %1719 = vst [vmem:[%s2308_s5 + $0x20] sm:$0xff] %v1713_v7  ;;  %v1732_v5 = vsub.f32 %v1713_v7, %v1726_v21  ;;  %v1742_v6 = vadd.f32 %v1741_v23, %v1737_v1 }
 0x214   :  { %1721 = vst.msk [vmem:[%s2308_s5 + $0x28] sm:$0xff] %vm1720_vm9, %v1714_v24  ;;  %v1733_v8 = vsub.f32 %v1714_v24, %v1727_v22 }
 0x215   :  { %v1738_v25 = vmul.f32 %v1732_v5, %v1732_v5 }
 0x216   :  { %v1739_v26 = vmul.f32 %v1733_v8, %v1733_v8 }
 0x217   :  { %v1743_v9 = vadd.f32 %v1742_v6, %v1738_v25 }
 0x218   :  { %v1744_v10 = vsel %vm1720_vm9, %v1739_v26, 0.0 }
 0x219   :  { %v1745_v27 = vadd.f32 %v1744_v10, %v1743_v9 }
 0x21b   :  { %1746 = vadd.xlane.f32.xlu1 %v1745_v27 }
 0x2a8   :  { %v1747_v28 = vpop.xlane.xlu1 %1746 }
 0x2a9   :  { %v1748_v11 = vrot.slane %v1747_v28, 4 }
 0x2ab   :  { %v1749_v29 = vadd.f32 %v1748_v11, %v1747_v28 }
 0x2ad   :  { %v1750_v12 = vrot.slane %v1749_v29, 2 }
 0x2af   :  { %v1751_v30 = vadd.f32 %v1750_v12, %v1749_v29 }
 0x2b1   :  { %v1752_v31 = vrot.slane %v1751_v30, 1 }
 0x2b3   :  { %v1753_v32 = vadd.f32 %v1752_v31, %v1751_v30 }
 0x2b5   :  { %1816 = vpush %v1753_v32 }
 0x2e6   :  { %s1817_s4 = spop %1816 }
 0x2e7   :  { %v1758_v34 = vstv %s1817_s4 }
 0x2e8   :  { %v1759_v35 = vsel %vm1757_vm10, %v1758_v34, 0.0 }
 0x2e9   :  { %1760 = vst [vmem:[%s2309_s6] sm:$0x1] %v1759_v35 }

</bundles_post_ra>
